<compile_context>
chip_gen: v7x
topology: tpu7x:2x2x1
jax: 0.10.0
libtpu: 0.0.40
codegen_flags: <defaults>
</compile_context>

<pallas_src>
import functools
import math

import jax
import jax.numpy as jnp
from jax import lax
from jax.experimental import pallas as pl
from jax.experimental.pallas import tpu as pltpu


# ----------------------------------------------------------------------------
# Kernel 1: fused conv1 + bn1 + relu + conv2 + bn2 + relu.
# One grid step handles tb batch rows; x arrives pre-padded (halo 2 + L->Lp pad).
# ----------------------------------------------------------------------------
def _conv_stage_kernel(x_ref, w1_ref, s1_ref, t1_ref, w2_ref, s2_ref, t2_ref,
                       o_ref, h1_scr, *, L, Lp, tb):
    xp = x_ref[...]                                   # (tb, Lp+4) f32
    w1 = w1_ref[...]                                  # (64, 3)
    s1 = s1_ref[...][None]                            # (1, 64, 1)
    t1 = t1_ref[...][None]                            # (1, 64, 1)
    w2 = w2_ref[...]                                  # (128, 192), k-major groups
    s2 = s2_ref[...]                                  # (128, 1)
    t2 = t2_ref[...]                                  # (128, 1)

    # ---- conv1 (C_in = 1) as a VPU broadcast-MAC, batched over all tb rows ----
    x0 = xp[:, None, 0:Lp + 2]                        # (tb, 1, Lp+2)
    x1 = xp[:, None, 1:Lp + 3]
    x2 = xp[:, None, 2:Lp + 4]
    w10 = w1[:, 0:1][None]                            # (1, 64, 1)
    w11 = w1[:, 1:2][None]
    w12 = w1[:, 2:3][None]
    h1 = w10 * x0 + w11 * x1 + w12 * x2               # (tb, 64, Lp+2)
    h1 = jnp.maximum(h1 * s1 + t1, 0.0)               # folded eval-mode BN1 + ReLU
    # Zero the conv halo (j=0) and everything past the true length L (j>=L+1):
    # those columns act as conv2's zero padding / keep the Lp padding inert.
    j = lax.broadcasted_iota(jnp.int32, (1, 1, Lp + 2), 2)
    h1_scr[...] = jnp.where((j >= 1) & (j <= L), h1, 0.0)

    # ---- conv2 as three K=64 MXU dots per batch row (no im2col concat) ----
    w2a = w2[:, 0:64]                                 # tap k=0
    w2b = w2[:, 64:128]                               # tap k=1
    w2c = w2[:, 128:192]                              # tap k=2

    @pl.loop(0, tb)
    def _(b):
        h1b = h1_scr[b]                               # (64, Lp+2)
        h2 = jnp.dot(w2a, h1b[:, 0:Lp], preferred_element_type=jnp.float32)
        h2 = h2 + jnp.dot(w2b, h1b[:, 1:Lp + 1], preferred_element_type=jnp.float32)
        h2 = h2 + jnp.dot(w2c, h1b[:, 2:Lp + 2], preferred_element_type=jnp.float32)
        h2 = jnp.maximum(h2 * s2 + t2, 0.0)           # folded eval-mode BN2 + ReLU
        o_ref[b] = h2.astype(o_ref.dtype)             # (128, Lp) lane-dense store


def conv_bn_relu_stage(x, w1, s1, t1, w2r, s2, t2, *, L, Lp, tb=8,
                       out_dtype=jnp.bfloat16):
    """x: (B, L) f32. Returns (Bp, 128, Lp), Bp = B rounded up to tb."""
    B = x.shape[0]
    Bp = ((B + tb - 1) // tb) * tb
    # batch pad + left halo 2 + (L->Lp zero pad + right halo 2)
    xp = jnp.pad(x, ((0, Bp - B), (2, 2 + Lp - L)))
    C2 = w2r.shape[0]
    return pl.pallas_call(
        functools.partial(_conv_stage_kernel, L=L, Lp=Lp, tb=tb),
        out_shape=jax.ShapeDtypeStruct((Bp, C2, Lp), out_dtype),
        grid_spec=pltpu.PrefetchScalarGridSpec(
            num_scalar_prefetch=0,
            grid=(Bp // tb,),
            in_specs=[
                pl.BlockSpec((tb, Lp + 4), lambda i: (i, 0)),  # padded x rows
                pl.BlockSpec(w1.shape, lambda i: (0, 0)),      # (64, 3)
                pl.BlockSpec(s1.shape, lambda i: (0, 0)),      # (64, 1)
                pl.BlockSpec(t1.shape, lambda i: (0, 0)),      # (64, 1)
                pl.BlockSpec(w2r.shape, lambda i: (0, 0)),     # (128, 192)
                pl.BlockSpec(s2.shape, lambda i: (0, 0)),      # (128, 1)
                pl.BlockSpec(t2.shape, lambda i: (0, 0)),      # (128, 1)
            ],
            out_specs=pl.BlockSpec((tb, C2, Lp), lambda i: (i, 0, 0)),
            scratch_shapes=[pltpu.VMEM((tb, 64, Lp + 2), jnp.float32)],
        ),
        compiler_params=pltpu.CompilerParams(
            dimension_semantics=("parallel",)),
    )(xp, w1, s1, t1, w2r, s2, t2)


# ----------------------------------------------------------------------------
# Kernel 2: big FC layer  y = relu?(x @ W + b)  with a 3-D grid:
#   axis 0 -> M (batch) tiles   "parallel"
#   axis 1 -> N (output) tiles  "parallel"   (megacore-shardable)
#   axis 2 -> K tiles           "arbitrary"  (reduction, f32 VMEM accumulator)
# Weights + activations stream in bf16 (memory-bound layer); accumulation f32.
# ----------------------------------------------------------------------------
def _fc_accum_kernel(x_ref, w_ref, b_ref, o_ref, acc_ref, *, relu):
    k = pl.program_id(2)

    @pl.when(k == 0)
    def _():
        acc_ref[...] = jnp.zeros_like(acc_ref)

    acc_ref[...] += jnp.dot(x_ref[...], w_ref[...],
                            preferred_element_type=jnp.float32)

    @pl.when(k == pl.num_programs(2) - 1)
    def _():
        y = acc_ref[...] + b_ref[...]
        if relu:
            y = jnp.maximum(y, 0.0)
        o_ref[...] = y.astype(o_ref.dtype)


def fc_matmul(x, w, b, *, relu, tn=512, vmem_block_budget=32 * 1024 * 1024):
    """x: (M, K), w: (K, N) (already transposed from torch (N, K)), b: (N,)."""
    M, K = x.shape
    K2, N = w.shape
    assert K == K2
    if N % tn != 0 or N <= tn:
        tn = N
    # M tile: bounded so the x block / accumulator never blow VMEM at large batch.
    if M <= 256:
        tm = M
    else:
        divs = [d for d in range(8, 257, 8) if M % d == 0]
        tm = divs[-1] if divs else M

    xb = x.dtype.itemsize
    wb = w.dtype.itemsize

    def blocks_bytes(tk):
        # double-buffered in/out blocks + resident accumulator
        return (2 * (tk * tn * wb + tm * tk * xb)
                + 2 * (tn * 4 + tm * tn * 4) + tm * tn * 4)

    # K tile: largest multiple-of-128 divisor of K fitting the block budget
    # (K = 128*Lp always divides by 128). Big tiles amortize the ~0.35us/step cost.
    tk = K
    if K % 128 == 0:
        best = 128
        for d in range(1, K // 128 + 1):
            cand = 128 * d
            if K % cand == 0 and blocks_bytes(cand) <= vmem_block_budget:
                best = cand
        tk = best
    vlim = int(min(56 * 2**20, max(32 * 2**20, blocks_bytes(tk) + 16 * 2**20)))

    b2 = b.reshape(1, N).astype(jnp.float32)
    return pl.pallas_call(
        functools.partial(_fc_accum_kernel, relu=relu),
        out_shape=jax.ShapeDtypeStruct((M, N), jnp.float32),
        grid_spec=pltpu.PrefetchScalarGridSpec(
            num_scalar_prefetch=0,
            grid=(M // tm, N // tn, K // tk),
            in_specs=[
                pl.BlockSpec((tm, tk), lambda m, n, k: (m, k)),
                pl.BlockSpec((tk, tn), lambda m, n, k: (k, n)),
                pl.BlockSpec((1, tn), lambda m, n, k: (0, n)),
            ],
            out_specs=pl.BlockSpec((tm, tn), lambda m, n, k: (m, n)),
            scratch_shapes=[pltpu.VMEM((tm, tn), jnp.float32)],
        ),
        compiler_params=pltpu.CompilerParams(
            dimension_semantics=("parallel", "parallel", "arbitrary"),
            vmem_limit_bytes=vlim),
    )(x, w, b2)


# ----------------------------------------------------------------------------
# Kernel 3: fused FC2 -> ReLU -> FC3 -> ReLU -> FC4, bf16 weights resident in VMEM.
# fc4 output padded to 128 lanes (lane-dense store); caller slices column 0.
# M is tiled ("parallel") so the x block stays bounded at large batch.
# ----------------------------------------------------------------------------
def _fc_tail_kernel(x_ref, w2_ref, b2_ref, w3_ref, b3_ref, w4_ref, b4_ref, o_ref):
    h = jnp.dot(x_ref[...].astype(jnp.bfloat16), w2_ref[...],
                preferred_element_type=jnp.float32)
    h = jnp.maximum(h + b2_ref[...], 0.0)
    h = jnp.dot(h.astype(jnp.bfloat16), w3_ref[...],
                preferred_element_type=jnp.float32)
    h = jnp.maximum(h + b3_ref[...], 0.0)
    y = jnp.dot(h.astype(jnp.bfloat16), w4_ref[...],
                preferred_element_type=jnp.float32) + b4_ref[...]
    o_ref[...] = y.astype(o_ref.dtype)


def fc_tail(x, w2, b2, w3, b3, w4p, b4p):
    M, K1 = x.shape
    NP = w4p.shape[1]
    if M <= 256:
        tm = M
    else:
        divs = [d for d in range(8, 257, 8) if M % d == 0]
        tm = divs[-1] if divs else M
    return pl.pallas_call(
        _fc_tail_kernel,
        out_shape=jax.ShapeDtypeStruct((M, NP), jnp.float32),
        grid_spec=pltpu.PrefetchScalarGridSpec(
            num_scalar_prefetch=0,
            grid=(M // tm,),
            in_specs=[
                pl.BlockSpec((tm, K1), lambda m: (m, 0)),
                pl.BlockSpec(w2.shape, lambda m: (0, 0)),
                pl.BlockSpec((1, w2.shape[1]), lambda m: (0, 0)),
                pl.BlockSpec(w3.shape, lambda m: (0, 0)),
                pl.BlockSpec((1, w3.shape[1]), lambda m: (0, 0)),
                pl.BlockSpec(w4p.shape, lambda m: (0, 0)),
                pl.BlockSpec((1, NP), lambda m: (0, 0)),
            ],
            out_specs=pl.BlockSpec((tm, NP), lambda m: (m, 0)),
        ),
        compiler_params=pltpu.CompilerParams(
            dimension_semantics=("parallel",)),
    )(x, w2, b2.reshape(1, -1), w3, b3.reshape(1, -1), w4p, b4p.reshape(1, -1))


# ----------------------------------------------------------------------------
# Parameter init (deterministic, torch-like uniform(-1/sqrt(fan_in), ...)).
# ----------------------------------------------------------------------------
def _uniform(key, shape, bound):
    return jax.random.uniform(key, shape, jnp.float32, -bound, bound)


def init_params(key, L):
    ks = list(jax.random.split(key, 32))
    p = {"L": L}
    # conv1: Conv1d(1, 64, 3)
    f = 1.0 / math.sqrt(1 * 3)
    p["w1"] = _uniform(ks[0], (64, 1, 3), f)
    p["b1"] = _uniform(ks[1], (64,), f)
    p["g1"] = 1.0 + 0.1 * jax.random.normal(ks[2], (64,), jnp.float32)
    p["be1"] = 0.1 * jax.random.normal(ks[3], (64,), jnp.float32)
    p["m1"] = 0.1 * jax.random.normal(ks[4], (64,), jnp.float32)
    p["v1"] = jax.random.uniform(ks[5], (64,), jnp.float32, 0.5, 1.5)
    # conv2: Conv1d(64, 128, 3)
    f = 1.0 / math.sqrt(64 * 3)
    p["w2"] = _uniform(ks[6], (128, 64, 3), f)
    p["b2"] = _uniform(ks[7], (128,), f)
    p["g2"] = 1.0 + 0.1 * jax.random.normal(ks[8], (128,), jnp.float32)
    p["be2"] = 0.1 * jax.random.normal(ks[9], (128,), jnp.float32)
    p["m2"] = 0.1 * jax.random.normal(ks[10], (128,), jnp.float32)
    p["v2"] = jax.random.uniform(ks[11], (128,), jnp.float32, 0.5, 1.5)
    # fc layers (torch Linear: weight (out, in))
    dims = [(128 * L, 1024), (1024, 512), (512, 256), (256, 1)]
    for i, (din, dout) in enumerate(dims, start=1):
        f = 1.0 / math.sqrt(din)
        p[f"fw{i}"] = _uniform(ks[11 + 2 * i], (dout, din), f)
        p[f"fb{i}"] = _uniform(ks[12 + 2 * i], (dout,), f)
    return p


# ----------------------------------------------------------------------------
# Forward pass (Pallas) and pure-JAX reference.
# ----------------------------------------------------------------------------
def forward(x, p):
    L = p["L"]
    Lp = ((L + 127) // 128) * 128                     # pad L to lane-dense multiple of 128
    x = x.reshape(-1, L)                              # torch x.view(-1, 1, L)
    B = x.shape[0]
    eps = 1e-5
    # Fold conv bias + eval-mode BN into per-channel scale / shift.
    s1 = p["g1"] / jnp.sqrt(p["v1"] + eps)
    t1 = s1 * (p["b1"] - p["m1"]) + p["be1"]
    s2 = p["g2"] / jnp.sqrt(p["v2"] + eps)
    t2 = s2 * (p["b2"] - p["m2"]) + p["be2"]

    w1 = p["w1"][:, 0, :]                                         # (64, 3)
    w2r = jnp.transpose(p["w2"], (0, 2, 1)).reshape(128, 64 * 3)  # (128, 192) k-major

    # conv stage: output (Bp, 128, Lp) in bf16 (halves its HBM round-trip).
    h = conv_bn_relu_stage(
        x, w1, s1.reshape(64, 1), t1.reshape(64, 1),
        w2r, s2.reshape(128, 1), t2.reshape(128, 1), L=L, Lp=Lp)
    Bp = h.shape[0]
    h = h.reshape(Bp, 128 * Lp)                                   # free row-major view

    # FC1 (memory-bound): bf16 weight stream with zero rows for the L->Lp padding.
    w1fc = p["fw1"].reshape(1024, 128, L)
    w1fc = jnp.pad(w1fc, ((0, 0), (0, 0), (0, Lp - L)))
    w1fc = w1fc.reshape(1024, 128 * Lp).T.astype(jnp.bfloat16)    # (128*Lp, 1024)
    h1 = fc_matmul(h, w1fc, p["fb1"], relu=True)                  # (Bp, 1024) f32

    # FC2..FC4 fused (bf16 weights); fc4 output padded to 128 lanes, take column 0.
    w2t = p["fw2"].T.astype(jnp.bfloat16)
    w3t = p["fw3"].T.astype(jnp.bfloat16)
    w4p = jnp.zeros((256, 128), jnp.float32).at[:, 0:1].set(p["fw4"].T)
    w4p = w4p.astype(jnp.bfloat16)
    b4p = jnp.zeros((128,), jnp.float32).at[0].set(p["fb4"][0])
    y = fc_tail(h1, w2t, p["fb2"], w3t, p["fb3"], w4p, b4p)
    return y[:B, :1]


def ref_forward(x, p):
    L = p["L"]
    x = x.reshape(-1, L)
    B = x.shape[0]
    eps = 1e-5
    hp = jax.lax.Precision.HIGHEST

    def conv1d(h, w, b):  # h: (B, Cin, L), w: (Cout, Cin, 3)
        hpad = jnp.pad(h, ((0, 0), (0, 0), (1, 1)))
        cols = jnp.stack([hpad[:, :, k:k + L] for k in range(3)], axis=2)
        return jnp.einsum("bckl,ock->bol", cols, w, precision=hp) + b[None, :, None]

    def bn(h, g, be, m, v):
        return (h - m[None, :, None]) / jnp.sqrt(v[None, :, None] + eps) \
            * g[None, :, None] + be[None, :, None]

    def lin(h, w, b):
        return jnp.dot(h, w.T, precision=hp) + b

    h = x.reshape(B, 1, L)
    h = jnp.maximum(bn(conv1d(h, p["w1"], p["b1"]),
                       p["g1"], p["be1"], p["m1"], p["v1"]), 0.0)
    h = jnp.maximum(bn(conv1d(h, p["w2"], p["b2"]),
                       p["g2"], p["be2"], p["m2"], p["v2"]), 0.0)
    h = h.reshape(B, -1)
    h = jnp.maximum(lin(h, p["fw1"], p["fb1"]), 0.0)
    h = jnp.maximum(lin(h, p["fw2"], p["fb2"]), 0.0)
    h = jnp.maximum(lin(h, p["fw3"], p["fb3"]), 0.0)
    return lin(h, p["fw4"], p["fb4"])


if __name__ == "__main__":
    # Small demo shapes (module default input_length is 33*33 = 1089).
    # L=96 exercises the L -> Lp=128 padding path; B=6 exercises batch padding.
    B, L = 6, 96
    key = jax.random.PRNGKey(0)
    params = init_params(key, L)
    x = jax.random.normal(jax.random.fold_in(key, 999), (B, L), jnp.float32)

    y = forward(x, params)
    jax.block_until_ready(y)
    assert y.shape == (B, 1), y.shape

    y_ref = ref_forward(x, params)
    err = float(jnp.max(jnp.abs(y - y_ref)))
    scale = float(jnp.max(jnp.abs(y_ref))) + 1.0
    # bf16 FC weights / bf16 conv activations + MXU bf16 passes vs f32 HIGHEST ref.
    assert err <= 2e-2 * scale, f"mismatch: {err} vs scale {scale}"

    print("KERNEL_OK")
</pallas_src>

<mosaic_0001>
module attributes {stable_mosaic.version = 11 : i64} {
  func.func @_conv_stage_kernel(%arg0: i32, %arg1: memref<8x132xf32, #tpu.memory_space<vmem>>, %arg2: memref<64x3xf32, #tpu.memory_space<vmem>>, %arg3: memref<64x1xf32, #tpu.memory_space<vmem>>, %arg4: memref<64x1xf32, #tpu.memory_space<vmem>>, %arg5: memref<128x192xf32, #tpu.memory_space<vmem>>, %arg6: memref<128x1xf32, #tpu.memory_space<vmem>>, %arg7: memref<128x1xf32, #tpu.memory_space<vmem>>, %arg8: memref<8x128x128xbf16, #tpu.memory_space<vmem>>, %arg9: memref<8x64x130xf32, #tpu.memory_space<vmem>>) attributes {dimension_semantics = [#tpu.dimension_semantics<parallel>], iteration_bounds = array<i64: 1>, scalar_prefetch = 0 : i64, scratch_operands = 1 : i64, tpu.core_type = #tpu.core_type<tc>, window_params = [{transform_indices = @transform_0, window_bounds = array<i64: 8, 132>}, {pipeline_mode = #tpu.pipeline_mode<synchronous>, transform_indices = @transform_1, window_bounds = array<i64: 64, 3>}, {pipeline_mode = #tpu.pipeline_mode<synchronous>, transform_indices = @transform_2, window_bounds = array<i64: 64, 1>}, {pipeline_mode = #tpu.pipeline_mode<synchronous>, transform_indices = @transform_3, window_bounds = array<i64: 64, 1>}, {pipeline_mode = #tpu.pipeline_mode<synchronous>, transform_indices = @transform_4, window_bounds = array<i64: 128, 192>}, {pipeline_mode = #tpu.pipeline_mode<synchronous>, transform_indices = @transform_5, window_bounds = array<i64: 128, 1>}, {pipeline_mode = #tpu.pipeline_mode<synchronous>, transform_indices = @transform_6, window_bounds = array<i64: 128, 1>}, {transform_indices = @transform_7, window_bounds = array<i64: 8, 128, 128>}]} {
    %c0 = arith.constant 0 : index
    %c0_0 = arith.constant 0 : index
    %0 = vector.load %arg1[%c0, %c0_0] : memref<8x132xf32, #tpu.memory_space<vmem>>, vector<8x132xf32>
    %c0_1 = arith.constant 0 : index
    %c0_2 = arith.constant 0 : index
    %1 = vector.load %arg2[%c0_1, %c0_2] : memref<64x3xf32, #tpu.memory_space<vmem>>, vector<64x3xf32>
    %c0_3 = arith.constant 0 : index
    %c0_4 = arith.constant 0 : index
    %2 = vector.load %arg3[%c0_3, %c0_4] : memref<64x1xf32, #tpu.memory_space<vmem>>, vector<64x1xf32>
    %3 = vector.shape_cast %2 : vector<64x1xf32> to vector<1x64x1xf32>
    %c0_5 = arith.constant 0 : index
    %c0_6 = arith.constant 0 : index
    %4 = vector.load %arg4[%c0_5, %c0_6] : memref<64x1xf32, #tpu.memory_space<vmem>>, vector<64x1xf32>
    %5 = vector.shape_cast %4 : vector<64x1xf32> to vector<1x64x1xf32>
    %c0_7 = arith.constant 0 : index
    %c0_8 = arith.constant 0 : index
    %6 = vector.load %arg5[%c0_7, %c0_8] : memref<128x192xf32, #tpu.memory_space<vmem>>, vector<128x192xf32>
    %c0_9 = arith.constant 0 : index
    %c0_10 = arith.constant 0 : index
    %7 = vector.load %arg6[%c0_9, %c0_10] : memref<128x1xf32, #tpu.memory_space<vmem>>, vector<128x1xf32>
    %c0_11 = arith.constant 0 : index
    %c0_12 = arith.constant 0 : index
    %8 = vector.load %arg7[%c0_11, %c0_12] : memref<128x1xf32, #tpu.memory_space<vmem>>, vector<128x1xf32>
    %9 = vector.extract_strided_slice %0 {offsets = [0, 0], sizes = [8, 130], strides = [1, 1]} : vector<8x132xf32> to vector<8x130xf32>
    %10 = vector.shape_cast %9 : vector<8x130xf32> to vector<8x1x130xf32>
    %11 = vector.extract_strided_slice %0 {offsets = [0, 1], sizes = [8, 130], strides = [1, 1]} : vector<8x132xf32> to vector<8x130xf32>
    %12 = vector.shape_cast %11 : vector<8x130xf32> to vector<8x1x130xf32>
    %13 = vector.extract_strided_slice %0 {offsets = [0, 2], sizes = [8, 130], strides = [1, 1]} : vector<8x132xf32> to vector<8x130xf32>
    %14 = vector.shape_cast %13 : vector<8x130xf32> to vector<8x1x130xf32>
    %15 = vector.extract_strided_slice %1 {offsets = [0, 0], sizes = [64, 1], strides = [1, 1]} : vector<64x3xf32> to vector<64x1xf32>
    %16 = vector.shape_cast %15 : vector<64x1xf32> to vector<1x64x1xf32>
    %17 = vector.extract_strided_slice %1 {offsets = [0, 1], sizes = [64, 1], strides = [1, 1]} : vector<64x3xf32> to vector<64x1xf32>
    %18 = vector.shape_cast %17 : vector<64x1xf32> to vector<1x64x1xf32>
    %19 = vector.extract_strided_slice %1 {offsets = [0, 2], sizes = [64, 1], strides = [1, 1]} : vector<64x3xf32> to vector<64x1xf32>
    %20 = vector.shape_cast %19 : vector<64x1xf32> to vector<1x64x1xf32>
    %21 = vector.broadcast %16 : vector<1x64x1xf32> to vector<8x64x130xf32>
    %22 = vector.broadcast %10 : vector<8x1x130xf32> to vector<8x64x130xf32>
    %23 = arith.mulf %21, %22 : vector<8x64x130xf32>
    %24 = vector.broadcast %18 : vector<1x64x1xf32> to vector<8x64x130xf32>
    %25 = vector.broadcast %12 : vector<8x1x130xf32> to vector<8x64x130xf32>
    %26 = arith.mulf %24, %25 : vector<8x64x130xf32>
    %27 = arith.addf %23, %26 : vector<8x64x130xf32>
    %28 = vector.broadcast %20 : vector<1x64x1xf32> to vector<8x64x130xf32>
    %29 = vector.broadcast %14 : vector<8x1x130xf32> to vector<8x64x130xf32>
    %30 = arith.mulf %28, %29 : vector<8x64x130xf32>
    %31 = arith.addf %27, %30 : vector<8x64x130xf32>
    %32 = vector.broadcast %3 : vector<1x64x1xf32> to vector<8x64x130xf32>
    %33 = arith.mulf %31, %32 : vector<8x64x130xf32>
    %34 = vector.broadcast %5 : vector<1x64x1xf32> to vector<8x64x130xf32>
    %35 = arith.addf %33, %34 : vector<8x64x130xf32>
    %cst = arith.constant 0.000000e+00 : f32
    %36 = vector.broadcast %cst : f32 to vector<8x64x130xf32>
    %37 = arith.maximumf %35, %36 : vector<8x64x130xf32>
    %38 = tpu.iota {dimensions = array<i32: 2>} : vector<1x1x130xi32>
    %c1_i32 = arith.constant 1 : i32
    %39 = vector.broadcast %c1_i32 : i32 to vector<1x1x130xi32>
    %40 = arith.cmpi sge, %38, %39 : vector<1x1x130xi32>
    %c96_i32 = arith.constant 96 : i32
    %41 = vector.broadcast %c96_i32 : i32 to vector<1x1x130xi32>
    %42 = arith.cmpi sle, %38, %41 : vector<1x1x130xi32>
    %43 = arith.andi %40, %42 : vector<1x1x130xi1>
    %cst_13 = arith.constant 0.000000e+00 : f32
    %44 = vector.shape_cast %43 : vector<1x1x130xi1> to vector<1x1x130xi1>
    %45 = vector.broadcast %44 : vector<1x1x130xi1> to vector<8x64x130xi1>
    %46 = vector.broadcast %cst_13 : f32 to vector<8x64x130xf32>
    %47 = arith.select %45, %37, %46 : vector<8x64x130xi1>, vector<8x64x130xf32>
    %c0_14 = arith.constant 0 : index
    %c0_15 = arith.constant 0 : index
    %c0_16 = arith.constant 0 : index
    %48 = vector.load %arg9[%c0_14, %c0_15, %c0_16] : memref<8x64x130xf32, #tpu.memory_space<vmem>>, vector<8x64x130xf32>
    tpu.vector_store %arg9[%c0_14, %c0_15, %c0_16], %47 {strides = array<i32>} : memref<8x64x130xf32, #tpu.memory_space<vmem>>, vector<8x64x130xf32>,
    %49 = vector.extract_strided_slice %6 {offsets = [0, 0], sizes = [128, 64], strides = [1, 1]} : vector<128x192xf32> to vector<128x64xf32>
    %50 = vector.extract_strided_slice %6 {offsets = [0, 64], sizes = [128, 64], strides = [1, 1]} : vector<128x192xf32> to vector<128x64xf32>
    %51 = vector.extract_strided_slice %6 {offsets = [0, 128], sizes = [128, 64], strides = [1, 1]} : vector<128x192xf32> to vector<128x64xf32>
    %c0_i32 = arith.constant 0 : i32
    %c8_i32 = arith.constant 8 : i32
    %52 = arith.addi %c0_i32, %c8_i32 : i32
    %c1_i32_17 = arith.constant 1 : i32
    scf.for %arg10 = %c0_i32 to %52 step %c1_i32_17  : i32 {
      %c1_i32_19 = arith.constant 1 : i32
      %53 = arith.muli %arg10, %c1_i32_19 : i32
      %c0_i32_20 = arith.constant 0 : i32
      %54 = arith.addi %c0_i32_20, %53 : i32
      %55 = arith.index_cast %54 : i32 to index
      %c0_21 = arith.constant 0 : index
      %c0_22 = arith.constant 0 : index
      %56 = vector.load %arg9[%55, %c0_21, %c0_22] : memref<8x64x130xf32, #tpu.memory_space<vmem>>, vector<1x64x130xf32>
      %57 = vector.shape_cast %56 : vector<1x64x130xf32> to vector<64x130xf32>
      %58 = vector.extract_strided_slice %57 {offsets = [0, 0], sizes = [64, 128], strides = [1, 1]} : vector<64x130xf32> to vector<64x128xf32>
      %cst_23 = arith.constant dense<0.000000e+00> : vector<128x128xf32>
      %59 = tpu.matmul %49, %58, %cst_23 {dimension_numbers = #tpu.dot_dimension_numbers<[1], [0], [0], [1], [0, 0, 1, 1], [], []>} : vector<128x64xf32>, vector<64x128xf32>, vector<128x128xf32> -> vector<128x128xf32>
      %60 = vector.extract_strided_slice %57 {offsets = [0, 1], sizes = [64, 128], strides = [1, 1]} : vector<64x130xf32> to vector<64x128xf32>
      %cst_24 = arith.constant dense<0.000000e+00> : vector<128x128xf32>
      %61 = tpu.matmul %50, %60, %cst_24 {dimension_numbers = #tpu.dot_dimension_numbers<[1], [0], [0], [1], [0, 0, 1, 1], [], []>} : vector<128x64xf32>, vector<64x128xf32>, vector<128x128xf32> -> vector<128x128xf32>
      %62 = arith.addf %59, %61 : vector<128x128xf32>
      %63 = vector.extract_strided_slice %57 {offsets = [0, 2], sizes = [64, 128], strides = [1, 1]} : vector<64x130xf32> to vector<64x128xf32>
      %cst_25 = arith.constant dense<0.000000e+00> : vector<128x128xf32>
      %64 = tpu.matmul %51, %63, %cst_25 {dimension_numbers = #tpu.dot_dimension_numbers<[1], [0], [0], [1], [0, 0, 1, 1], [], []>} : vector<128x64xf32>, vector<64x128xf32>, vector<128x128xf32> -> vector<128x128xf32>
      %65 = arith.addf %62, %64 : vector<128x128xf32>
      %66 = vector.broadcast %7 : vector<128x1xf32> to vector<128x128xf32>
      %67 = arith.mulf %65, %66 : vector<128x128xf32>
      %68 = vector.broadcast %8 : vector<128x1xf32> to vector<128x128xf32>
      %69 = arith.addf %67, %68 : vector<128x128xf32>
      %cst_26 = arith.constant 0.000000e+00 : f32
      %70 = vector.broadcast %cst_26 : f32 to vector<128x128xf32>
      %71 = arith.maximumf %69, %70 : vector<128x128xf32>
      %72 = arith.truncf %71 : vector<128x128xf32> to vector<128x128xbf16>
      %73 = arith.index_cast %54 : i32 to index
      %c0_27 = arith.constant 0 : index
      %c0_28 = arith.constant 0 : index
      %74 = vector.load %arg8[%73, %c0_27, %c0_28] : memref<8x128x128xbf16, #tpu.memory_space<vmem>>, vector<1x128x128xbf16>
      %75 = vector.shape_cast %74 : vector<1x128x128xbf16> to vector<128x128xbf16>
      %76 = vector.shape_cast %72 : vector<128x128xbf16> to vector<1x128x128xbf16>
      tpu.vector_store %arg8[%73, %c0_27, %c0_28], %76 {strides = array<i32>} : memref<8x128x128xbf16, #tpu.memory_space<vmem>>, vector<1x128x128xbf16>,
    }
    %c8_i32_18 = arith.constant 8 : i32
    return
  }
  func.func @transform_0(%arg0: i32) -> (i32, i32) {
    %c0_i32 = arith.constant 0 : i32
    %c0_i32_0 = arith.constant 0 : i32
    return %arg0, %c0_i32 : i32, i32
  }
  func.func @transform_1(%arg0: i32) -> (i32, i32) {
    %c0_i32 = arith.constant 0 : i32
    %c0_i32_0 = arith.constant 0 : i32
    %c0_i32_1 = arith.constant 0 : i32
    return %c0_i32, %c0_i32_0 : i32, i32
  }
  func.func @transform_2(%arg0: i32) -> (i32, i32) {
    %c0_i32 = arith.constant 0 : i32
    %c0_i32_0 = arith.constant 0 : i32
    %c0_i32_1 = arith.constant 0 : i32
    return %c0_i32, %c0_i32_0 : i32, i32
  }
  func.func @transform_3(%arg0: i32) -> (i32, i32) {
    %c0_i32 = arith.constant 0 : i32
    %c0_i32_0 = arith.constant 0 : i32
    %c0_i32_1 = arith.constant 0 : i32
    return %c0_i32, %c0_i32_0 : i32, i32
  }
  func.func @transform_4(%arg0: i32) -> (i32, i32) {
    %c0_i32 = arith.constant 0 : i32
    %c0_i32_0 = arith.constant 0 : i32
    %c0_i32_1 = arith.constant 0 : i32
    return %c0_i32, %c0_i32_0 : i32, i32
  }
  func.func @transform_5(%arg0: i32) -> (i32, i32) {
    %c0_i32 = arith.constant 0 : i32
    %c0_i32_0 = arith.constant 0 : i32
    %c0_i32_1 = arith.constant 0 : i32
    return %c0_i32, %c0_i32_0 : i32, i32
  }
  func.func @transform_6(%arg0: i32) -> (i32, i32) {
    %c0_i32 = arith.constant 0 : i32
    %c0_i32_0 = arith.constant 0 : i32
    %c0_i32_1 = arith.constant 0 : i32
    return %c0_i32, %c0_i32_0 : i32, i32
  }
  func.func @transform_7(%arg0: i32) -> (i32, i32, i32) {
    %c0_i32 = arith.constant 0 : i32
    %c0_i32_0 = arith.constant 0 : i32
    %c0_i32_1 = arith.constant 0 : i32
    return %arg0, %c0_i32, %c0_i32_0 : i32, i32, i32
  }
}

</mosaic_0001>

<bundles_post_ra>
// kernel: tpu_custom_call.1
= control target key start
LH: loop header
LB: loop body
LE: loop exit
PB: predicated region body
PF: predicated region fallthrough
CT: control target
= control target key end

     0   :  { %v8057_v2 = vlaneseq  ;;  %v8058_v3 = vmov 0   ;;  %v4504_v4 = vmov 1   ;;  %v4505_v5 = vmov 1966171168   ;;  %s8049_s0 = inlined_call_operand.vmem [shape: f32[8,132], index: 0, kind: input, shape index: {}]   ;;  %s8050_s1 = inlined_call_operand.vmem [shape: f32[64,3], index: 1, kind: input, shape index: {}]   ;;  %s8051_s2 = inlined_call_operand.vmem [shape: f32[64,1], index: 2, kind: input, shape index: {}]   ;;  %s8052_s3 = inlined_call_operand.vmem [shape: f32[64,1], index: 3, kind: input, shape index: {}]   ;;  %s8053_s4 = inlined_call_operand.vmem [shape: f32[128,192], index: 4, kind: input, shape index: {}]   ;;  %s8054_s5 = inlined_call_operand.vmem [shape: f32[128,1], index: 5, kind: input, shape index: {}]   ;;  %s8055_s6 = inlined_call_operand.vmem [shape: f32[128,1], index: 6, kind: input, shape index: {}]   ;;  %s8056_s7 = inlined_call_operand.hbm [shape: bf16[8,128,128], index: 7, kind: output, shape index: {}]  }
   0x1   :  { %v4560_v0 = vld [vmem:[%s8050_s1 + $0x10] sm:$0xff]  ;;  %v4565_v1 = vld [vmem:[%s8050_s1] sm:$0xff]  ;;  %4379 = vset.pattern.permute.xlu1 %v8058_v3  ;;  %4380 = vset.pattern.permute.xlu0 %v4504_v4  ;;  %v122_v6 = vunpack.c.l.s4 %v4505_v5  ;;  %v4574_v8 = vld [vmem:[%s8050_s1 + $0x18] sm:$0xff] }
   0x2   :  { %181 = vperm.xlu1 %4379, %v4560_v0   ;;  %418 = vperm.xlu0 %4380, %v4565_v1   ;;  %v125_v7 = vshrl.u32 %v8057_v2, 7  ;;  %v4386_v9 = vld [vmem:[%s8049_s0] ss:$8 sps:$4 sm:$0xff]   ;;  %v4388_v11 = vld [vmem:[%s8049_s0 + $0x4] ss:$8 sps:$4 sm:$0xff]  }
   0x3   :  { %v123_v10 = vunpack.c.0.s8 %v122_v6 }
   0x4   :  { %12 = vsyncpa [#allocation4], 0  ;;  %v4589_v13 = vld [vmem:[%s8050_s1 + $0x28] sm:$0xff]  ;;  %v4594_v15 = vsub.s32 0, %v125_v7  ;;  %v4605_v19 = vld [vmem:[%s8050_s1 + $0x38] sm:$0xff]  ;;  %v4607_v20 = vsub.s32 1, %v125_v7 }
   0x5   :  { %v4584_v12 = vsub.s32 %v123_v10, %v125_v7  ;;  %v4624_v28 = vld [vmem:[%s8050_s1 + $0x8] sm:$0xff]  ;;  %v4646_v35 = vld [vmem:[%s8050_s1 + $0x20] sm:$0xff]  ;;  %v4655_v37 = vld [vmem:[%s8050_s1 + $0x30] sm:$0xff]  ;;  %s4506_s1 = smov 127   ;;  %s4508_s20 = smov 126   ;;  %vm1826_vm0 = vcmask 1031168  }
   0x6   :  { %186 = vperm.xlu1 %4379, %v4574_v8   ;;  %430 = vperm.xlu0 %4380, %v4574_v8   ;;  %vm961_vm1 = vcmask 1039360   ;;  %vm2753_vm2 = vcmask 15360  }
   0x7   :  { %v4592_v14 = vrot.slane %v4386_v9, %v4584_v12  ;;  %v134_v16 = vrot.slane %v4388_v11, %v4584_v12 }
   0x9   :  { %v143_v17 = vrot.slane %v4592_v14, %v4584_v12  ;;  %v150_v18 = vrot.slane %v134_v16, %v4584_v12  ;;  %v136_v21 = vcombine.high %v134_v16, %v134_v16 }
   0xa   :  { %196 = vperm.xlu1 %4379, %v4589_v13   ;;  %438 = vperm.xlu0 %4380, %v4589_v13  }
   0xb   :  { %v165_v22 = vcombine.high %v143_v17, %v143_v17  ;;  %v4610_v23 = vrot.slane %v150_v18, %v4594_v15  ;;  %v166_v24 = vcombine.high %v150_v18, %v150_v18  ;;  %v164_v26 = vrot.slane %v136_v21, %v4584_v12 }
   0xc   :  { %v4627_v29 = vrot.slane %v150_v18, %v4607_v20  ;;  %v4662_v39 = vrot.slane %v143_v17, %v4607_v20  ;;  %v4665_v40 = vrot.slane %v143_v17, %v4594_v15 }
   0xd   :  { %8097 = vst [vmem:[#allocation6_spill] sm:$0xff] %v4610_v23  ;;  %v4615_v25 = vrot.slane %v165_v22, %v4594_v15  ;;  %v4619_v27 = vrot.slane %v165_v22, %v4607_v20  ;;  %v4630_v30 = vrot.slane %v164_v26, %v4594_v15  ;;  %v4633_v31 = vrot.slane %v164_v26, %v4607_v20 }
   0xe   :  { %206 = vperm.xlu1 %4379, %v4605_v19   ;;  %446 = vperm.xlu0 %4380, %v4605_v19   ;;  %v4636_v32 = vrot.slane %v166_v24, %v4594_v15  ;;  %v4639_v33 = vrot.slane %v166_v24, %v4607_v20  ;;  %v168_v34 = vcombine.high %v164_v26, %v164_v26 }
   0xf   :  { %8098 = vst [vmem:[#allocation7_spill] sm:$0xff] %v4615_v25  ;;  %8099 = vst [vmem:[#allocation8_spill] sm:$0xff] %v4630_v30 }
  0x10   :  { %v4649_v36 = vrot.slane %v168_v34, %v4594_v15  ;;  %v4659_v38 = vrot.slane %v168_v34, %v4607_v20  ;;  %8100 = vst [vmem:[#allocation9_spill] sm:$0xff] %v4665_v40 }
  0x12   :  { %4381 = vset.pattern.permute.xlu1 %v4504_v4  ;;  %v135_v4 = vcombine.high %v4592_v14, %v4592_v14 }
  0x13   :  { %422 = vperm.xlu1 %4381, %v4624_v28  }
  0x14   :  { %v4736_v9 = vrot.slane %v135_v4, %v4584_v12 }
  0x16   :  { %v4744_v14 = vrot.slane %v4736_v9, %v4607_v20  ;;  %v4750_v16 = vrot.slane %v4736_v9, %v4594_v15 }
  0x17   :  { %426 = vperm.xlu1 %4381, %v4560_v0  }
  0x18   :  { %8101 = vst [vmem:[#allocation10_spill] sm:$0xff] %v4750_v16 }
  0x1b   :  { %434 = vperm.xlu1 %4381, %v4646_v35  }
  0x1f   :  { %442 = vperm.xlu1 %4381, %v4655_v37  }
  0x81   :  { %v4667_v41 = vpop.permute.xlu1 %181  ;;  %v4669_v42 = vpop.permute.xlu0 %418 }
  0x82   :  { %v450_v43 = vmul.f32 %v4669_v42, %v4662_v39  ;;  %v449_v44 = vmul.f32 %v4669_v42, %v4665_v40  ;;  %v466_v12 = vmul.f32 %v4669_v42, %v4744_v14  ;;  %v465_v17 = vmul.f32 %v4669_v42, %v4750_v16 }
  0x84   :  { %707 = vrot.lane.b32.xlu0 %v450_v43, %s4506_s1  ;;  %705 = vrot.lane.b32.xlu1 %v449_v44, %s4506_s1 }
  0x85   :  { %v4677_v45 = vpop.permute.xlu1 %186  ;;  %v4699_v54 = vpop.permute.xlu0 %430 }
  0x86   :  { %v456_v55 = vmul.f32 %v4699_v54, %v4662_v39  ;;  %v455_v56 = vmul.f32 %v4699_v54, %v4665_v40  ;;  %v472_v26 = vmul.f32 %v4699_v54, %v4744_v14  ;;  %v471_v34 = vmul.f32 %v4699_v54, %v4750_v16 }
  0x89   :  { %v4679_v46 = vpop.permute.xlu1 %196  ;;  %v4715_v60 = vpop.permute.xlu0 %438 }
  0x8a   :  { %v460_v61 = vmul.f32 %v4715_v60, %v4662_v39  ;;  %v459_v62 = vmul.f32 %v4715_v60, %v4665_v40 }
  0x8d   :  { %v4681_v47 = vpop.permute.xlu1 %206  ;;  %v4731_v7 = vpop.permute.xlu0 %446 }
  0x8e   :  { %v464_v10 = vmul.f32 %v4731_v7, %v4662_v39  ;;  %v463_v11 = vmul.f32 %v4731_v7, %v4665_v40 }
  0x92   :  { %v4683_v48 = vpop.permute.xlu1 %422 }
  0x93   :  { %v452_v49 = vmul.f32 %v4683_v48, %v4662_v39  ;;  %v451_v50 = vmul.f32 %v4683_v48, %v4665_v40  ;;  %v468_v18 = vmul.f32 %v4683_v48, %v4744_v14  ;;  %v467_v21 = vmul.f32 %v4683_v48, %v4750_v16 }
  0x95   :  { %711 = vrot.lane.b32.xlu0 %v452_v49, %s4506_s1  ;;  %709 = vrot.lane.b32.xlu1 %v451_v50, %s4506_s1  ;;  %v476_v49 = vmul.f32 %v4715_v60, %v4744_v14  ;;  %v475_v50 = vmul.f32 %v4715_v60, %v4750_v16 }
  0x96   :  { %v4691_v51 = vpop.permute.xlu1 %426 }
  0x97   :  { %v454_v52 = vmul.f32 %v4691_v51, %v4662_v39  ;;  %v453_v53 = vmul.f32 %v4691_v51, %v4665_v40  ;;  %v470_v22 = vmul.f32 %v4691_v51, %v4744_v14  ;;  %v469_v24 = vmul.f32 %v4691_v51, %v4750_v16 }
  0x98   :  { %v486_v4 = vmul.f32 %v4691_v51, %v4619_v27 }
  0x99   :  { %715 = vrot.lane.b32.xlu0 %v454_v52, %s4506_s1  ;;  %713 = vrot.lane.b32.xlu1 %v453_v53, %s4506_s1 }
  0x9a   :  { %v4705_v57 = vpop.permute.xlu1 %434 }
  0x9b   :  { %v458_v58 = vmul.f32 %v4705_v57, %v4662_v39  ;;  %v457_v59 = vmul.f32 %v4705_v57, %v4665_v40  ;;  %v474_v43 = vmul.f32 %v4705_v57, %v4744_v14  ;;  %v473_v44 = vmul.f32 %v4705_v57, %v4750_v16 }
  0x9d   :  { %719 = vrot.lane.b32.xlu0 %v456_v55, %s4506_s1  ;;  %717 = vrot.lane.b32.xlu1 %v455_v56, %s4506_s1  ;;  %v480_v55 = vmul.f32 %v4731_v7, %v4744_v14  ;;  %v479_v56 = vmul.f32 %v4731_v7, %v4750_v16 }
  0x9e   :  { %v4721_v63 = vpop.permute.xlu1 %442 }
  0x9f   :  { %v462_v5 = vmul.f32 %v4721_v63, %v4662_v39  ;;  %v461_v6 = vmul.f32 %v4721_v63, %v4665_v40  ;;  %v478_v52 = vmul.f32 %v4721_v63, %v4744_v14  ;;  %v477_v53 = vmul.f32 %v4721_v63, %v4750_v16 }
  0xa1   :  { %723 = vrot.lane.b32.xlu0 %v458_v58, %s4506_s1  ;;  %721 = vrot.lane.b32.xlu1 %v457_v59, %s4506_s1  ;;  %v482_v58 = vmul.f32 %v4669_v42, %v4619_v27  ;;  %v481_v59 = vmul.f32 %v4669_v42, %v4615_v25 }
  0xa5   :  { %727 = vrot.lane.b32.xlu0 %v460_v61, %s4506_s1  ;;  %725 = vrot.lane.b32.xlu1 %v459_v62, %s4506_s1  ;;  %v484_v61 = vmul.f32 %v4683_v48, %v4619_v27  ;;  %v483_v62 = vmul.f32 %v4683_v48, %v4615_v25 }
  0xa9   :  { %731 = vrot.lane.b32.xlu0 %v462_v5, %s4506_s1  ;;  %729 = vrot.lane.b32.xlu1 %v461_v6, %s4506_s1  ;;  %v485_v5 = vmul.f32 %v4691_v51, %v4615_v25  ;;  %v488_v6 = vmul.f32 %v4699_v54, %v4619_v27 }
  0xad   :  { %735 = vrot.lane.b32.xlu0 %v464_v10, %s4506_s1  ;;  %733 = vrot.lane.b32.xlu1 %v463_v11, %s4506_s1  ;;  %v487_v10 = vmul.f32 %v4699_v54, %v4615_v25  ;;  %v490_v11 = vmul.f32 %v4705_v57, %v4619_v27 }
  0xb1   :  { %739 = vrot.lane.b32.xlu0 %v466_v12, %s4506_s1  ;;  %737 = vrot.lane.b32.xlu1 %v465_v17, %s4506_s1  ;;  %v489_v12 = vmul.f32 %v4705_v57, %v4615_v25  ;;  %v492_v17 = vmul.f32 %v4715_v60, %v4619_v27 }
  0xb5   :  { %743 = vrot.lane.b32.xlu0 %v468_v18, %s4506_s1  ;;  %741 = vrot.lane.b32.xlu1 %v467_v21, %s4506_s1  ;;  %v491_v18 = vmul.f32 %v4715_v60, %v4615_v25  ;;  %v494_v21 = vmul.f32 %v4721_v63, %v4619_v27 }
  0xb9   :  { %747 = vrot.lane.b32.xlu0 %v470_v22, %s4506_s1  ;;  %745 = vrot.lane.b32.xlu1 %v469_v24, %s4506_s1  ;;  %v493_v22 = vmul.f32 %v4721_v63, %v4615_v25  ;;  %v167_v24 = vcombine.high %v4736_v9, %v4736_v9 }
  0xbd   :  { %751 = vrot.lane.b32.xlu0 %v472_v26, %s4506_s1  ;;  %749 = vrot.lane.b32.xlu1 %v471_v34, %s4506_s1  ;;  %v496_v26 = vmul.f32 %v4731_v7, %v4619_v27  ;;  %v495_v34 = vmul.f32 %v4731_v7, %v4615_v25 }
  0xc1   :  { %755 = vrot.lane.b32.xlu0 %v474_v43, %s4506_s1  ;;  %753 = vrot.lane.b32.xlu1 %v473_v44, %s4506_s1  ;;  %v4849_v43 = vrot.slane %v167_v24, %v4607_v20  ;;  %v4854_v44 = vrot.slane %v167_v24, %v4594_v15 }
  0xc3   :  { %8102 = vst [vmem:[#allocation11_spill] sm:$0xff] %v4854_v44  ;;  %v497_v9 = vmul.f32 %v4669_v42, %v4854_v44  ;;  %v500_v20 = vmul.f32 %v4683_v48, %v4849_v43  ;;  %v502_v15 = vmul.f32 %v4691_v51, %v4849_v43 }
  0xc5   :  { %759 = vrot.lane.b32.xlu0 %v476_v49, %s4506_s1  ;;  %757 = vrot.lane.b32.xlu1 %v475_v50, %s4506_s1  ;;  %v498_v49 = vmul.f32 %v4669_v42, %v4849_v43  ;;  %v499_v50 = vmul.f32 %v4683_v48, %v4854_v44 }
  0xc9   :  { %763 = vrot.lane.b32.xlu0 %v478_v52, %s4506_s1  ;;  %761 = vrot.lane.b32.xlu1 %v477_v53, %s4506_s1  ;;  %v501_v52 = vmul.f32 %v4691_v51, %v4854_v44  ;;  %v504_v53 = vmul.f32 %v4699_v54, %v4849_v43 }
  0xcd   :  { %767 = vrot.lane.b32.xlu0 %v480_v55, %s4506_s1  ;;  %765 = vrot.lane.b32.xlu1 %v479_v56, %s4506_s1  ;;  %v503_v55 = vmul.f32 %v4699_v54, %v4854_v44  ;;  %v506_v56 = vmul.f32 %v4705_v57, %v4849_v43 }
  0xd1   :  { %771 = vrot.lane.b32.xlu0 %v482_v58, %s4506_s1  ;;  %769 = vrot.lane.b32.xlu1 %v481_v59, %s4506_s1  ;;  %v505_v58 = vmul.f32 %v4705_v57, %v4854_v44 }
  0xd5   :  { %775 = vrot.lane.b32.xlu0 %v484_v61, %s4506_s1  ;;  %773 = vrot.lane.b32.xlu1 %v483_v62, %s4506_s1  ;;  %v508_v62 = vmul.f32 %v4715_v60, %v4849_v43 }
  0xd9   :  { %779 = vrot.lane.b32.xlu0 %v486_v4, %s4506_s1  ;;  %777 = vrot.lane.b32.xlu1 %v485_v5, %s4506_s1  ;;  %v507_v4 = vmul.f32 %v4715_v60, %v4854_v44 }
  0xdd   :  { %783 = vrot.lane.b32.xlu0 %v488_v6, %s4506_s1  ;;  %781 = vrot.lane.b32.xlu1 %v487_v10, %s4506_s1  ;;  %v510_v10 = vmul.f32 %v4721_v63, %v4849_v43 }
  0xe1   :  { %787 = vrot.lane.b32.xlu0 %v490_v11, %s4506_s1  ;;  %785 = vrot.lane.b32.xlu1 %v489_v12, %s4506_s1  ;;  %v509_v11 = vmul.f32 %v4721_v63, %v4854_v44 }
  0xe5   :  { %791 = vrot.lane.b32.xlu0 %v492_v17, %s4506_s1  ;;  %789 = vrot.lane.b32.xlu1 %v491_v18, %s4506_s1  ;;  %v512_v18 = vmul.f32 %v4731_v7, %v4849_v43 }
  0xe9   :  { %795 = vrot.lane.b32.xlu0 %v494_v21, %s4506_s1  ;;  %793 = vrot.lane.b32.xlu1 %v493_v22, %s4506_s1  ;;  %v511_v21 = vmul.f32 %v4731_v7, %v4854_v44 }
  0xed   :  { %799 = vrot.lane.b32.xlu0 %v496_v26, %s4506_s1  ;;  %797 = vrot.lane.b32.xlu1 %v495_v34, %s4506_s1  ;;  %v514_v26 = vmul.f32 %v4669_v42, %v4627_v29  ;;  %v513_v34 = vmul.f32 %v4669_v42, %v4610_v23 }
  0xf1   :  { %803 = vrot.lane.b32.xlu0 %v498_v49, %s4506_s1  ;;  %801 = vrot.lane.b32.xlu1 %v497_v9, %s4506_s1  ;;  %v4507_v49 = vmov 2  }
  0xf2   :  { %4382 = vset.pattern.permute.xlu1 %v4507_v49  ;;  %4383 = vset.pattern.permute.xlu0 %v4507_v49 }
  0xf5   :  { %807 = vrot.lane.b32.xlu0 %v500_v20, %s4506_s1  ;;  %805 = vrot.lane.b32.xlu1 %v499_v50, %s4506_s1  ;;  %v516_v50 = vmul.f32 %v4683_v48, %v4627_v29 }
  0xf6   :  { %v4886_v59 = vpop.permute.xlu0 %707  ;;  %v4888_v61 = vpop.permute.xlu1 %705 }
  0xf9   :  { %811 = vrot.lane.b32.xlu0 %v502_v15, %s4506_s1  ;;  %809 = vrot.lane.b32.xlu1 %v501_v52, %s4506_s1  ;;  %v515_v15 = vmul.f32 %v4683_v48, %v4610_v23 }
  0xfd   :  { %815 = vrot.lane.b32.xlu0 %v504_v53, %s4506_s1  ;;  %813 = vrot.lane.b32.xlu1 %v503_v55, %s4506_s1  ;;  %v518_v55 = vmul.f32 %v4691_v51, %v4627_v29 }
 0x101   :  { %819 = vrot.lane.b32.xlu0 %v506_v56, %s4506_s1  ;;  %817 = vrot.lane.b32.xlu1 %v505_v58, %s4506_s1  ;;  %v517_v56 = vmul.f32 %v4691_v51, %v4610_v23 }
 0x105   :  { %823 = vrot.lane.b32.xlu0 %v508_v62, %s4506_s1  ;;  %821 = vrot.lane.b32.xlu1 %v507_v4, %s4506_s1  ;;  %v520_v4 = vmul.f32 %v4699_v54, %v4627_v29 }
 0x107   :  { %v4896_v5 = vpop.permute.xlu0 %711  ;;  %v4898_v6 = vpop.permute.xlu1 %709 }
 0x109   :  { %827 = vrot.lane.b32.xlu0 %v510_v10, %s4506_s1  ;;  %825 = vrot.lane.b32.xlu1 %v509_v11, %s4506_s1  ;;  %v519_v10 = vmul.f32 %v4699_v54, %v4610_v23 }
 0x10b   :  { %v4906_v12 = vpop.permute.xlu0 %715  ;;  %v4908_v17 = vpop.permute.xlu1 %713 }
 0x10d   :  { %831 = vrot.lane.b32.xlu0 %v512_v18, %s4506_s1  ;;  %829 = vrot.lane.b32.xlu1 %v511_v21, %s4506_s1  ;;  %v522_v21 = vmul.f32 %v4705_v57, %v4627_v29 }
 0x10f   :  { %v4916_v22 = vpop.permute.xlu0 %719  ;;  %v4918_v24 = vpop.permute.xlu1 %717 }
 0x111   :  { %835 = vrot.lane.b32.xlu0 %v514_v26, %s4506_s1  ;;  %833 = vrot.lane.b32.xlu1 %v513_v34, %s4506_s1  ;;  %v521_v26 = vmul.f32 %v4705_v57, %v4610_v23 }
 0x113   :  { %v4926_v9 = vpop.permute.xlu0 %723  ;;  %v4928_v20 = vpop.permute.xlu1 %721 }
 0x115   :  { %839 = vrot.lane.b32.xlu0 %v516_v50, %s4506_s1  ;;  %837 = vrot.lane.b32.xlu1 %v515_v15, %s4506_s1  ;;  %v524_v50 = vmul.f32 %v4715_v60, %v4627_v29  ;;  %v523_v15 = vmul.f32 %v4715_v60, %v4610_v23 }
 0x117   :  { %v4936_v52 = vpop.permute.xlu0 %727  ;;  %v4938_v53 = vpop.permute.xlu1 %725 }
 0x119   :  { %843 = vrot.lane.b32.xlu0 %v518_v55, %s4506_s1  ;;  %841 = vrot.lane.b32.xlu1 %v517_v56, %s4506_s1 }
 0x11b   :  { %v4946_v58 = vpop.permute.xlu0 %731  ;;  %v4948_v62 = vpop.permute.xlu1 %729 }
 0x11d   :  { %847 = vrot.lane.b32.xlu0 %v520_v4, %s4506_s1  ;;  %845 = vrot.lane.b32.xlu1 %v519_v10, %s4506_s1  ;;  %v526_v4 = vmul.f32 %v4721_v63, %v4627_v29  ;;  %v525_v10 = vmul.f32 %v4721_v63, %v4610_v23 }
 0x11f   :  { %v4956_v11 = vpop.permute.xlu0 %735  ;;  %v4958_v18 = vpop.permute.xlu1 %733 }
 0x121   :  { %851 = vrot.lane.b32.xlu0 %v522_v21, %s4506_s1  ;;  %849 = vrot.lane.b32.xlu1 %v521_v26, %s4506_s1 }
 0x123   :  { %v4966_v34 = vpop.permute.xlu0 %739  ;;  %v4968_v49 = vpop.permute.xlu1 %737 }
 0x124   :  { %8103 = vst [vmem:[#allocation12_spill] sm:$0xff] %v4966_v34  ;;  %8104 = vst [vmem:[#allocation13_spill] sm:$0xff] %v4968_v49 }
 0x125   :  { %855 = vrot.lane.b32.xlu0 %v524_v50, %s4506_s1  ;;  %853 = vrot.lane.b32.xlu1 %v523_v15, %s4506_s1  ;;  %v528_v50 = vmul.f32 %v4731_v7, %v4627_v29  ;;  %v527_v15 = vmul.f32 %v4731_v7, %v4610_v23 }
 0x127   :  { %v4976_v55 = vpop.permute.xlu0 %743  ;;  %v4978_v56 = vpop.permute.xlu1 %741 }
 0x128   :  { %8105 = vst [vmem:[#allocation14_spill] sm:$0xff] %v4976_v55  ;;  %8106 = vst [vmem:[#allocation15_spill] sm:$0xff] %v4978_v56 }
 0x129   :  { %859 = vrot.lane.b32.xlu0 %v526_v4, %s4506_s1  ;;  %857 = vrot.lane.b32.xlu1 %v525_v10, %s4506_s1  ;;  %v530_v4 = vmul.f32 %v4669_v42, %v4633_v31  ;;  %v529_v10 = vmul.f32 %v4669_v42, %v4630_v30 }
 0x12b   :  { %v4986_v21 = vpop.permute.xlu0 %747  ;;  %v4988_v26 = vpop.permute.xlu1 %745 }
 0x12d   :  { %863 = vrot.lane.b32.xlu0 %v528_v50, %s4506_s1  ;;  %861 = vrot.lane.b32.xlu1 %v527_v15, %s4506_s1  ;;  %v532_v50 = vmul.f32 %v4683_v48, %v4633_v31  ;;  %v531_v15 = vmul.f32 %v4683_v48, %v4630_v30 }
 0x12f   :  { %v4996_v2 = vpop.permute.xlu0 %751  ;;  %v4998_v3 = vpop.permute.xlu1 %749 }
 0x131   :  { %867 = vrot.lane.b32.xlu0 %v530_v4, %s4506_s1  ;;  %865 = vrot.lane.b32.xlu1 %v529_v10, %s4506_s1  ;;  %v534_v4 = vmul.f32 %v4691_v51, %v4633_v31  ;;  %v533_v10 = vmul.f32 %v4691_v51, %v4630_v30 }
 0x133   :  { %v5006_v56 = vpop.permute.xlu0 %755  ;;  %v5008_v55 = vpop.permute.xlu1 %753 }
 0x134   :  { %8107 = vst [vmem:[#allocation16_spill] sm:$0xff] %v5006_v56  ;;  %8108 = vst [vmem:[#allocation17_spill] sm:$0xff] %v5008_v55 }
 0x135   :  { %871 = vrot.lane.b32.xlu0 %v532_v50, %s4506_s1  ;;  %869 = vrot.lane.b32.xlu1 %v531_v15, %s4506_s1  ;;  %v536_v50 = vmul.f32 %v4699_v54, %v4633_v31  ;;  %v535_v15 = vmul.f32 %v4699_v54, %v4630_v30 }
 0x137   :  { %v5016_v49 = vpop.permute.xlu0 %759  ;;  %v5018_v34 = vpop.permute.xlu1 %757 }
 0x138   :  { %8109 = vst [vmem:[#allocation18_spill] sm:$0xff] %v5016_v49  ;;  %8110 = vst [vmem:[#allocation19_spill] sm:$0xff] %v5018_v34 }
 0x139   :  { %875 = vrot.lane.b32.xlu0 %v534_v4, %s4506_s1  ;;  %873 = vrot.lane.b32.xlu1 %v533_v10, %s4506_s1  ;;  %v538_v4 = vmul.f32 %v4705_v57, %v4633_v31  ;;  %v537_v10 = vmul.f32 %v4705_v57, %v4630_v30 }
 0x13b   :  { %v5026_v55 = vpop.permute.xlu0 %763  ;;  %v5028_v56 = vpop.permute.xlu1 %761 }
 0x13c   :  { %8111 = vst [vmem:[#allocation20_spill] sm:$0xff] %v5026_v55  ;;  %8112 = vst [vmem:[#allocation21_spill] sm:$0xff] %v5028_v56 }
 0x13d   :  { %879 = vrot.lane.b32.xlu0 %v536_v50, %s4506_s1  ;;  %877 = vrot.lane.b32.xlu1 %v535_v15, %s4506_s1  ;;  %v540_v50 = vmul.f32 %v4715_v60, %v4633_v31  ;;  %v539_v15 = vmul.f32 %v4715_v60, %v4630_v30 }
 0x13f   :  { %v5036_v34 = vpop.permute.xlu0 %767  ;;  %v5038_v49 = vpop.permute.xlu1 %765 }
 0x140   :  { %8113 = vst [vmem:[#allocation22_spill] sm:$0xff] %v5036_v34  ;;  %8114 = vst [vmem:[#allocation23_spill] sm:$0xff] %v5038_v49 }
 0x141   :  { %883 = vrot.lane.b32.xlu0 %v538_v4, %s4506_s1  ;;  %881 = vrot.lane.b32.xlu1 %v537_v10, %s4506_s1  ;;  %v542_v4 = vmul.f32 %v4721_v63, %v4633_v31  ;;  %v541_v10 = vmul.f32 %v4721_v63, %v4630_v30 }
 0x143   :  { %v5046_v56 = vpop.permute.xlu0 %771  ;;  %v5048_v55 = vpop.permute.xlu1 %769 }
 0x144   :  { %8115 = vst [vmem:[#allocation24_spill] sm:$0xff] %v5046_v56  ;;  %8116 = vst [vmem:[#allocation25_spill] sm:$0xff] %v5048_v55 }
 0x145   :  { %887 = vrot.lane.b32.xlu0 %v540_v50, %s4506_s1  ;;  %885 = vrot.lane.b32.xlu1 %v539_v15, %s4506_s1  ;;  %v544_v50 = vmul.f32 %v4731_v7, %v4633_v31  ;;  %v543_v15 = vmul.f32 %v4731_v7, %v4630_v30 }
 0x147   :  { %v5056_v49 = vpop.permute.xlu0 %775  ;;  %v5058_v34 = vpop.permute.xlu1 %773 }
 0x148   :  { %8117 = vst [vmem:[#allocation26_spill] sm:$0xff] %v5056_v49  ;;  %8118 = vst [vmem:[#allocation27_spill] sm:$0xff] %v5058_v34 }
 0x149   :  { %891 = vrot.lane.b32.xlu0 %v542_v4, %s4506_s1  ;;  %889 = vrot.lane.b32.xlu1 %v541_v10, %s4506_s1  ;;  %v546_v4 = vmul.f32 %v4669_v42, %v4639_v33  ;;  %v545_v10 = vmul.f32 %v4669_v42, %v4636_v32 }
 0x14b   :  { %v5066_v55 = vpop.permute.xlu0 %779  ;;  %v5068_v56 = vpop.permute.xlu1 %777 }
 0x14c   :  { %8119 = vst [vmem:[#allocation28_spill] sm:$0xff] %v5066_v55  ;;  %8120 = vst [vmem:[#allocation29_spill] sm:$0xff] %v5068_v56 }
 0x14d   :  { %895 = vrot.lane.b32.xlu0 %v544_v50, %s4506_s1  ;;  %893 = vrot.lane.b32.xlu1 %v543_v15, %s4506_s1  ;;  %v548_v50 = vmul.f32 %v4683_v48, %v4639_v33  ;;  %v547_v15 = vmul.f32 %v4683_v48, %v4636_v32 }
 0x14f   :  { %v5076_v34 = vpop.permute.xlu0 %783  ;;  %v5078_v49 = vpop.permute.xlu1 %781 }
 0x150   :  { %8121 = vst [vmem:[#allocation30_spill] sm:$0xff] %v5076_v34  ;;  %8122 = vst [vmem:[#allocation31_spill] sm:$0xff] %v5078_v49 }
 0x151   :  { %899 = vrot.lane.b32.xlu0 %v546_v4, %s4506_s1  ;;  %897 = vrot.lane.b32.xlu1 %v545_v10, %s4506_s1  ;;  %v550_v4 = vmul.f32 %v4691_v51, %v4639_v33  ;;  %v549_v10 = vmul.f32 %v4691_v51, %v4636_v32 }
 0x153   :  { %v5086_v56 = vpop.permute.xlu0 %787  ;;  %v5088_v55 = vpop.permute.xlu1 %785 }
 0x154   :  { %8123 = vst [vmem:[#allocation32_spill] sm:$0xff] %v5086_v56  ;;  %8124 = vst [vmem:[#allocation33_spill] sm:$0xff] %v5088_v55 }
 0x155   :  { %903 = vrot.lane.b32.xlu0 %v548_v50, %s4506_s1  ;;  %901 = vrot.lane.b32.xlu1 %v547_v15, %s4506_s1  ;;  %v552_v50 = vmul.f32 %v4699_v54, %v4639_v33  ;;  %v551_v15 = vmul.f32 %v4699_v54, %v4636_v32 }
 0x157   :  { %v5096_v49 = vpop.permute.xlu0 %791  ;;  %v5098_v34 = vpop.permute.xlu1 %789 }
 0x158   :  { %8125 = vst [vmem:[#allocation34_spill] sm:$0xff] %v5096_v49  ;;  %8126 = vst [vmem:[#allocation35_spill] sm:$0xff] %v5098_v34 }
 0x159   :  { %907 = vrot.lane.b32.xlu0 %v550_v4, %s4506_s1  ;;  %905 = vrot.lane.b32.xlu1 %v549_v10, %s4506_s1  ;;  %v554_v4 = vmul.f32 %v4705_v57, %v4639_v33  ;;  %v553_v10 = vmul.f32 %v4705_v57, %v4636_v32 }
 0x15b   :  { %v5106_v55 = vpop.permute.xlu0 %795  ;;  %v5108_v56 = vpop.permute.xlu1 %793 }
 0x15c   :  { %8127 = vst [vmem:[#allocation36_spill] sm:$0xff] %v5106_v55  ;;  %8128 = vst [vmem:[#allocation37_spill] sm:$0xff] %v5108_v56 }
 0x15d   :  { %911 = vrot.lane.b32.xlu0 %v552_v50, %s4506_s1  ;;  %909 = vrot.lane.b32.xlu1 %v551_v15, %s4506_s1  ;;  %v556_v50 = vmul.f32 %v4715_v60, %v4639_v33  ;;  %v555_v15 = vmul.f32 %v4715_v60, %v4636_v32 }
 0x15f   :  { %v5116_v34 = vpop.permute.xlu0 %799  ;;  %v5118_v49 = vpop.permute.xlu1 %797 }
 0x160   :  { %8129 = vst [vmem:[#allocation38_spill] sm:$0xff] %v5116_v34  ;;  %8130 = vst [vmem:[#allocation39_spill] sm:$0xff] %v5118_v49 }
 0x161   :  { %915 = vrot.lane.b32.xlu0 %v554_v4, %s4506_s1  ;;  %913 = vrot.lane.b32.xlu1 %v553_v10, %s4506_s1  ;;  %v558_v4 = vmul.f32 %v4721_v63, %v4639_v33  ;;  %v557_v10 = vmul.f32 %v4721_v63, %v4636_v32 }
 0x163   :  { %v5126_v56 = vpop.permute.xlu0 %803  ;;  %v5128_v55 = vpop.permute.xlu1 %801 }
 0x164   :  { %8131 = vst [vmem:[#allocation40_spill] sm:$0xff] %v5126_v56  ;;  %8132 = vst [vmem:[#allocation41_spill] sm:$0xff] %v5128_v55 }
 0x165   :  { %919 = vrot.lane.b32.xlu0 %v556_v50, %s4506_s1  ;;  %917 = vrot.lane.b32.xlu1 %v555_v15, %s4506_s1  ;;  %v560_v50 = vmul.f32 %v4731_v7, %v4639_v33  ;;  %v559_v15 = vmul.f32 %v4731_v7, %v4636_v32 }
 0x167   :  { %v5136_v49 = vpop.permute.xlu0 %807  ;;  %v5138_v34 = vpop.permute.xlu1 %805 }
 0x168   :  { %8133 = vst [vmem:[#allocation42_spill] sm:$0xff] %v5136_v49  ;;  %8134 = vst [vmem:[#allocation43_spill] sm:$0xff] %v5138_v34 }
 0x169   :  { %923 = vrot.lane.b32.xlu0 %v558_v4, %s4506_s1  ;;  %921 = vrot.lane.b32.xlu1 %v557_v10, %s4506_s1  ;;  %v562_v4 = vmul.f32 %v4669_v42, %v4659_v38  ;;  %v561_v10 = vmul.f32 %v4669_v42, %v4649_v36 }
 0x16b   :  { %v5146_v55 = vpop.permute.xlu0 %811  ;;  %v5148_v56 = vpop.permute.xlu1 %809 }
 0x16c   :  { %8135 = vst [vmem:[#allocation44_spill] sm:$0xff] %v5146_v55  ;;  %8136 = vst [vmem:[#allocation45_spill] sm:$0xff] %v5148_v56 }
 0x16d   :  { %927 = vrot.lane.b32.xlu0 %v560_v50, %s4506_s1  ;;  %925 = vrot.lane.b32.xlu1 %v559_v15, %s4506_s1  ;;  %v564_v50 = vmul.f32 %v4683_v48, %v4659_v38  ;;  %v563_v15 = vmul.f32 %v4683_v48, %v4649_v36 }
 0x16f   :  { %v5156_v34 = vpop.permute.xlu0 %815  ;;  %v5158_v49 = vpop.permute.xlu1 %813 }
 0x170   :  { %8137 = vst [vmem:[#allocation46_spill] sm:$0xff] %v5158_v49 }
 0x171   :  { %931 = vrot.lane.b32.xlu0 %v562_v4, %s4506_s1  ;;  %929 = vrot.lane.b32.xlu1 %v561_v10, %s4506_s1  ;;  %v566_v4 = vmul.f32 %v4691_v51, %v4659_v38  ;;  %v565_v10 = vmul.f32 %v4691_v51, %v4649_v36 }
 0x173   :  { %v5166_v56 = vpop.permute.xlu0 %819  ;;  %v5168_v55 = vpop.permute.xlu1 %817 }
 0x174   :  { %8138 = vst [vmem:[#allocation47_spill] sm:$0xff] %v5166_v56  ;;  %8139 = vst [vmem:[#allocation48_spill] sm:$0xff] %v5168_v55 }
 0x175   :  { %935 = vrot.lane.b32.xlu0 %v564_v50, %s4506_s1  ;;  %933 = vrot.lane.b32.xlu1 %v563_v15, %s4506_s1  ;;  %v568_v50 = vmul.f32 %v4699_v54, %v4659_v38  ;;  %v567_v15 = vmul.f32 %v4699_v54, %v4649_v36 }
 0x177   :  { %v5176_v49 = vpop.permute.xlu0 %823  ;;  %v5178_v42 = vpop.permute.xlu1 %821 }
 0x179   :  { %939 = vrot.lane.b32.xlu0 %v566_v4, %s4506_s1  ;;  %937 = vrot.lane.b32.xlu1 %v565_v10, %s4506_s1  ;;  %v570_v4 = vmul.f32 %v4705_v57, %v4659_v38  ;;  %v569_v10 = vmul.f32 %v4705_v57, %v4649_v36 }
 0x17b   :  { %v5186_v55 = vpop.permute.xlu0 %827  ;;  %v5188_v48 = vpop.permute.xlu1 %825 }
 0x17c   :  { %8140 = vst [vmem:[#allocation49_spill] sm:$0xff] %v5186_v55  ;;  %8141 = vst [vmem:[#allocation50_spill] sm:$0xff] %v5188_v48 }
 0x17d   :  { %943 = vrot.lane.b32.xlu0 %v568_v50, %s4506_s1  ;;  %941 = vrot.lane.b32.xlu1 %v567_v15, %s4506_s1  ;;  %v572_v50 = vmul.f32 %v4715_v60, %v4659_v38  ;;  %v571_v15 = vmul.f32 %v4715_v60, %v4649_v36 }
 0x17f   :  { %v5196_v56 = vpop.permute.xlu0 %831  ;;  %v5198_v51 = vpop.permute.xlu1 %829 }
 0x181   :  { %947 = vrot.lane.b32.xlu0 %v570_v4, %s4506_s1  ;;  %945 = vrot.lane.b32.xlu1 %v569_v10, %s4506_s1  ;;  %v574_v4 = vmul.f32 %v4721_v63, %v4659_v38  ;;  %v573_v10 = vmul.f32 %v4721_v63, %v4649_v36 }
 0x183   :  { %v5206_v48 = vpop.permute.xlu0 %835  ;;  %v5208_v54 = vpop.permute.xlu1 %833 }
 0x184   :  { %8142 = vst [vmem:[#allocation51_spill] sm:$0xff] %v5206_v48  ;;  %8143 = vst [vmem:[#allocation52_spill] sm:$0xff] %v5208_v54  ;;  %v8151_v48 = vmov 0  }
 0x185   :  { %951 = vrot.lane.b32.xlu0 %v572_v50, %s4506_s1  ;;  %949 = vrot.lane.b32.xlu1 %v571_v15, %s4506_s1  ;;  %v576_v50 = vmul.f32 %v4731_v7, %v4659_v38  ;;  %v575_v15 = vmul.f32 %v4731_v7, %v4649_v36 }
 0x187   :  { %v5216_v55 = vpop.permute.xlu0 %839  ;;  %v5218_v57 = vpop.permute.xlu1 %837 }
 0x188   :  { %8144 = vst [vmem:[#allocation53_spill] sm:$0xff] %v5216_v55  ;;  %8145 = vst [vmem:[#allocation54_spill] sm:$0xff] %v5218_v57 }
 0x189   :  { %955 = vrot.lane.b32.xlu0 %v574_v4, %s4506_s1  ;;  %953 = vrot.lane.b32.xlu1 %v573_v10, %s4506_s1 }
 0x18b   :  { %v5226_v54 = vpop.permute.xlu0 %843  ;;  %v5228_v60 = vpop.permute.xlu1 %841 }
 0x18d   :  { %959 = vrot.lane.b32.xlu0 %v576_v50, %s4506_s1  ;;  %957 = vrot.lane.b32.xlu1 %v575_v15, %s4506_s1 }
 0x18f   :  { %v5236_v57 = vpop.permute.xlu0 %847  ;;  %v5238_v63 = vpop.permute.xlu1 %845 }
 0x191   :  { %1287 = vperm.xlu0 %4383, %v4624_v28   ;;  %1283 = vperm.xlu1 %4382, %v4565_v1  }
 0x193   :  { %v5242_v4 = vpop.permute.xlu0 %851  ;;  %v5244_v10 = vpop.permute.xlu1 %849 }
 0x194   :  { %8146 = vst [vmem:[#allocation55_spill] sm:$0xff] %v5242_v4  ;;  %8147 = vst [vmem:[#allocation56_spill] sm:$0xff] %v5244_v10 }
 0x195   :  { %1299 = vperm.xlu0 %4383, %v4646_v35   ;;  %1291 = vperm.xlu1 %4382, %v4560_v0  }
 0x197   :  { %v5248_v7 = vpop.permute.xlu0 %855  ;;  %v5250_v50 = vpop.permute.xlu1 %853 }
 0x198   :  { %8148 = vst [vmem:[#allocation57_spill] sm:$0xff] %v5250_v50 }
 0x199   :  { %1307 = vperm.xlu0 %4383, %v4655_v37   ;;  %1295 = vperm.xlu1 %4382, %v4574_v8  }
 0x19b   :  { %v5254_v15 = vpop.permute.xlu0 %859  ;;  %v5256_v55 = vpop.permute.xlu1 %857 }
 0x19c   :  { %8149 = vst [vmem:[#allocation58_spill] sm:$0xff] %v5254_v15  ;;  %8150 = vst [vmem:[#allocation59_spill] sm:$0xff] %v5256_v55 }
 0x19d   :  { %4384 = vset.pattern.permute.xlu0 %v8151_v48  ;;  %1303 = vperm.xlu1 %4382, %v4589_v13  }
 0x19e   :  { %171 = vperm.xlu0 %4384, %v4565_v1  }
 0x19f   :  { %v5261_v10 = vpop.permute.xlu0 %863  ;;  %v5263_v0 = vpop.permute.xlu1 %861 }
 0x1a0   :  { %8152 = vst [vmem:[#allocation60_spill] sm:$0xff] %v5261_v10  ;;  %8153 = vst [vmem:[#allocation61_spill] sm:$0xff] %v5263_v0 }
 0x1a1   :  { %1311 = vperm.xlu1 %4382, %v4605_v19  }
 0x1a2   :  { %176 = vperm.xlu0 %4384, %v4624_v28  }
 0x1a3   :  { %v5267_v4 = vpop.permute.xlu0 %867  ;;  %v5269_v8 = vpop.permute.xlu1 %865 }
 0x1a4   :  { %8154 = vst [vmem:[#allocation62_spill] sm:$0xff] %v5267_v4  ;;  %8155 = vst [vmem:[#allocation63_spill] sm:$0xff] %v5269_v8 }
 0x1a5   :  { %4385 = vset.pattern.permute.xlu1 %v8151_v48 }
 0x1a6   :  { %191 = vperm.xlu0 %4384, %v4646_v35  }
 0x1a7   :  { %v5273_v55 = vpop.permute.xlu0 %871  ;;  %v5275_v13 = vpop.permute.xlu1 %869 }
 0x1a8   :  { %8156 = vst [vmem:[#allocation64_spill] sm:$0xff] %v5273_v55  ;;  %8157 = vst [vmem:[#allocation65_spill] sm:$0xff] %v5275_v13 }
 0x1aa   :  { %201 = vperm.xlu0 %4384, %v4655_v37  }
 0x1ab   :  { %v5278_v1 = vpop.permute.xlu0 %875  ;;  %v5280_v15 = vpop.permute.xlu1 %873 }
 0x1ac   :  { %8158 = vst [vmem:[#allocation66_spill] sm:$0xff] %v5278_v1  ;;  %8159 = vst [vmem:[#allocation67_spill] sm:$0xff] %v5280_v15 }
 0x1af   :  { %v5282_v19 = vpop.permute.xlu0 %879  ;;  %v5284_v28 = vpop.permute.xlu1 %877 }
 0x1b0   :  { %8160 = vst [vmem:[#allocation68_spill] sm:$0xff] %v5282_v19  ;;  %8161 = vst [vmem:[#allocation69_spill] sm:$0xff] %v5284_v28 }
 0x1b3   :  { %v5286_v4 = vpop.permute.xlu0 %883  ;;  %v5288_v8 = vpop.permute.xlu1 %881 }
 0x1b4   :  { %8162 = vst [vmem:[#allocation70_spill] sm:$0xff] %v5286_v4  ;;  %8163 = vst [vmem:[#allocation71_spill] sm:$0xff] %v5288_v8 }
 0x1b7   :  { %v5290_v48 = vpop.permute.xlu0 %887  ;;  %v5292_v35 = vpop.permute.xlu1 %885 }
 0x1b8   :  { %8164 = vst [vmem:[#allocation72_spill] sm:$0xff] %v5290_v48  ;;  %8165 = vst [vmem:[#allocation73_spill] sm:$0xff] %v5292_v35 }
 0x1bb   :  { %v5294_v55 = vpop.permute.xlu0 %891  ;;  %v5296_v13 = vpop.permute.xlu1 %889 }
 0x1bc   :  { %8166 = vst [vmem:[#allocation74_spill] sm:$0xff] %v5294_v55  ;;  %8167 = vst [vmem:[#allocation75_spill] sm:$0xff] %v5296_v13 }
 0x1bf   :  { %v5298_v37 = vpop.permute.xlu0 %895  ;;  %v5300_v1 = vpop.permute.xlu1 %893 }
 0x1c0   :  { %8168 = vst [vmem:[#allocation76_spill] sm:$0xff] %v5298_v37  ;;  %8169 = vst [vmem:[#allocation77_spill] sm:$0xff] %v5300_v1 }
 0x1c3   :  { %v5302_v15 = vpop.permute.xlu0 %899  ;;  %v5304_v19 = vpop.permute.xlu1 %897 }
 0x1c4   :  { %8170 = vst [vmem:[#allocation78_spill] sm:$0xff] %v5302_v15  ;;  %8171 = vst [vmem:[#allocation79_spill] sm:$0xff] %v5304_v19 }
 0x1c7   :  { %v5306_v28 = vpop.permute.xlu0 %903  ;;  %v5308_v4 = vpop.permute.xlu1 %901 }
 0x1c8   :  { %8172 = vst [vmem:[#allocation80_spill] sm:$0xff] %v5306_v28  ;;  %8173 = vst [vmem:[#allocation81_spill] sm:$0xff] %v5308_v4 }
 0x1cb   :  { %v5310_v8 = vpop.permute.xlu0 %907  ;;  %v5312_v48 = vpop.permute.xlu1 %905 }
 0x1cc   :  { %8174 = vst [vmem:[#allocation82_spill] sm:$0xff] %v5310_v8  ;;  %8175 = vst [vmem:[#allocation83_spill] sm:$0xff] %v5312_v48 }
 0x1cf   :  { %v5314_v35 = vpop.permute.xlu0 %911  ;;  %v5316_v55 = vpop.permute.xlu1 %909 }
 0x1d0   :  { %8176 = vst [vmem:[#allocation84_spill] sm:$0xff] %v5314_v35  ;;  %8177 = vst [vmem:[#allocation85_spill] sm:$0xff] %v5316_v55 }
 0x1d3   :  { %v5318_v13 = vpop.permute.xlu0 %915  ;;  %v5320_v37 = vpop.permute.xlu1 %913 }
 0x1d4   :  { %8178 = vst [vmem:[#allocation86_spill] sm:$0xff] %v5318_v13  ;;  %8179 = vst [vmem:[#allocation87_spill] sm:$0xff] %v5320_v37 }
 0x1d7   :  { %v5322_v1 = vpop.permute.xlu0 %919  ;;  %v5324_v15 = vpop.permute.xlu1 %917 }
 0x1d8   :  { %8180 = vst [vmem:[#allocation88_spill] sm:$0xff] %v5322_v1  ;;  %8181 = vst [vmem:[#allocation89_spill] sm:$0xff] %v5324_v15 }
 0x1db   :  { %v5326_v19 = vpop.permute.xlu0 %923  ;;  %v5328_v28 = vpop.permute.xlu1 %921 }
 0x1dc   :  { %8182 = vst [vmem:[#allocation90_spill] sm:$0xff] %v5326_v19  ;;  %8183 = vst [vmem:[#allocation91_spill] sm:$0xff] %v5328_v28 }
 0x1df   :  { %v5330_v4 = vpop.permute.xlu0 %927  ;;  %v5332_v8 = vpop.permute.xlu1 %925 }
 0x1e0   :  { %8184 = vst [vmem:[#allocation92_spill] sm:$0xff] %v5330_v4  ;;  %8185 = vst [vmem:[#allocation93_spill] sm:$0xff] %v5332_v8 }
 0x1e3   :  { %v5334_v48 = vpop.permute.xlu1 %929  ;;  %v5336_v35 = vpop.permute.xlu0 %931 }
 0x1e4   :  { %8186 = vst [vmem:[#allocation94_spill] sm:$0xff] %v5334_v48  ;;  %8187 = vst [vmem:[#allocation95_spill] sm:$0xff] %v5336_v35 }
 0x1e7   :  { %v5338_v55 = vpop.permute.xlu1 %933  ;;  %v5340_v13 = vpop.permute.xlu0 %935 }
 0x1e8   :  { %8188 = vst [vmem:[#allocation96_spill] sm:$0xff] %v5338_v55  ;;  %8189 = vst [vmem:[#allocation97_spill] sm:$0xff] %v5340_v13 }
 0x1eb   :  { %v5342_v37 = vpop.permute.xlu1 %937  ;;  %v5344_v1 = vpop.permute.xlu0 %939 }
 0x1ec   :  { %8190 = vst [vmem:[#allocation98_spill] sm:$0xff] %v5342_v37  ;;  %8191 = vst [vmem:[#allocation99_spill] sm:$0xff] %v5344_v1 }
 0x1ef   :  { %v5346_v15 = vpop.permute.xlu1 %941  ;;  %v5348_v19 = vpop.permute.xlu0 %943 }
 0x1f0   :  { %8192 = vst [vmem:[#allocation100_spill] sm:$0xff] %v5346_v15  ;;  %8193 = vst [vmem:[#allocation101_spill] sm:$0xff] %v5348_v19 }
 0x1f3   :  { %v5350_v28 = vpop.permute.xlu1 %945  ;;  %v5352_v4 = vpop.permute.xlu0 %947 }
 0x1f4   :  { %8194 = vst [vmem:[#allocation102_spill] sm:$0xff] %v5350_v28  ;;  %8195 = vst [vmem:[#allocation103_spill] sm:$0xff] %v5352_v4 }
 0x1f7   :  { %v5354_v8 = vpop.permute.xlu1 %949  ;;  %v5356_v48 = vpop.permute.xlu0 %951 }
 0x1f8   :  { %8196 = vst [vmem:[#allocation104_spill] sm:$0xff] %v5354_v8  ;;  %8197 = vst [vmem:[#allocation105_spill] sm:$0xff] %v5356_v48 }
 0x1fb   :  { %v5358_v35 = vpop.permute.xlu1 %953  ;;  %v5360_v55 = vpop.permute.xlu0 %955 }
 0x1fc   :  { %8198 = vst [vmem:[#allocation106_spill] sm:$0xff] %v5358_v35  ;;  %8199 = vst [vmem:[#allocation107_spill] sm:$0xff] %v5360_v55 }
 0x1ff   :  { %v5362_v13 = vpop.permute.xlu1 %957  ;;  %v5364_v37 = vpop.permute.xlu0 %959 }
 0x200   :  { %8200 = vst [vmem:[#allocation108_spill] sm:$0xff] %v5362_v13  ;;  %8201 = vst [vmem:[#allocation109_spill] sm:$0xff] %v5364_v37 }
 0x210   :  { %v5366_v1 = vpop.permute.xlu1 %1283  ;;  %v5372_v4 = vpop.permute.xlu0 %1287 }
 0x211   :  { %v1315_v15 = vmul.f32 %v5366_v1, %v4662_v39  ;;  %v1314_v28 = vmul.f32 %v5366_v1, %v4665_v40  ;;  %v1317_v13 = vmul.f32 %v5372_v4, %v4662_v39  ;;  %v1316_v37 = vmul.f32 %v5372_v4, %v4665_v40 }
 0x212   :  { %v1330_v50 = vmul.f32 %v5366_v1, %v4750_v16 }
 0x213   :  { %1572 = vrot.lane.b32.xlu1 %v1315_v15, %s4508_s20  ;;  %1570 = vrot.lane.b32.xlu0 %v1314_v28, %s4508_s20 }
 0x214   :  { %v5380_v35 = vpop.permute.xlu1 %1291  ;;  %v5396_v48 = vpop.permute.xlu0 %1299 }
 0x215   :  { %v1319_v55 = vmul.f32 %v5380_v35, %v4662_v39  ;;  %v1318_v15 = vmul.f32 %v5380_v35, %v4665_v40 }
 0x217   :  { %1576 = vrot.lane.b32.xlu1 %v1317_v13, %s4508_s20  ;;  %1574 = vrot.lane.b32.xlu0 %v1316_v37, %s4508_s20  ;;  %v1323_v37 = vmul.f32 %v5396_v48, %v4662_v39 }
 0x218   :  { %v5388_v8 = vpop.permute.xlu1 %1295  ;;  %v5412_v0 = vpop.permute.xlu0 %1307 }
 0x219   :  { %v1321_v28 = vmul.f32 %v5388_v8, %v4662_v39  ;;  %v1320_v13 = vmul.f32 %v5388_v8, %v4665_v40 }
 0x21b   :  { %1580 = vrot.lane.b32.xlu1 %v1319_v55, %s4508_s20  ;;  %1578 = vrot.lane.b32.xlu0 %v1318_v15, %s4508_s20  ;;  %v1322_v55 = vmul.f32 %v5396_v48, %v4665_v40 }
 0x21c   :  { %v5404_v19 = vpop.permute.xlu1 %1303 }
 0x21d   :  { %v1325_v15 = vmul.f32 %v5404_v19, %v4662_v39 }
 0x21f   :  { %1584 = vrot.lane.b32.xlu1 %v1321_v28, %s4508_s20  ;;  %1582 = vrot.lane.b32.xlu0 %v1320_v13, %s4508_s20  ;;  %v1324_v28 = vmul.f32 %v5404_v19, %v4665_v40  ;;  %v1327_v13 = vmul.f32 %v5412_v0, %v4662_v39 }
 0x220   :  { %v5420_v10 = vpop.permute.xlu1 %1311 }
 0x223   :  { %1588 = vrot.lane.b32.xlu1 %v1323_v37, %s4508_s20  ;;  %1586 = vrot.lane.b32.xlu0 %v1322_v55, %s4508_s20  ;;  %v1326_v37 = vmul.f32 %v5412_v0, %v4665_v40  ;;  %v1329_v55 = vmul.f32 %v5420_v10, %v4662_v39  ;;  %v1333_v39 = vmul.f32 %v5372_v4, %v4744_v14 }
 0x227   :  { %1592 = vrot.lane.b32.xlu1 %v1325_v15, %s4508_s20  ;;  %1590 = vrot.lane.b32.xlu0 %v1324_v28, %s4508_s20  ;;  %v1328_v15 = vmul.f32 %v5420_v10, %v4665_v40  ;;  %v1331_v28 = vmul.f32 %v5366_v1, %v4744_v14 }
 0x22b   :  { %1596 = vrot.lane.b32.xlu1 %v1327_v13, %s4508_s20  ;;  %1594 = vrot.lane.b32.xlu0 %v1326_v37, %s4508_s20  ;;  %v1332_v13 = vmul.f32 %v5372_v4, %v4750_v16  ;;  %v1335_v37 = vmul.f32 %v5380_v35, %v4744_v14 }
 0x22f   :  { %1600 = vrot.lane.b32.xlu1 %v1329_v55, %s4508_s20  ;;  %1598 = vrot.lane.b32.xlu0 %v1328_v15, %s4508_s20  ;;  %v1334_v55 = vmul.f32 %v5380_v35, %v4750_v16  ;;  %v1336_v15 = vmul.f32 %v5388_v8, %v4750_v16 }
 0x233   :  { %1604 = vrot.lane.b32.xlu1 %v1331_v28, %s4508_s20  ;;  %1602 = vrot.lane.b32.xlu0 %v1330_v50, %s4508_s20  ;;  %v1337_v50 = vmul.f32 %v5388_v8, %v4744_v14  ;;  %v1339_v28 = vmul.f32 %v5396_v48, %v4744_v14 }
 0x237   :  { %1608 = vrot.lane.b32.xlu1 %v1333_v39, %s4508_s20  ;;  %1606 = vrot.lane.b32.xlu0 %v1332_v13, %s4508_s20  ;;  %v1338_v39 = vmul.f32 %v5396_v48, %v4750_v16  ;;  %v1341_v13 = vmul.f32 %v5404_v19, %v4744_v14 }
 0x23b   :  { %1612 = vrot.lane.b32.xlu1 %v1335_v37, %s4508_s20  ;;  %1610 = vrot.lane.b32.xlu0 %v1334_v55, %s4508_s20  ;;  %v1340_v37 = vmul.f32 %v5404_v19, %v4750_v16  ;;  %v1343_v55 = vmul.f32 %v5412_v0, %v4744_v14 }
 0x23f   :  { %1616 = vrot.lane.b32.xlu1 %v1337_v50, %s4508_s20  ;;  %1614 = vrot.lane.b32.xlu0 %v1336_v15, %s4508_s20  ;;  %v1342_v50 = vmul.f32 %v5412_v0, %v4750_v16  ;;  %v1345_v15 = vmul.f32 %v5420_v10, %v4744_v14  ;;  %v1349_v14 = vmul.f32 %v5372_v4, %v4619_v27 }
 0x243   :  { %1620 = vrot.lane.b32.xlu1 %v1339_v28, %s4508_s20  ;;  %1618 = vrot.lane.b32.xlu0 %v1338_v39, %s4508_s20  ;;  %v1344_v28 = vmul.f32 %v5420_v10, %v4750_v16  ;;  %v1347_v39 = vmul.f32 %v5366_v1, %v4619_v27 }
 0x247   :  { %1624 = vrot.lane.b32.xlu1 %v1341_v13, %s4508_s20  ;;  %1622 = vrot.lane.b32.xlu0 %v1340_v37, %s4508_s20  ;;  %v1346_v13 = vmul.f32 %v5366_v1, %v4615_v25  ;;  %v1348_v37 = vmul.f32 %v5372_v4, %v4615_v25 }
 0x24b   :  { %1628 = vrot.lane.b32.xlu1 %v1343_v55, %s4508_s20  ;;  %1626 = vrot.lane.b32.xlu0 %v1342_v50, %s4508_s20  ;;  %v1351_v55 = vmul.f32 %v5380_v35, %v4619_v27  ;;  %v1350_v50 = vmul.f32 %v5380_v35, %v4615_v25 }
 0x24f   :  { %1632 = vrot.lane.b32.xlu1 %v1345_v15, %s4508_s20  ;;  %1630 = vrot.lane.b32.xlu0 %v1344_v28, %s4508_s20  ;;  %v1353_v15 = vmul.f32 %v5388_v8, %v4619_v27  ;;  %v1352_v28 = vmul.f32 %v5388_v8, %v4615_v25 }
 0x253   :  { %1636 = vrot.lane.b32.xlu1 %v1347_v39, %s4508_s20  ;;  %1634 = vrot.lane.b32.xlu0 %v1346_v13, %s4508_s20  ;;  %v1355_v39 = vmul.f32 %v5396_v48, %v4619_v27  ;;  %v1354_v13 = vmul.f32 %v5396_v48, %v4615_v25 }
 0x257   :  { %1640 = vrot.lane.b32.xlu1 %v1349_v14, %s4508_s20  ;;  %1638 = vrot.lane.b32.xlu0 %v1348_v37, %s4508_s20  ;;  %v1357_v14 = vmul.f32 %v5404_v19, %v4619_v27  ;;  %v1356_v37 = vmul.f32 %v5404_v19, %v4615_v25 }
 0x25b   :  { %1644 = vrot.lane.b32.xlu1 %v1351_v55, %s4508_s20  ;;  %1642 = vrot.lane.b32.xlu0 %v1350_v50, %s4508_s20  ;;  %v1359_v55 = vmul.f32 %v5412_v0, %v4619_v27  ;;  %v1358_v50 = vmul.f32 %v5412_v0, %v4615_v25 }
 0x25f   :  { %1648 = vrot.lane.b32.xlu1 %v1353_v15, %s4508_s20  ;;  %1646 = vrot.lane.b32.xlu0 %v1352_v28, %s4508_s20  ;;  %v1361_v15 = vmul.f32 %v5420_v10, %v4619_v27  ;;  %v1360_v28 = vmul.f32 %v5420_v10, %v4615_v25 }
 0x263   :  { %1652 = vrot.lane.b32.xlu1 %v1355_v39, %s4508_s20  ;;  %1650 = vrot.lane.b32.xlu0 %v1354_v13, %s4508_s20  ;;  %v5524_v39 = vpop.permute.xlu0 %171  ;;  %v1363_v13 = vmul.f32 %v5366_v1, %v4849_v43 }
 0x264   :  { %8202 = vst [vmem:[#allocation110_spill] sm:$0xff] %v5524_v39  ;;  %v964_v39 = vsel %vm961_vm1, %v4908_v17, %v4906_v12  ;;  %v967_v12 = vsel %vm961_vm1, %v4938_v53, %v4936_v52  ;;  %v6106_v17 = vmul.f32 %v4649_v36, %v4667_v41  ;;  %v6124_v52 = vsel %vm961_vm1, %v4898_v6, %v4896_v5 }
 0x265   :  { %v973_v6 = vsel %vm961_vm1, %v4998_v3, %v4996_v2  ;;  %v8294_v2 = vld [vmem:[#allocation14_spill] sm:$0xff]  ;;  %v8295_v3 = vld [vmem:[#allocation15_spill] sm:$0xff] }
 0x267   :  { %1656 = vrot.lane.b32.xlu1 %v1357_v14, %s4508_s20  ;;  %1654 = vrot.lane.b32.xlu0 %v1356_v37, %s4508_s20  ;;  %v1362_v14 = vmul.f32 %v5366_v1, %v4854_v44  ;;  %v5534_v27 = vpop.permute.xlu0 %176  ;;  %v1365_v37 = vmul.f32 %v5372_v4, %v4849_v43 }
 0x268   :  { %8203 = vst [vmem:[#allocation111_spill] sm:$0xff] %v5534_v27 }
 0x26b   :  { %1660 = vrot.lane.b32.xlu1 %v1359_v55, %s4508_s20  ;;  %1658 = vrot.lane.b32.xlu0 %v1358_v50, %s4508_s20  ;;  %v1364_v55 = vmul.f32 %v5372_v4, %v4854_v44  ;;  %v1367_v50 = vmul.f32 %v5380_v35, %v4849_v43 }
 0x26f   :  { %1664 = vrot.lane.b32.xlu1 %v1361_v15, %s4508_s20  ;;  %1662 = vrot.lane.b32.xlu0 %v1360_v28, %s4508_s20  ;;  %v1366_v15 = vmul.f32 %v5380_v35, %v4854_v44  ;;  %v5546_v28 = vpop.permute.xlu0 %191 }
 0x270   :  { %8204 = vst [vmem:[#allocation112_spill] sm:$0xff] %v5546_v28 }
 0x273   :  { %1668 = vrot.lane.b32.xlu1 %v1363_v13, %s4508_s20  ;;  %1666 = vrot.lane.b32.xlu0 %v1362_v14, %s4508_s20  ;;  %v1369_v13 = vmul.f32 %v5388_v8, %v4849_v43  ;;  %v1368_v14 = vmul.f32 %v5388_v8, %v4854_v44 }
 0x277   :  { %1672 = vrot.lane.b32.xlu1 %v1365_v37, %s4508_s20  ;;  %1670 = vrot.lane.b32.xlu0 %v1364_v55, %s4508_s20  ;;  %v5556_v37 = vpop.permute.xlu0 %201  ;;  %v1371_v55 = vmul.f32 %v5396_v48, %v4849_v43 }
 0x278   :  { %8205 = vst [vmem:[#allocation113_spill] sm:$0xff] %v5556_v37 }
 0x27b   :  { %1676 = vrot.lane.b32.xlu1 %v1367_v50, %s4508_s20  ;;  %1674 = vrot.lane.b32.xlu0 %v1366_v15, %s4508_s20  ;;  %v1370_v50 = vmul.f32 %v5396_v48, %v4854_v44 }
 0x27f   :  { %1680 = vrot.lane.b32.xlu1 %v1369_v13, %s4508_s20  ;;  %1678 = vrot.lane.b32.xlu0 %v1368_v14, %s4508_s20  ;;  %v1373_v13 = vmul.f32 %v5404_v19, %v4849_v43  ;;  %v1372_v14 = vmul.f32 %v5404_v19, %v4854_v44 }
 0x283   :  { %1684 = vrot.lane.b32.xlu1 %v1371_v55, %s4508_s20  ;;  %1682 = vrot.lane.b32.xlu0 %v1370_v50, %s4508_s20  ;;  %v1375_v55 = vmul.f32 %v5412_v0, %v4849_v43  ;;  %v1374_v50 = vmul.f32 %v5412_v0, %v4854_v44 }
 0x285   :  { %v5564_v15 = vpop.permute.xlu0 %1570  ;;  %v5566_v28 = vpop.permute.xlu1 %1572 }
 0x286   :  { %8206 = vst [vmem:[#allocation114_spill] sm:$0xff] %v5564_v15  ;;  %8207 = vst [vmem:[#allocation115_spill] sm:$0xff] %v5566_v28 }
 0x287   :  { %1688 = vrot.lane.b32.xlu1 %v1373_v13, %s4508_s20  ;;  %1686 = vrot.lane.b32.xlu0 %v1372_v14, %s4508_s20  ;;  %v1377_v13 = vmul.f32 %v5420_v10, %v4849_v43  ;;  %v1376_v14 = vmul.f32 %v5420_v10, %v4854_v44 }
 0x289   :  { %v5574_v37 = vpop.permute.xlu0 %1574  ;;  %v5576_v27 = vpop.permute.xlu1 %1576 }
 0x28a   :  { %8208 = vst [vmem:[#allocation116_spill] sm:$0xff] %v5574_v37  ;;  %8209 = vst [vmem:[#allocation117_spill] sm:$0xff] %v5576_v27 }
 0x28b   :  { %1692 = vrot.lane.b32.xlu1 %v1375_v55, %s4508_s20  ;;  %1690 = vrot.lane.b32.xlu0 %v1374_v50, %s4508_s20  ;;  %v1379_v55 = vmul.f32 %v5366_v1, %v4627_v29  ;;  %v1378_v50 = vmul.f32 %v5366_v1, %v4610_v23 }
 0x28d   :  { %v5584_v15 = vpop.permute.xlu0 %1578  ;;  %v5586_v28 = vpop.permute.xlu1 %1580 }
 0x28e   :  { %8210 = vst [vmem:[#allocation118_spill] sm:$0xff] %v5584_v15  ;;  %8211 = vst [vmem:[#allocation119_spill] sm:$0xff] %v5586_v28 }
 0x28f   :  { %1696 = vrot.lane.b32.xlu1 %v1377_v13, %s4508_s20  ;;  %1694 = vrot.lane.b32.xlu0 %v1376_v14, %s4508_s20  ;;  %v1381_v13 = vmul.f32 %v5372_v4, %v4627_v29  ;;  %v1380_v14 = vmul.f32 %v5372_v4, %v4610_v23 }
 0x291   :  { %v5594_v37 = vpop.permute.xlu0 %1582  ;;  %v5596_v27 = vpop.permute.xlu1 %1584 }
 0x292   :  { %8212 = vst [vmem:[#allocation120_spill] sm:$0xff] %v5594_v37  ;;  %8213 = vst [vmem:[#allocation121_spill] sm:$0xff] %v5596_v27 }
 0x293   :  { %1700 = vrot.lane.b32.xlu1 %v1379_v55, %s4508_s20  ;;  %1698 = vrot.lane.b32.xlu0 %v1378_v50, %s4508_s20  ;;  %v1383_v55 = vmul.f32 %v5380_v35, %v4627_v29  ;;  %v1382_v50 = vmul.f32 %v5380_v35, %v4610_v23 }
 0x295   :  { %v5604_v43 = vpop.permute.xlu0 %1586  ;;  %v5606_v15 = vpop.permute.xlu1 %1588 }
 0x296   :  { %8214 = vst [vmem:[#allocation122_spill] sm:$0xff] %v5604_v43  ;;  %8215 = vst [vmem:[#allocation123_spill] sm:$0xff] %v5606_v15 }
 0x297   :  { %1704 = vrot.lane.b32.xlu1 %v1381_v13, %s4508_s20  ;;  %1702 = vrot.lane.b32.xlu0 %v1380_v14, %s4508_s20  ;;  %v1385_v13 = vmul.f32 %v5388_v8, %v4627_v29  ;;  %v1384_v14 = vmul.f32 %v5388_v8, %v4610_v23 }
 0x299   :  { %v5614_v37 = vpop.permute.xlu0 %1590  ;;  %v5616_v27 = vpop.permute.xlu1 %1592 }
 0x29a   :  { %8216 = vst [vmem:[#allocation124_spill] sm:$0xff] %v5614_v37  ;;  %8217 = vst [vmem:[#allocation125_spill] sm:$0xff] %v5616_v27 }
 0x29b   :  { %1708 = vrot.lane.b32.xlu1 %v1383_v55, %s4508_s20  ;;  %1706 = vrot.lane.b32.xlu0 %v1382_v50, %s4508_s20  ;;  %v1387_v55 = vmul.f32 %v5396_v48, %v4627_v29  ;;  %v1386_v50 = vmul.f32 %v5396_v48, %v4610_v23 }
 0x29d   :  { %v5624_v43 = vpop.permute.xlu0 %1594  ;;  %v5626_v15 = vpop.permute.xlu1 %1596 }
 0x29e   :  { %8218 = vst [vmem:[#allocation126_spill] sm:$0xff] %v5624_v43  ;;  %8219 = vst [vmem:[#allocation127_spill] sm:$0xff] %v5626_v15 }
 0x29f   :  { %1712 = vrot.lane.b32.xlu1 %v1385_v13, %s4508_s20  ;;  %1710 = vrot.lane.b32.xlu0 %v1384_v14, %s4508_s20  ;;  %v1389_v13 = vmul.f32 %v5404_v19, %v4627_v29  ;;  %v1388_v14 = vmul.f32 %v5404_v19, %v4610_v23 }
 0x2a1   :  { %v5634_v37 = vpop.permute.xlu0 %1598  ;;  %v5636_v27 = vpop.permute.xlu1 %1600 }
 0x2a2   :  { %8220 = vst [vmem:[#allocation128_spill] sm:$0xff] %v5634_v37  ;;  %8221 = vst [vmem:[#allocation129_spill] sm:$0xff] %v5636_v27 }
 0x2a3   :  { %1716 = vrot.lane.b32.xlu1 %v1387_v55, %s4508_s20  ;;  %1714 = vrot.lane.b32.xlu0 %v1386_v50, %s4508_s20  ;;  %v1391_v55 = vmul.f32 %v5412_v0, %v4627_v29  ;;  %v1390_v50 = vmul.f32 %v5412_v0, %v4610_v23 }
 0x2a5   :  { %v5644_v43 = vpop.permute.xlu0 %1602  ;;  %v5646_v15 = vpop.permute.xlu1 %1604 }
 0x2a6   :  { %8222 = vst [vmem:[#allocation130_spill] sm:$0xff] %v5644_v43  ;;  %8223 = vst [vmem:[#allocation131_spill] sm:$0xff] %v5646_v15 }
 0x2a7   :  { %1720 = vrot.lane.b32.xlu1 %v1389_v13, %s4508_s20  ;;  %1718 = vrot.lane.b32.xlu0 %v1388_v14, %s4508_s20  ;;  %v1393_v13 = vmul.f32 %v5420_v10, %v4627_v29  ;;  %v1392_v14 = vmul.f32 %v5420_v10, %v4610_v23 }
 0x2a9   :  { %v5654_v37 = vpop.permute.xlu0 %1606  ;;  %v5656_v27 = vpop.permute.xlu1 %1608 }
 0x2aa   :  { %8224 = vst [vmem:[#allocation132_spill] sm:$0xff] %v5654_v37  ;;  %8225 = vst [vmem:[#allocation133_spill] sm:$0xff] %v5656_v27 }
 0x2ab   :  { %1724 = vrot.lane.b32.xlu1 %v1391_v55, %s4508_s20  ;;  %1722 = vrot.lane.b32.xlu0 %v1390_v50, %s4508_s20  ;;  %v1395_v55 = vmul.f32 %v5366_v1, %v4633_v31  ;;  %v1394_v50 = vmul.f32 %v5366_v1, %v4630_v30 }
 0x2ad   :  { %v5664_v43 = vpop.permute.xlu0 %1610  ;;  %v5666_v15 = vpop.permute.xlu1 %1612 }
 0x2ae   :  { %8226 = vst [vmem:[#allocation134_spill] sm:$0xff] %v5664_v43  ;;  %8227 = vst [vmem:[#allocation135_spill] sm:$0xff] %v5666_v15 }
 0x2af   :  { %1728 = vrot.lane.b32.xlu1 %v1393_v13, %s4508_s20  ;;  %1726 = vrot.lane.b32.xlu0 %v1392_v14, %s4508_s20  ;;  %v1397_v13 = vmul.f32 %v5372_v4, %v4633_v31  ;;  %v1396_v14 = vmul.f32 %v5372_v4, %v4630_v30 }
 0x2b1   :  { %v5674_v37 = vpop.permute.xlu0 %1614  ;;  %v5676_v27 = vpop.permute.xlu1 %1616 }
 0x2b2   :  { %8228 = vst [vmem:[#allocation136_spill] sm:$0xff] %v5674_v37  ;;  %8229 = vst [vmem:[#allocation137_spill] sm:$0xff] %v5676_v27 }
 0x2b3   :  { %1732 = vrot.lane.b32.xlu1 %v1395_v55, %s4508_s20  ;;  %1730 = vrot.lane.b32.xlu0 %v1394_v50, %s4508_s20  ;;  %v1399_v55 = vmul.f32 %v5380_v35, %v4633_v31  ;;  %v1398_v50 = vmul.f32 %v5380_v35, %v4630_v30 }
 0x2b5   :  { %v5684_v29 = vpop.permute.xlu0 %1618  ;;  %v5686_v43 = vpop.permute.xlu1 %1620 }
 0x2b6   :  { %8230 = vst [vmem:[#allocation138_spill] sm:$0xff] %v5684_v29  ;;  %8231 = vst [vmem:[#allocation139_spill] sm:$0xff] %v5686_v43 }
 0x2b7   :  { %1736 = vrot.lane.b32.xlu1 %v1397_v13, %s4508_s20  ;;  %1734 = vrot.lane.b32.xlu0 %v1396_v14, %s4508_s20  ;;  %v1401_v13 = vmul.f32 %v5388_v8, %v4633_v31  ;;  %v1400_v14 = vmul.f32 %v5388_v8, %v4630_v30 }
 0x2b9   :  { %v5694_v37 = vpop.permute.xlu0 %1622  ;;  %v5696_v27 = vpop.permute.xlu1 %1624 }
 0x2ba   :  { %8232 = vst [vmem:[#allocation140_spill] sm:$0xff] %v5694_v37  ;;  %8233 = vst [vmem:[#allocation141_spill] sm:$0xff] %v5696_v27 }
 0x2bb   :  { %1740 = vrot.lane.b32.xlu1 %v1399_v55, %s4508_s20  ;;  %1738 = vrot.lane.b32.xlu0 %v1398_v50, %s4508_s20  ;;  %v1403_v55 = vmul.f32 %v5396_v48, %v4633_v31  ;;  %v1402_v50 = vmul.f32 %v5396_v48, %v4630_v30 }
 0x2bd   :  { %v5704_v29 = vpop.permute.xlu0 %1626  ;;  %v5706_v43 = vpop.permute.xlu1 %1628 }
 0x2be   :  { %8234 = vst [vmem:[#allocation142_spill] sm:$0xff] %v5704_v29  ;;  %8235 = vst [vmem:[#allocation143_spill] sm:$0xff] %v5706_v43 }
 0x2bf   :  { %1744 = vrot.lane.b32.xlu1 %v1401_v13, %s4508_s20  ;;  %1742 = vrot.lane.b32.xlu0 %v1400_v14, %s4508_s20  ;;  %v1405_v13 = vmul.f32 %v5404_v19, %v4633_v31  ;;  %v1404_v14 = vmul.f32 %v5404_v19, %v4630_v30 }
 0x2c1   :  { %v5714_v37 = vpop.permute.xlu0 %1630  ;;  %v5716_v27 = vpop.permute.xlu1 %1632 }
 0x2c2   :  { %8236 = vst [vmem:[#allocation144_spill] sm:$0xff] %v5714_v37  ;;  %8237 = vst [vmem:[#allocation145_spill] sm:$0xff] %v5716_v27 }
 0x2c3   :  { %1748 = vrot.lane.b32.xlu1 %v1403_v55, %s4508_s20  ;;  %1746 = vrot.lane.b32.xlu0 %v1402_v50, %s4508_s20  ;;  %v1407_v55 = vmul.f32 %v5412_v0, %v4633_v31  ;;  %v1406_v50 = vmul.f32 %v5412_v0, %v4630_v30 }
 0x2c5   :  { %v5724_v29 = vpop.permute.xlu0 %1634  ;;  %v5726_v43 = vpop.permute.xlu1 %1636 }
 0x2c6   :  { %8238 = vst [vmem:[#allocation146_spill] sm:$0xff] %v5724_v29  ;;  %8239 = vst [vmem:[#allocation147_spill] sm:$0xff] %v5726_v43 }
 0x2c7   :  { %1752 = vrot.lane.b32.xlu1 %v1405_v13, %s4508_s20  ;;  %1750 = vrot.lane.b32.xlu0 %v1404_v14, %s4508_s20  ;;  %v1409_v13 = vmul.f32 %v5420_v10, %v4633_v31  ;;  %v1408_v14 = vmul.f32 %v5420_v10, %v4630_v30 }
 0x2c9   :  { %v5734_v37 = vpop.permute.xlu0 %1638  ;;  %v5736_v27 = vpop.permute.xlu1 %1640 }
 0x2ca   :  { %8240 = vst [vmem:[#allocation148_spill] sm:$0xff] %v5734_v37  ;;  %8241 = vst [vmem:[#allocation149_spill] sm:$0xff] %v5736_v27 }
 0x2cb   :  { %1756 = vrot.lane.b32.xlu1 %v1407_v55, %s4508_s20  ;;  %1754 = vrot.lane.b32.xlu0 %v1406_v50, %s4508_s20  ;;  %v1411_v55 = vmul.f32 %v5366_v1, %v4639_v33  ;;  %v1410_v50 = vmul.f32 %v5366_v1, %v4636_v32 }
 0x2cd   :  { %v5744_v29 = vpop.permute.xlu0 %1642  ;;  %v5746_v43 = vpop.permute.xlu1 %1644 }
 0x2ce   :  { %8242 = vst [vmem:[#allocation150_spill] sm:$0xff] %v5744_v29  ;;  %8243 = vst [vmem:[#allocation151_spill] sm:$0xff] %v5746_v43  ;;  %v1421_v43 = vmul.f32 %v5404_v19, %v4639_v33 }
 0x2cf   :  { %1760 = vrot.lane.b32.xlu1 %v1409_v13, %s4508_s20  ;;  %1758 = vrot.lane.b32.xlu0 %v1408_v14, %s4508_s20  ;;  %v1412_v13 = vmul.f32 %v5372_v4, %v4636_v32  ;;  %v1413_v14 = vmul.f32 %v5372_v4, %v4639_v33 }
 0x2d1   :  { %v5754_v37 = vpop.permute.xlu0 %1646  ;;  %v5756_v27 = vpop.permute.xlu1 %1648 }
 0x2d2   :  { %8244 = vst [vmem:[#allocation152_spill] sm:$0xff] %v5754_v37  ;;  %8245 = vst [vmem:[#allocation153_spill] sm:$0xff] %v5756_v27 }
 0x2d3   :  { %1764 = vrot.lane.b32.xlu1 %v1411_v55, %s4508_s20  ;;  %1762 = vrot.lane.b32.xlu0 %v1410_v50, %s4508_s20  ;;  %v1414_v55 = vmul.f32 %v5380_v35, %v4636_v32  ;;  %v1415_v50 = vmul.f32 %v5380_v35, %v4639_v33 }
 0x2d5   :  { %v5764_v31 = vpop.permute.xlu0 %1650  ;;  %v5766_v29 = vpop.permute.xlu1 %1652 }
 0x2d6   :  { %8246 = vst [vmem:[#allocation154_spill] sm:$0xff] %v5764_v31  ;;  %8247 = vst [vmem:[#allocation155_spill] sm:$0xff] %v5766_v29 }
 0x2d7   :  { %1766 = vrot.lane.b32.xlu0 %v1412_v13, %s4508_s20  ;;  %1768 = vrot.lane.b32.xlu1 %v1413_v14, %s4508_s20  ;;  %v1416_v13 = vmul.f32 %v5388_v8, %v4636_v32  ;;  %v1417_v14 = vmul.f32 %v5388_v8, %v4639_v33 }
 0x2d9   :  { %v5774_v37 = vpop.permute.xlu0 %1654  ;;  %v5776_v27 = vpop.permute.xlu1 %1656 }
 0x2da   :  { %8248 = vst [vmem:[#allocation156_spill] sm:$0xff] %v5774_v37  ;;  %8249 = vst [vmem:[#allocation157_spill] sm:$0xff] %v5776_v27 }
 0x2db   :  { %1770 = vrot.lane.b32.xlu0 %v1414_v55, %s4508_s20  ;;  %1772 = vrot.lane.b32.xlu1 %v1415_v50, %s4508_s20  ;;  %v1418_v55 = vmul.f32 %v5396_v48, %v4636_v32  ;;  %v1419_v50 = vmul.f32 %v5396_v48, %v4639_v33 }
 0x2dd   :  { %v5784_v31 = vpop.permute.xlu0 %1658  ;;  %v5786_v29 = vpop.permute.xlu1 %1660 }
 0x2de   :  { %8250 = vst [vmem:[#allocation158_spill] sm:$0xff] %v5784_v31  ;;  %8251 = vst [vmem:[#allocation159_spill] sm:$0xff] %v5786_v29 }
 0x2df   :  { %1774 = vrot.lane.b32.xlu0 %v1416_v13, %s4508_s20  ;;  %1776 = vrot.lane.b32.xlu1 %v1417_v14, %s4508_s20  ;;  %v1420_v14 = vmul.f32 %v5404_v19, %v4636_v32 }
 0x2e1   :  { %v1663_v37 = vpop.permute.xlu0 %1662  ;;  %v1665_v27 = vpop.permute.xlu1 %1664 }
 0x2e2   :  { %v5799_v31 = vsel %vm1826_vm0, %v1663_v37, %v1665_v27 }
 0x2e3   :  { %8252 = vst [vmem:[#allocation160_spill] sm:$0xff] %v5799_v31  ;;  %1778 = vrot.lane.b32.xlu0 %v1418_v55, %s4508_s20  ;;  %1780 = vrot.lane.b32.xlu1 %v1419_v50, %s4508_s20  ;;  %v1422_v55 = vmul.f32 %v5412_v0, %v4636_v32  ;;  %v1423_v50 = vmul.f32 %v5412_v0, %v4639_v33 }
 0x2e5   :  { %v1667_v29 = vpop.permute.xlu0 %1666  ;;  %v1669_v13 = vpop.permute.xlu1 %1668 }
 0x2e6   :  { %v5808_v15 = vsel %vm1826_vm0, %v1667_v29, %v1669_v13 }
 0x2e7   :  { %8253 = vst [vmem:[#allocation161_spill] sm:$0xff] %v5808_v15  ;;  %1782 = vrot.lane.b32.xlu0 %v1420_v14, %s4508_s20  ;;  %1784 = vrot.lane.b32.xlu1 %v1421_v43, %s4508_s20  ;;  %v1424_v43 = vmul.f32 %v5420_v10, %v4636_v32  ;;  %v1425_v14 = vmul.f32 %v5420_v10, %v4639_v33 }
 0x2e9   :  { %v1671_v27 = vpop.permute.xlu0 %1670  ;;  %v1673_v37 = vpop.permute.xlu1 %1672 }
 0x2ea   :  { %v5817_v31 = vsel %vm1826_vm0, %v1671_v27, %v1673_v37 }
 0x2eb   :  { %8254 = vst [vmem:[#allocation162_spill] sm:$0xff] %v5817_v31  ;;  %1786 = vrot.lane.b32.xlu0 %v1422_v55, %s4508_s20  ;;  %1788 = vrot.lane.b32.xlu1 %v1423_v50, %s4508_s20  ;;  %v1426_v55 = vmul.f32 %v5366_v1, %v4649_v36  ;;  %v1427_v50 = vmul.f32 %v5366_v1, %v4659_v38 }
 0x2ed   :  { %v1675_v29 = vpop.permute.xlu0 %1674  ;;  %v1677_v13 = vpop.permute.xlu1 %1676 }
 0x2ee   :  { %v5826_v15 = vsel %vm1826_vm0, %v1675_v29, %v1677_v13  ;;  %v1428_v13 = vmul.f32 %v5372_v4, %v4649_v36 }
 0x2ef   :  { %8255 = vst [vmem:[#allocation163_spill] sm:$0xff] %v5826_v15  ;;  %1790 = vrot.lane.b32.xlu0 %v1424_v43, %s4508_s20  ;;  %1792 = vrot.lane.b32.xlu1 %v1425_v14, %s4508_s20  ;;  %v1429_v43 = vmul.f32 %v5372_v4, %v4659_v38  ;;  %v6046_v15 = vmul.f32 %v4610_v23, %v4677_v45 }
 0x2f1   :  { %v1679_v27 = vpop.permute.xlu0 %1678  ;;  %v1681_v37 = vpop.permute.xlu1 %1680 }
 0x2f2   :  { %v5835_v31 = vsel %vm1826_vm0, %v1679_v27, %v1681_v37  ;;  %v1430_v37 = vmul.f32 %v5380_v35, %v4649_v36 }
 0x2f3   :  { %8256 = vst [vmem:[#allocation164_spill] sm:$0xff] %v5835_v31  ;;  %1794 = vrot.lane.b32.xlu0 %v1426_v55, %s4508_s20  ;;  %1796 = vrot.lane.b32.xlu1 %v1427_v50, %s4508_s20  ;;  %v1431_v55 = vmul.f32 %v5380_v35, %v4659_v38  ;;  %v6042_v31 = vmul.f32 %v4610_v23, %v4667_v41 }
 0x2f5   :  { %v1683_v33 = vpop.permute.xlu0 %1682  ;;  %v1685_v29 = vpop.permute.xlu1 %1684 }
 0x2f6   :  { %v5844_v14 = vsel %vm1826_vm0, %v1683_v33, %v1685_v29  ;;  %v1432_v29 = vmul.f32 %v5388_v8, %v4649_v36 }
 0x2f7   :  { %8257 = vst [vmem:[#allocation165_spill] sm:$0xff] %v5844_v14  ;;  %1798 = vrot.lane.b32.xlu0 %v1428_v13, %s4508_s20  ;;  %1800 = vrot.lane.b32.xlu1 %v1429_v43, %s4508_s20  ;;  %v1433_v13 = vmul.f32 %v5388_v8, %v4659_v38  ;;  %v6038_v14 = vmul.f32 %v4854_v44, %v4681_v47 }
 0x2f9   :  { %v1687_v1 = vpop.permute.xlu0 %1686  ;;  %v1689_v27 = vpop.permute.xlu1 %1688 }
 0x2fa   :  { %v5853_v50 = vsel %vm1826_vm0, %v1687_v1, %v1689_v27  ;;  %v1434_v27 = vmul.f32 %v5396_v48, %v4649_v36 }
 0x2fb   :  { %8258 = vst [vmem:[#allocation166_spill] sm:$0xff] %v5853_v50  ;;  %1802 = vrot.lane.b32.xlu0 %v1430_v37, %s4508_s20  ;;  %1804 = vrot.lane.b32.xlu1 %v1431_v55, %s4508_s20  ;;  %v1435_v37 = vmul.f32 %v5396_v48, %v4659_v38  ;;  %v37_v48 = vld [vmem:[%s8051_s2] sm:$0xff] }
 0x2fd   :  { %v1691_v4 = vpop.permute.xlu0 %1690  ;;  %v1693_v33 = vpop.permute.xlu1 %1692 }
 0x2fe   :  { %v5862_v43 = vsel %vm1826_vm0, %v1691_v4, %v1693_v33  ;;  %v1436_v33 = vmul.f32 %v5404_v19, %v4649_v36 }
 0x2ff   :  { %8259 = vst [vmem:[#allocation167_spill] sm:$0xff] %v5862_v43  ;;  %1806 = vrot.lane.b32.xlu0 %v1432_v29, %s4508_s20  ;;  %1808 = vrot.lane.b32.xlu1 %v1433_v13, %s4508_s20  ;;  %v1437_v29 = vmul.f32 %v5404_v19, %v4659_v38  ;;  %v40_v19 = vld [vmem:[%s8051_s2 + $0x18] sm:$0xff] }
 0x301   :  { %v1695_v35 = vpop.permute.xlu0 %1694  ;;  %v1697_v1 = vpop.permute.xlu1 %1696 }
 0x302   :  { %v5871_v55 = vsel %vm1826_vm0, %v1695_v35, %v1697_v1  ;;  %v38_v35 = vld [vmem:[%s8051_s2 + $0x8] sm:$0xff] }
 0x303   :  { %8260 = vst [vmem:[#allocation168_spill] sm:$0xff] %v5871_v55  ;;  %1810 = vrot.lane.b32.xlu0 %v1434_v27, %s4508_s20  ;;  %1812 = vrot.lane.b32.xlu1 %v1435_v37, %s4508_s20  ;;  %v6034_v55 = vmul.f32 %v4854_v44, %v4679_v46 }
 0x305   :  { %v1699_v8 = vpop.permute.xlu0 %1698  ;;  %v1701_v4 = vpop.permute.xlu1 %1700 }
 0x306   :  { %v5880_v13 = vsel %vm1826_vm0, %v1699_v8, %v1701_v4  ;;  %v39_v8 = vld [vmem:[%s8051_s2 + $0x10] sm:$0xff] }
 0x307   :  { %8261 = vst [vmem:[#allocation169_spill] sm:$0xff] %v5880_v13  ;;  %1814 = vrot.lane.b32.xlu0 %v1436_v33, %s4508_s20  ;;  %1816 = vrot.lane.b32.xlu1 %v1437_v29, %s4508_s20 }
 0x309   :  { %v1703_v1 = vpop.permute.xlu0 %1702  ;;  %v1705_v27 = vpop.permute.xlu1 %1704 }
 0x30a   :  { %v5891_v37 = vsel %vm1826_vm0, %v1703_v1, %v1705_v27 }
 0x30b   :  { %8262 = vst [vmem:[#allocation170_spill] sm:$0xff] %v5891_v37  ;;  %2149 = vperm.xlu0 %4384, %v37_v48   ;;  %2154 = vperm.xlu1 %4385, %v38_v35   ;;  %v42_v48 = vld [vmem:[%s8051_s2 + $0x28] sm:$0xff]  ;;  %v41_v35 = vld [vmem:[%s8051_s2 + $0x20] sm:$0xff] }
 0x30d   :  { %v1707_v4 = vpop.permute.xlu0 %1706  ;;  %v1709_v33 = vpop.permute.xlu1 %1708 }
 0x30e   :  { %v5900_v29 = vsel %vm1826_vm0, %v1707_v4, %v1709_v33 }
 0x30f   :  { %8263 = vst [vmem:[#allocation171_spill] sm:$0xff] %v5900_v29  ;;  %2164 = vperm.xlu0 %4384, %v40_v19   ;;  %2159 = vperm.xlu1 %4385, %v39_v8   ;;  %v44_v19 = vld [vmem:[%s8051_s2 + $0x38] sm:$0xff]  ;;  %v43_v8 = vld [vmem:[%s8051_s2 + $0x30] sm:$0xff] }
 0x311   :  { %v1711_v1 = vpop.permute.xlu0 %1710  ;;  %v1713_v27 = vpop.permute.xlu1 %1712 }
 0x312   :  { %v5909_v37 = vsel %vm1826_vm0, %v1711_v1, %v1713_v27 }
 0x313   :  { %8264 = vst [vmem:[#allocation172_spill] sm:$0xff] %v5909_v37  ;;  %2174 = vperm.xlu0 %4384, %v42_v48   ;;  %2169 = vperm.xlu1 %4385, %v41_v35   ;;  %v46_v48 = vld [vmem:[%s8052_s3 + $0x8] sm:$0xff]  ;;  %v45_v35 = vld [vmem:[%s8052_s3] sm:$0xff] }
 0x315   :  { %v1715_v4 = vpop.permute.xlu0 %1714  ;;  %v1717_v33 = vpop.permute.xlu1 %1716 }
 0x316   :  { %v5918_v29 = vsel %vm1826_vm0, %v1715_v4, %v1717_v33 }
 0x317   :  { %8265 = vst [vmem:[#allocation173_spill] sm:$0xff] %v5918_v29  ;;  %2184 = vperm.xlu0 %4384, %v44_v19   ;;  %2179 = vperm.xlu1 %4385, %v43_v8   ;;  %v48_v19 = vld [vmem:[%s8052_s3 + $0x18] sm:$0xff]  ;;  %v47_v8 = vld [vmem:[%s8052_s3 + $0x10] sm:$0xff] }
 0x319   :  { %v1719_v1 = vpop.permute.xlu0 %1718  ;;  %v1721_v27 = vpop.permute.xlu1 %1720 }
 0x31a   :  { %v5927_v37 = vsel %vm1826_vm0, %v1719_v1, %v1721_v27 }
 0x31b   :  { %8266 = vst [vmem:[#allocation174_spill] sm:$0xff] %v5927_v37  ;;  %2322 = vperm.xlu0 %4384, %v46_v48   ;;  %2317 = vperm.xlu1 %4385, %v45_v35   ;;  %v50_v48 = vld [vmem:[%s8052_s3 + $0x28] sm:$0xff]  ;;  %v49_v35 = vld [vmem:[%s8052_s3 + $0x20] sm:$0xff] }
 0x31d   :  { %v1723_v4 = vpop.permute.xlu0 %1722  ;;  %v1725_v33 = vpop.permute.xlu1 %1724 }
 0x31e   :  { %v5936_v29 = vsel %vm1826_vm0, %v1723_v4, %v1725_v33 }
 0x31f   :  { %8267 = vst [vmem:[#allocation175_spill] sm:$0xff] %v5936_v29  ;;  %2332 = vperm.xlu0 %4384, %v48_v19   ;;  %2327 = vperm.xlu1 %4385, %v47_v8   ;;  %v52_v19 = vld [vmem:[%s8052_s3 + $0x38] sm:$0xff]  ;;  %v51_v8 = vld [vmem:[%s8052_s3 + $0x30] sm:$0xff] }
 0x321   :  { %v1727_v1 = vpop.permute.xlu0 %1726  ;;  %v1729_v27 = vpop.permute.xlu1 %1728 }
 0x322   :  { %v5945_v37 = vsel %vm1826_vm0, %v1727_v1, %v1729_v27 }
 0x323   :  { %8268 = vst [vmem:[#allocation176_spill] sm:$0xff] %v5945_v37  ;;  %2342 = vperm.xlu0 %4384, %v50_v48   ;;  %2337 = vperm.xlu1 %4385, %v49_v35   ;;  %v1439_v48 = vmul.f32 %v5412_v0, %v4659_v38  ;;  %v1438_v35 = vmul.f32 %v5412_v0, %v4649_v36 }
 0x325   :  { %v1731_v4 = vpop.permute.xlu0 %1730  ;;  %v1733_v33 = vpop.permute.xlu1 %1732 }
 0x326   :  { %v5954_v29 = vsel %vm1826_vm0, %v1731_v4, %v1733_v33 }
 0x327   :  { %8269 = vst [vmem:[#allocation177_spill] sm:$0xff] %v5954_v29  ;;  %2352 = vperm.xlu0 %4384, %v52_v19   ;;  %2347 = vperm.xlu1 %4385, %v51_v8   ;;  %v1441_v19 = vmul.f32 %v5420_v10, %v4659_v38  ;;  %v1440_v8 = vmul.f32 %v5420_v10, %v4649_v36 }
 0x329   :  { %v1735_v13 = vpop.permute.xlu0 %1734  ;;  %v1737_v1 = vpop.permute.xlu1 %1736 }
 0x32a   :  { %v5961_v27 = vsel %vm1826_vm0, %v1735_v13, %v1737_v1 }
 0x32b   :  { %8270 = vst [vmem:[#allocation178_spill] sm:$0xff] %v5961_v27  ;;  %1820 = vrot.lane.b32.xlu0 %v1439_v48, %s4508_s20  ;;  %1818 = vrot.lane.b32.xlu1 %v1438_v35, %s4508_s20 }
 0x32d   :  { %v1739_v37 = vpop.permute.xlu0 %1738  ;;  %v1741_v4 = vpop.permute.xlu1 %1740 }
 0x32e   :  { %v5970_v33 = vsel %vm1826_vm0, %v1739_v37, %v1741_v4 }
 0x32f   :  { %8271 = vst [vmem:[#allocation179_spill] sm:$0xff] %v5970_v33  ;;  %1824 = vrot.lane.b32.xlu0 %v1441_v19, %s4508_s20  ;;  %1822 = vrot.lane.b32.xlu1 %v1440_v8, %s4508_s20  ;;  %v8276_v8 = vlaneseq }
 0x331   :  { %v1743_v0 = vpop.permute.xlu0 %1742  ;;  %v1745_v13 = vpop.permute.xlu1 %1744  ;;  %v5987_v33 = vand.u32 127, %v8276_v8  ;;  %v311_v8 = vmul.f32 %v4750_v16, %v4677_v45 }
 0x332   :  { %v5975_v1 = vsel %vm1826_vm0, %v1743_v0, %v1745_v13 }
 0x333   :  { %8272 = vst [vmem:[#allocation180_spill] sm:$0xff] %v5975_v1  ;;  %8277 = vst [vmem:[#allocation184_spill] sm:$0xff] %v5987_v33  ;;  %v6008_v33 = vmul.f32 %v4615_v25, %v4677_v45  ;;  %v6030_v1 = vmul.f32 %v4854_v44, %v4677_v45 }
 0x335   :  { %v1747_v48 = vpop.permute.xlu0 %1746  ;;  %v1749_v35 = vpop.permute.xlu1 %1748 }
 0x336   :  { %v5978_v27 = vsel %vm1826_vm0, %v1747_v48, %v1749_v35  ;;  %v293_v48 = vmul.f32 %v4665_v40, %v4667_v41  ;;  %v309_v35 = vmul.f32 %v4750_v16, %v4667_v41 }
 0x337   :  { %8273 = vst [vmem:[#allocation181_spill] sm:$0xff] %v5978_v27  ;;  %v6026_v27 = vmul.f32 %v4854_v44, %v4667_v41  ;;  %v6061_v44 = vmul.f32 %v4630_v30, %v4667_v41 }
 0x339   :  { %v1751_v38 = vpop.permute.xlu0 %1750  ;;  %v1753_v29 = vpop.permute.xlu1 %1752 }
 0x33a   :  { %v5981_v10 = vsel %vm1826_vm0, %v1751_v38, %v1753_v29  ;;  %v5995_v29 = vmul.f32 %v4615_v25, %v4667_v41 }
 0x33b   :  { %8274 = vst [vmem:[#allocation182_spill] sm:$0xff] %v5981_v10  ;;  %v6022_v10 = vmul.f32 %v4615_v25, %v4681_v47 }
 0x33d   :  { %v1755_v37 = vpop.permute.xlu0 %1754  ;;  %v1757_v4 = vpop.permute.xlu1 %1756 }
 0x33e   :  { %v5984_v19 = vsel %vm1826_vm0, %v1755_v37, %v1757_v4  ;;  %v295_v37 = vmul.f32 %v4665_v40, %v4677_v45  ;;  %v299_v4 = vmul.f32 %v4665_v40, %v4679_v46 }
 0x33f   :  { %8275 = vst [vmem:[#allocation183_spill] sm:$0xff] %v5984_v19  ;;  %v303_v19 = vmul.f32 %v4665_v40, %v4681_v47  ;;  %v6065_v40 = vmul.f32 %v4630_v30, %v4677_v45 }
 0x340   :  { %v6145_v5 = vadd.f32 %v967_v12, %v299_v4  ;;  %v8291_v4 = vld [vmem:[#allocation22_spill] sm:$0xff]  ;;  %v6174_v12 = vsel %vm961_vm1, %v8295_v3, %v8294_v2  ;;  %v8306_v3 = vld [vmem:[#allocation20_spill] sm:$0xff] }
 0x341   :  { %v1759_v0 = vpop.permute.xlu0 %1758  ;;  %v1761_v13 = vpop.permute.xlu1 %1760  ;;  %8280 = vst [vmem:[#allocation187_spill] sm:$0xff] %v6065_v40  ;;  %v8304_v2 = vld [vmem:[#allocation34_spill] sm:$0xff] }
 0x342   :  { %v5998_v38 = vsel %vm1826_vm0, %v1759_v0, %v1761_v13  ;;  %v315_v0 = vmul.f32 %v4750_v16, %v4679_v46  ;;  %v319_v13 = vmul.f32 %v4750_v16, %v4681_v47  ;;  %v6057_v16 = vmul.f32 %v4610_v23, %v4681_v47 }
 0x343   :  { %8278 = vst [vmem:[#allocation185_spill] sm:$0xff] %v5998_v38  ;;  %v6018_v38 = vmul.f32 %v4615_v25, %v4679_v46  ;;  %v6053_v25 = vmul.f32 %v4610_v23, %v4679_v46  ;;  %v6081_v23 = vmul.f32 %v4636_v32, %v4677_v45 }
 0x345   :  { %v1763_v43 = vpop.permute.xlu0 %1762  ;;  %v1765_v50 = vpop.permute.xlu1 %1764 }
 0x346   :  { %v6049_v28 = vsel %vm1826_vm0, %v1763_v43, %v1765_v50  ;;  %v6069_v50 = vmul.f32 %v4630_v30, %v4679_v46  ;;  %v6073_v43 = vmul.f32 %v4630_v30, %v4681_v47  ;;  %v6091_v30 = vmul.f32 %v4636_v32, %v4679_v46 }
 0x347   :  { %8279 = vst [vmem:[#allocation186_spill] sm:$0xff] %v6049_v28  ;;  %v6077_v28 = vmul.f32 %v4636_v32, %v4667_v41  ;;  %v969_v41 = vsel %vm961_vm1, %v4958_v18, %v4956_v11  ;;  %v8286_v11 = vld [vmem:[#allocation18_spill] sm:$0xff]  ;;  %v8287_v18 = vld [vmem:[#allocation19_spill] sm:$0xff] }
 0x348   :  { %8281 = vst [vmem:[#allocation188_spill] sm:$0xff] %v6069_v50  ;;  %8282 = vst [vmem:[#allocation189_spill] sm:$0xff] %v6073_v43  ;;  %v965_v50 = vsel %vm961_vm1, %v4918_v24, %v4916_v22  ;;  %v6095_v43 = vmul.f32 %v4636_v32, %v4681_v47  ;;  %v6110_v22 = vmul.f32 %v4649_v36, %v4677_v45 }
 0x349   :  { %8283 = vst [vmem:[#allocation190_spill] sm:$0xff] %v6077_v28  ;;  %v6097_v28 = vpop.permute.xlu0 %1766  ;;  %v6099_v40 = vpop.permute.xlu1 %1768  ;;  %v6114_v24 = vmul.f32 %v4649_v36, %v4679_v46  ;;  %v6131_v45 = vmul.f32 %v4649_v36, %v4681_v47  ;;  %v6133_v46 = vadd.f32 %v964_v39, %v293_v48  ;;  %v6135_v53 = vadd.f32 %v965_v50, %v295_v37 }
 0x34a   :  { %8284 = vst [vmem:[#allocation191_spill] sm:$0xff] %v6097_v28  ;;  %8285 = vst [vmem:[#allocation192_spill] sm:$0xff] %v6099_v40  ;;  %v6119_v28 = vsel %vm961_vm1, %v4888_v61, %v4886_v59  ;;  %v6140_v59 = vsel %vm961_vm1, %v4928_v20, %v4926_v9  ;;  %v972_v61 = vsel %vm961_vm1, %v4988_v26, %v4986_v21  ;;  %v8289_v21 = vld [vmem:[#allocation12_spill] sm:$0xff]  ;;  %v8290_v26 = vld [vmem:[#allocation13_spill] sm:$0xff] }
 0x34b   :  { %v6150_v47 = vsel %vm961_vm1, %v4948_v62, %v4946_v58  ;;  %v975_v9 = vsel %vm961_vm1, %v8287_v18, %v8286_v11  ;;  %v6158_v48 = vadd.f32 %v969_v41, %v303_v19  ;;  %v6163_v37 = vsel %vm961_vm1, %v8290_v26, %v8289_v21  ;;  %v8292_v58 = vld [vmem:[#allocation23_spill] sm:$0xff]  ;;  %v8296_v19 = vld [vmem:[#allocation28_spill] sm:$0xff]  ;;  %v8297_v41 = vld [vmem:[#allocation29_spill] sm:$0xff] }
 0x34c   :  { %v977_v62 = vsel %vm961_vm1, %v8292_v58, %v8291_v4  ;;  %v6176_v11 = vadd.f32 %v972_v61, %v309_v35  ;;  %v980_v18 = vsel %vm961_vm1, %v8297_v41, %v8296_v19  ;;  %v8298_v21 = vld [vmem:[#allocation30_spill] sm:$0xff]  ;;  %v8299_v26 = vld [vmem:[#allocation31_spill] sm:$0xff]  ;;  %v8301_v4 = vld [vmem:[#allocation16_spill] sm:$0xff]  ;;  %v6191_v58 = vadd.f32 %v975_v9, %v315_v0 }
 0x34d   :  { %v1771_v20 = vpop.permute.xlu0 %1770  ;;  %v1773_v39 = vpop.permute.xlu1 %1772  ;;  %8288 = vst [vmem:[#allocation18_spill] sm:$0xff] %v6158_v48  ;;  %v981_v40 = vsel %vm961_vm1, %v8299_v26, %v8298_v21  ;;  %v6184_v48 = vadd.f32 %v973_v6, %v311_v8  ;;  %v8305_v35 = vld [vmem:[#allocation35_spill] sm:$0xff]  ;;  %v6201_v41 = vadd.f32 %v977_v62, %v319_v13  ;;  %v8309_v8 = vld [vmem:[#allocation24_spill] sm:$0xff]  ;;  %v8310_v6 = vld [vmem:[#allocation25_spill] sm:$0xff]  ;;  %v6221_v13 = vadd.f32 %v980_v18, %v5995_v29 }
 0x34e   :  { %v6169_v50 = vsel %vm1826_vm0, %v1771_v20, %v1773_v39  ;;  %v8302_v20 = vld [vmem:[#allocation17_spill] sm:$0xff]  ;;  %8303 = vst [vmem:[#allocation13_spill] sm:$0xff] %v6191_v58  ;;  %v983_v61 = vsel %vm961_vm1, %v8305_v35, %v8304_v2  ;;  %v6206_v21 = vsel %vm961_vm1, %v8310_v6, %v8309_v8  ;;  %v8311_v26 = vld [vmem:[#allocation38_spill] sm:$0xff]  ;;  %v8316_v35 = vld [vmem:[#allocation27_spill] sm:$0xff]  ;;  %v6224_v62 = vadd.f32 %v981_v40, %v6008_v33 }
 0x34f   :  { %8293 = vst [vmem:[#allocation19_spill] sm:$0xff] %v6169_v50  ;;  %8300 = vst [vmem:[#allocation12_spill] sm:$0xff] %v6184_v48  ;;  %v6189_v39 = vsel %vm961_vm1, %v8302_v20, %v8301_v4  ;;  %v8307_v50 = vld [vmem:[#allocation21_spill] sm:$0xff]  ;;  %v8312_v4 = vld [vmem:[#allocation39_spill] sm:$0xff] }
 0x350   :  { %v6199_v19 = vsel %vm961_vm1, %v8307_v50, %v8306_v3  ;;  %8308 = vst [vmem:[#allocation22_spill] sm:$0xff] %v6201_v41  ;;  %v985_v0 = vsel %vm961_vm1, %v8312_v4, %v8311_v26  ;;  %v8315_v2 = vld [vmem:[#allocation26_spill] sm:$0xff]  ;;  %8317 = vst [vmem:[#allocation15_spill] sm:$0xff] %v6221_v13  ;;  %v8319_v3 = vld [vmem:[#allocation44_spill] sm:$0xff] }
 0x351   :  { %v6211_v9 = vpop.permute.xlu0 %1774  ;;  %v6213_v20 = vpop.permute.xlu1 %1776  ;;  %v6218_v50 = vsel %vm961_vm1, %v8316_v35, %v8315_v2  ;;  %8318 = vst [vmem:[#allocation28_spill] sm:$0xff] %v6224_v62  ;;  %v8320_v8 = vld [vmem:[#allocation45_spill] sm:$0xff]  ;;  %v8321_v26 = vld [vmem:[#allocation32_spill] sm:$0xff]  ;;  %v8326_v40 = vld [vmem:[#allocation46_spill] sm:$0xff]  ;;  %v6248_v18 = vadd.f32 %v985_v0, %v6022_v10 }
 0x352   :  { %8313 = vst [vmem:[#allocation23_spill] sm:$0xff] %v6211_v9  ;;  %8314 = vst [vmem:[#allocation14_spill] sm:$0xff] %v6213_v20  ;;  %v988_v6 = vsel %vm961_vm1, %v8320_v8, %v8319_v3  ;;  %v8322_v4 = vld [vmem:[#allocation33_spill] sm:$0xff]  ;;  %v6235_v20 = vadd.f32 %v983_v61, %v6018_v38  ;;  %v8324_v2 = vld [vmem:[#allocation36_spill] sm:$0xff]  ;;  %v6245_v33 = vsel %vm961_vm1, %v8326_v40, %v5156_v34 }
 0x353   :  { %v6232_v9 = vsel %vm961_vm1, %v8322_v4, %v8321_v26  ;;  %v8325_v35 = vld [vmem:[#allocation37_spill] sm:$0xff]  ;;  %8327 = vst [vmem:[#allocation30_spill] sm:$0xff] %v6248_v18  ;;  %v6253_v3 = vsel %vm961_vm1, %v5178_v42, %v5176_v49  ;;  %v6258_v38 = vld [vmem:[%s8053_s4] sm:$0xff]  ;;  %v6263_v61 = vld [vmem:[%s8053_s4 + $0x8] sm:$0xff]  ;;  %v6281_v4 = vadd.f32 %v988_v6, %v6026_v27  ;;  %v996_v6 = vsel %vm961_vm1, %v5228_v60, %v5226_v54 }
 0x354   :  { %8323 = vst [vmem:[#allocation29_spill] sm:$0xff] %v6235_v20  ;;  %v6240_v29 = vsel %vm961_vm1, %v8325_v35, %v8324_v2  ;;  %8328 = vst [vmem:[#allocation31_spill] sm:$0xff] %v6258_v38  ;;  %v6268_v34 = vld [vmem:[%s8053_s4 + $0x10] sm:$0xff]  ;;  %v8332_v0 = vld [vmem:[#allocation41_spill] sm:$0xff]  ;;  %v6286_v2 = vsel %vm961_vm1, %v5198_v51, %v5196_v56  ;;  %v4509_v56 = vmov 0.0   ;;  %v6437_v51 = vadd.f32 %v6245_v33, %v6030_v1 }
 0x355   :  { %8329 = vst [vmem:[#allocation16_spill] sm:$0xff] %v6263_v61  ;;  %8330 = vst [vmem:[#allocation17_spill] sm:$0xff] %v6268_v34  ;;  %v8331_v10 = vld [vmem:[#allocation40_spill] sm:$0xff]  ;;  %v8333_v42 = vld [vmem:[#allocation42_spill] sm:$0xff]  ;;  %v6288_v35 = vpop.permute.xlu0 %1778  ;;  %v6290_v40 = vpop.permute.xlu1 %1780  ;;  %v6472_v33 = vadd.f32 %v6253_v3, %v6034_v55  ;;  %v6499_v3 = vadd.f32 %v6286_v2, %v6038_v14 }
 0x356   :  { %v6273_v49 = vsel %vm961_vm1, %v8332_v0, %v8331_v10  ;;  %v8334_v8 = vld [vmem:[#allocation43_spill] sm:$0xff]  ;;  %8335 = vst [vmem:[#allocation34_spill] sm:$0xff] %v6281_v4  ;;  %v6295_v10 = vld [vmem:[%s8053_s4 + $0x18] sm:$0xff]  ;;  %v6300_v0 = vld [vmem:[%s8053_s4 + $0x20] sm:$0xff] }
 0x357   :  { %v6278_v26 = vsel %vm961_vm1, %v8334_v8, %v8333_v42  ;;  %8336 = vst [vmem:[#allocation35_spill] sm:$0xff] %v6295_v10  ;;  %8337 = vst [vmem:[#allocation20_spill] sm:$0xff] %v6300_v0  ;;  %v6305_v27 = vld [vmem:[%s8053_s4 + $0x28] sm:$0xff]  ;;  %v997_v42 = vsel %vm961_vm1, %v5238_v63, %v5236_v57  ;;  %v6448_v8 = vsel %vm1826_vm0, %v6288_v35, %v6290_v40  ;;  %v6458_v1 = vld [vmem:[%s8053_s4 + $0x38] sm:$0xff] }
 0x358   :  { %8338 = vst [vmem:[#allocation21_spill] sm:$0xff] %v6305_v27  ;;  %2754 = vst.msk [vmem:[#allocation2 + $0x8] sm:$0xff] %vm2753_vm2, %v4509_v56  ;;  %v6463_v54 = vld [vmem:[%s8053_s4 + $0x40] sm:$0xff]  ;;  %v8344_v57 = vld [vmem:[#allocation47_spill] sm:$0xff] }
 0x359   :  { %2756 = vst.msk [vmem:[#allocation2 + $0x18] sm:$0xff] %vm2753_vm2, %v4509_v56  ;;  %2758 = vst.msk [vmem:[#allocation2 + $0x28] sm:$0xff] %vm2753_vm2, %v4509_v56  ;;  %v8345_v60 = vld [vmem:[#allocation48_spill] sm:$0xff]  ;;  %v8347_v35 = vld [vmem:[#allocation49_spill] sm:$0xff]  ;;  %v1785_v34 = vpop.permute.xlu1 %1784 }
 0x35a   :  { %2760 = vst.msk [vmem:[#allocation2 + $0x38] sm:$0xff] %vm2753_vm2, %v4509_v56  ;;  %2762 = vst.msk [vmem:[#allocation2 + $0x48] sm:$0xff] %vm2753_vm2, %v4509_v56  ;;  %v6468_v63 = vsel %vm961_vm1, %v8345_v60, %v8344_v57  ;;  %v8348_v40 = vld [vmem:[#allocation50_spill] sm:$0xff]  ;;  %v6485_v61 = vld [vmem:[%s8053_s4 + $0x48] sm:$0xff] }
 0x35b   :  { %2764 = vst.msk [vmem:[#allocation2 + $0x58] sm:$0xff] %vm2753_vm2, %v4509_v56  ;;  %2766 = vst.msk [vmem:[#allocation2 + $0x68] sm:$0xff] %vm2753_vm2, %v4509_v56  ;;  %v6477_v27 = vsel %vm961_vm1, %v8348_v40, %v8347_v35  ;;  %v6490_v57 = vld [vmem:[%s8053_s4 + $0x50] sm:$0xff]  ;;  %v6495_v55 = vld [vmem:[%s8053_s4 + $0x58] sm:$0xff] }
 0x35c   :  { %2768 = vst.msk [vmem:[#allocation2 + $0x78] sm:$0xff] %vm2753_vm2, %v4509_v56  ;;  %2770 = vst.msk [vmem:[#allocation2 + $0x88] sm:$0xff] %vm2753_vm2, %v4509_v56  ;;  %v8356_v35 = vld [vmem:[#allocation53_spill] sm:$0xff]  ;;  %v8357_v40 = vld [vmem:[#allocation54_spill] sm:$0xff] }
 0x35d   :  { %2772 = vst.msk [vmem:[#allocation2 + $0x98] sm:$0xff] %vm2753_vm2, %v4509_v56  ;;  %2774 = vst.msk [vmem:[#allocation2 + $0xa8] sm:$0xff] %vm2753_vm2, %v4509_v56  ;;  %v6522_v14 = vld [vmem:[%s8053_s4 + $0x68] sm:$0xff]  ;;  %v6527_v2 = vld [vmem:[%s8053_s4 + $0x70] sm:$0xff] }
 0x35e   :  { %2776 = vst.msk [vmem:[#allocation2 + $0xb8] sm:$0xff] %vm2753_vm2, %v4509_v56  ;;  %2778 = vst.msk [vmem:[#allocation2 + $0xc8] sm:$0xff] %vm2753_vm2, %v4509_v56  ;;  %v6949_v58 = vld [vmem:[%s8055_s6 + $0x58] sm:$0xff] }
 0x35f   :  { %2780 = vst.msk [vmem:[#allocation2 + $0xd8] sm:$0xff] %vm2753_vm2, %v4509_v56  ;;  %2782 = vst.msk [vmem:[#allocation2 + $0xe8] sm:$0xff] %vm2753_vm2, %v4509_v56 }
 0x360   :  { %2784 = vst.msk [vmem:[#allocation2 + $0xf8] sm:$0xff] %vm2753_vm2, %v4509_v56  ;;  %2786 = vst.msk [vmem:[#allocation2 + $0x108] sm:$0xff] %vm2753_vm2, %v4509_v56 }
 0x361   :  { %2788 = vst.msk [vmem:[#allocation2 + $0x118] sm:$0xff] %vm2753_vm2, %v4509_v56  ;;  %2790 = vst.msk [vmem:[#allocation2 + $0x128] sm:$0xff] %vm2753_vm2, %v4509_v56 }
 0x362   :  { %2792 = vst.msk [vmem:[#allocation2 + $0x138] sm:$0xff] %vm2753_vm2, %v4509_v56  ;;  %2794 = vst.msk [vmem:[#allocation2 + $0x148] sm:$0xff] %vm2753_vm2, %v4509_v56 }
 0x363   :  { %2796 = vst.msk [vmem:[#allocation2 + $0x158] sm:$0xff] %vm2753_vm2, %v4509_v56  ;;  %2798 = vst.msk [vmem:[#allocation2 + $0x168] sm:$0xff] %vm2753_vm2, %v4509_v56 }
 0x364   :  { %2800 = vst.msk [vmem:[#allocation2 + $0x178] sm:$0xff] %vm2753_vm2, %v4509_v56  ;;  %2802 = vst.msk [vmem:[#allocation2 + $0x188] sm:$0xff] %vm2753_vm2, %v4509_v56 }
 0x365   :  { %2804 = vst.msk [vmem:[#allocation2 + $0x198] sm:$0xff] %vm2753_vm2, %v4509_v56  ;;  %2806 = vst.msk [vmem:[#allocation2 + $0x1a8] sm:$0xff] %vm2753_vm2, %v4509_v56 }
 0x366   :  { %2808 = vst.msk [vmem:[#allocation2 + $0x1b8] sm:$0xff] %vm2753_vm2, %v4509_v56  ;;  %2810 = vst.msk [vmem:[#allocation2 + $0x1c8] sm:$0xff] %vm2753_vm2, %v4509_v56 }
 0x367   :  { %2812 = vst.msk [vmem:[#allocation2 + $0x1d8] sm:$0xff] %vm2753_vm2, %v4509_v56  ;;  %2814 = vst.msk [vmem:[#allocation2 + $0x1e8] sm:$0xff] %vm2753_vm2, %v4509_v56 }
 0x368   :  { %2816 = vst.msk [vmem:[#allocation2 + $0x1f8] sm:$0xff] %vm2753_vm2, %v4509_v56  ;;  %2818 = vst.msk [vmem:[#allocation2 + $0x208] sm:$0xff] %vm2753_vm2, %v4509_v56 }
 0x369   :  { %2820 = vst.msk [vmem:[#allocation2 + $0x218] sm:$0xff] %vm2753_vm2, %v4509_v56  ;;  %2822 = vst.msk [vmem:[#allocation2 + $0x228] sm:$0xff] %vm2753_vm2, %v4509_v56 }
 0x36a   :  { %2824 = vst.msk [vmem:[#allocation2 + $0x238] sm:$0xff] %vm2753_vm2, %v4509_v56  ;;  %2826 = vst.msk [vmem:[#allocation2 + $0x248] sm:$0xff] %vm2753_vm2, %v4509_v56 }
 0x36b   :  { %2828 = vst.msk [vmem:[#allocation2 + $0x258] sm:$0xff] %vm2753_vm2, %v4509_v56  ;;  %2830 = vst.msk [vmem:[#allocation2 + $0x268] sm:$0xff] %vm2753_vm2, %v4509_v56 }
 0x36c   :  { %2832 = vst.msk [vmem:[#allocation2 + $0x278] sm:$0xff] %vm2753_vm2, %v4509_v56  ;;  %2834 = vst.msk [vmem:[#allocation2 + $0x288] sm:$0xff] %vm2753_vm2, %v4509_v56 }
 0x36d   :  { %2836 = vst.msk [vmem:[#allocation2 + $0x298] sm:$0xff] %vm2753_vm2, %v4509_v56  ;;  %2838 = vst.msk [vmem:[#allocation2 + $0x2a8] sm:$0xff] %vm2753_vm2, %v4509_v56 }
 0x36e   :  { %2840 = vst.msk [vmem:[#allocation2 + $0x2b8] sm:$0xff] %vm2753_vm2, %v4509_v56  ;;  %2842 = vst.msk [vmem:[#allocation2 + $0x2c8] sm:$0xff] %vm2753_vm2, %v4509_v56 }
 0x36f   :  { %2844 = vst.msk [vmem:[#allocation2 + $0x2d8] sm:$0xff] %vm2753_vm2, %v4509_v56  ;;  %2846 = vst.msk [vmem:[#allocation2 + $0x2e8] sm:$0xff] %vm2753_vm2, %v4509_v56 }
 0x370   :  { %2848 = vst.msk [vmem:[#allocation2 + $0x2f8] sm:$0xff] %vm2753_vm2, %v4509_v56  ;;  %2850 = vst.msk [vmem:[#allocation2 + $0x308] sm:$0xff] %vm2753_vm2, %v4509_v56 }
 0x371   :  { %2852 = vst.msk [vmem:[#allocation2 + $0x318] sm:$0xff] %vm2753_vm2, %v4509_v56  ;;  %2854 = vst.msk [vmem:[#allocation2 + $0x328] sm:$0xff] %vm2753_vm2, %v4509_v56 }
 0x372   :  { %2856 = vst.msk [vmem:[#allocation2 + $0x338] sm:$0xff] %vm2753_vm2, %v4509_v56  ;;  %2858 = vst.msk [vmem:[#allocation2 + $0x348] sm:$0xff] %vm2753_vm2, %v4509_v56 }
 0x373   :  { %2860 = vst.msk [vmem:[#allocation2 + $0x358] sm:$0xff] %vm2753_vm2, %v4509_v56  ;;  %2862 = vst.msk [vmem:[#allocation2 + $0x368] sm:$0xff] %vm2753_vm2, %v4509_v56 }
 0x374   :  { %2864 = vst.msk [vmem:[#allocation2 + $0x378] sm:$0xff] %vm2753_vm2, %v4509_v56  ;;  %2866 = vst.msk [vmem:[#allocation2 + $0x388] sm:$0xff] %vm2753_vm2, %v4509_v56 }
 0x375   :  { %2868 = vst.msk [vmem:[#allocation2 + $0x398] sm:$0xff] %vm2753_vm2, %v4509_v56  ;;  %2870 = vst.msk [vmem:[#allocation2 + $0x3a8] sm:$0xff] %vm2753_vm2, %v4509_v56 }
 0x376   :  { %2872 = vst.msk [vmem:[#allocation2 + $0x3b8] sm:$0xff] %vm2753_vm2, %v4509_v56  ;;  %2874 = vst.msk [vmem:[#allocation2 + $0x3c8] sm:$0xff] %vm2753_vm2, %v4509_v56 }
 0x377   :  { %2876 = vst.msk [vmem:[#allocation2 + $0x3d8] sm:$0xff] %vm2753_vm2, %v4509_v56  ;;  %2878 = vst.msk [vmem:[#allocation2 + $0x3e8] sm:$0xff] %vm2753_vm2, %v4509_v56 }
 0x378   :  { %2880 = vst.msk [vmem:[#allocation2 + $0x3f8] sm:$0xff] %vm2753_vm2, %v4509_v56  ;;  %8339 = vst [vmem:[#allocation24_spill] sm:$0xff] %v6437_v51  ;;  %v6453_v56 = vld [vmem:[%s8053_s4 + $0x30] sm:$0xff]  ;;  %v6751_v51 = vld [vmem:[%s8054_s5 + $0x20] sm:$0xff] }
 0x379   :  { %8340 = vst [vmem:[#allocation25_spill] sm:$0xff] %v6448_v8  ;;  %8341 = vst [vmem:[#allocation38_spill] sm:$0xff] %v6453_v56  ;;  %v8397_v8 = vld [vmem:[#allocation71_spill] sm:$0xff] }
 0x37a   :  { %8342 = vst [vmem:[#allocation39_spill] sm:$0xff] %v6458_v1  ;;  %8343 = vst [vmem:[#allocation26_spill] sm:$0xff] %v6463_v54  ;;  %v8349_v1 = vld [vmem:[#allocation57_spill] sm:$0xff] }
 0x37b   :  { %8346 = vst [vmem:[#allocation27_spill] sm:$0xff] %v6472_v33  ;;  %v999_v10 = vsel %vm961_vm1, %v8349_v1, %v5248_v7  ;;  %8350 = vst [vmem:[#allocation44_spill] sm:$0xff] %v6485_v61  ;;  %v8354_v7 = vld [vmem:[#allocation51_spill] sm:$0xff]  ;;  %v8355_v1 = vld [vmem:[#allocation52_spill] sm:$0xff]  ;;  %v6509_v61 = vsel %vm961_vm1, %v8357_v40, %v8356_v35 }
 0x37c   :  { %8351 = vst [vmem:[#allocation45_spill] sm:$0xff] %v6490_v57  ;;  %8352 = vst [vmem:[#allocation32_spill] sm:$0xff] %v6495_v55  ;;  %v6504_v60 = vsel %vm961_vm1, %v8355_v1, %v8354_v7  ;;  %v8358_v57 = vld [vmem:[#allocation60_spill] sm:$0xff]  ;;  %v8359_v54 = vld [vmem:[#allocation61_spill] sm:$0xff]  ;;  %v6530_v7 = vadd.f32 %v996_v6, %v6042_v31 }
 0x37d   :  { %8353 = vst [vmem:[#allocation33_spill] sm:$0xff] %v6499_v3  ;;  %v1001_v56 = vsel %vm961_vm1, %v8359_v54, %v8358_v57  ;;  %v6517_v55 = vld [vmem:[%s8053_s4 + $0x60] sm:$0xff]  ;;  %8361 = vst [vmem:[#allocation37_spill] sm:$0xff] %v6522_v14  ;;  %v6533_v54 = vadd.f32 %v997_v42, %v6046_v15  ;;  %v8366_v1 = vld [vmem:[#allocation67_spill] sm:$0xff]  ;;  %v1783_v14 = vpop.permute.xlu0 %1782 }
 0x37e   :  { %8360 = vst [vmem:[#allocation36_spill] sm:$0xff] %v6517_v55  ;;  %8362 = vst [vmem:[#allocation46_spill] sm:$0xff] %v6527_v2  ;;  %v8365_v57 = vld [vmem:[#allocation66_spill] sm:$0xff]  ;;  %v8367_v40 = vld [vmem:[#allocation68_spill] sm:$0xff]  ;;  %v6568_v38 = vsel %vm1826_vm0, %v1783_v14, %v1785_v34  ;;  %v6591_v14 = vadd.f32 %v1001_v56, %v6057_v16 }
 0x37f   :  { %8363 = vst [vmem:[#allocation40_spill] sm:$0xff] %v6530_v7  ;;  %8364 = vst [vmem:[#allocation41_spill] sm:$0xff] %v6533_v54  ;;  %v1004_v35 = vsel %vm961_vm1, %v8366_v1, %v8365_v57  ;;  %v8368_v55 = vld [vmem:[#allocation69_spill] sm:$0xff]  ;;  %v6549_v15 = vld [vmem:[%s8053_s4 + $0x80] sm:$0xff]  ;;  %v6562_v57 = vadd.f32 %v999_v10, %v6053_v25  ;;  %v1789_v54 = vpop.permute.xlu1 %1788 }
 0x380   :  { %v1005_v0 = vsel %vm961_vm1, %v8368_v55, %v8367_v40  ;;  %v6544_v2 = vld [vmem:[%s8053_s4 + $0x78] sm:$0xff]  ;;  %8370 = vst [vmem:[#allocation43_spill] sm:$0xff] %v6549_v15  ;;  %v6554_v31 = vld [vmem:[%s8053_s4 + $0x88] sm:$0xff]  ;;  %v8373_v42 = vld [vmem:[#allocation56_spill] sm:$0xff] }
 0x381   :  { %8369 = vst [vmem:[#allocation42_spill] sm:$0xff] %v6544_v2  ;;  %8371 = vst [vmem:[#allocation47_spill] sm:$0xff] %v6554_v31  ;;  %v8372_v6 = vld [vmem:[#allocation55_spill] sm:$0xff]  ;;  %v8375_v1 = vld [vmem:[#allocation72_spill] sm:$0xff] }
 0x382   :  { %v6559_v55 = vsel %vm961_vm1, %v8373_v42, %v8372_v6  ;;  %8374 = vst [vmem:[#allocation48_spill] sm:$0xff] %v6562_v57  ;;  %v8376_v40 = vld [vmem:[#allocation73_spill] sm:$0xff]  ;;  %8377 = vst [vmem:[#allocation49_spill] sm:$0xff] %v6568_v38  ;;  %v6573_v15 = vld [vmem:[%s8053_s4 + $0x90] sm:$0xff]  ;;  %v1787_v57 = vpop.permute.xlu0 %1786 }
 0x383   :  { %v1007_v2 = vsel %vm961_vm1, %v8376_v40, %v8375_v1  ;;  %8378 = vst [vmem:[#allocation50_spill] sm:$0xff] %v6573_v15  ;;  %v6578_v6 = vld [vmem:[%s8053_s4 + $0x98] sm:$0xff]  ;;  %v6583_v25 = vld [vmem:[%s8053_s4 + $0xa0] sm:$0xff]  ;;  %v8382_v42 = vld [vmem:[#allocation59_spill] sm:$0xff]  ;;  %v6686_v7 = vsel %vm1826_vm0, %v1787_v57, %v1789_v54 }
 0x384   :  { %8379 = vst [vmem:[#allocation57_spill] sm:$0xff] %v6578_v6  ;;  %8380 = vst [vmem:[#allocation51_spill] sm:$0xff] %v6583_v25  ;;  %v8381_v10 = vld [vmem:[#allocation58_spill] sm:$0xff]  ;;  %v8385_v40 = vld [vmem:[#allocation63_spill] sm:$0xff] }
 0x385   :  { %v6588_v34 = vsel %vm961_vm1, %v8382_v42, %v8381_v10  ;;  %8383 = vst [vmem:[#allocation52_spill] sm:$0xff] %v6591_v14  ;;  %v8384_v1 = vld [vmem:[#allocation62_spill] sm:$0xff]  ;;  %v8386_v15 = vld [vmem:[#allocation76_spill] sm:$0xff]  ;;  %v8387_v6 = vld [vmem:[#allocation77_spill] sm:$0xff] }
 0x386   :  { %v6596_v31 = vsel %vm961_vm1, %v8385_v40, %v8384_v1  ;;  %v1009_v38 = vsel %vm961_vm1, %v8387_v6, %v8386_v15  ;;  %v6604_v25 = vld [vmem:[%s8053_s4 + $0xa8] sm:$0xff]  ;;  %v6609_v10 = vld [vmem:[%s8053_s4 + $0xb0] sm:$0xff]  ;;  %v6614_v16 = vld [vmem:[%s8053_s4 + $0xb8] sm:$0xff]  ;;  %v6622_v15 = vadd.f32 %v1004_v35, %v6061_v44  ;;  %8418 = vst [vmem:[#allocation59_spill] sm:$0xff] %v6686_v7 }
 0x387   :  { %8388 = vst [vmem:[#allocation53_spill] sm:$0xff] %v6604_v25  ;;  %8389 = vst [vmem:[#allocation54_spill] sm:$0xff] %v6609_v10  ;;  %v8391_v56 = vld [vmem:[#allocation64_spill] sm:$0xff]  ;;  %v8392_v42 = vld [vmem:[#allocation65_spill] sm:$0xff] }
 0x388   :  { %8390 = vst [vmem:[#allocation60_spill] sm:$0xff] %v6614_v16  ;;  %v6619_v1 = vsel %vm961_vm1, %v8392_v42, %v8391_v56  ;;  %8393 = vst [vmem:[#allocation61_spill] sm:$0xff] %v6622_v15  ;;  %v8394_v6 = vld [vmem:[#allocation187_spill] sm:$0xff]  ;;  %v8396_v25 = vld [vmem:[#allocation70_spill] sm:$0xff] }
 0x389   :  { %v6625_v40 = vadd.f32 %v1005_v0, %v8394_v6  ;;  %v6630_v10 = vsel %vm961_vm1, %v8397_v8, %v8396_v25  ;;  %v6635_v16 = vld [vmem:[%s8053_s4 + $0xc0] sm:$0xff]  ;;  %v6640_v56 = vld [vmem:[%s8053_s4 + $0xc8] sm:$0xff]  ;;  %v6645_v44 = vld [vmem:[%s8053_s4 + $0xd0] sm:$0xff]  ;;  %8440 = vst [vmem:[#allocation71_spill] sm:$0xff] %v6751_v51 }
 0x38a   :  { %8398 = vst [vmem:[#allocation67_spill] sm:$0xff] %v6635_v16  ;;  %8399 = vst [vmem:[#allocation68_spill] sm:$0xff] %v6640_v56  ;;  %v8401_v0 = vld [vmem:[#allocation188_spill] sm:$0xff]  ;;  %v8403_v8 = vld [vmem:[#allocation74_spill] sm:$0xff] }
 0x38b   :  { %8395 = vst [vmem:[#allocation66_spill] sm:$0xff] %v6625_v40  ;;  %8400 = vst [vmem:[#allocation69_spill] sm:$0xff] %v6645_v44  ;;  %v6648_v35 = vadd.f32 %v1007_v2, %v8401_v0  ;;  %v8404_v25 = vld [vmem:[#allocation75_spill] sm:$0xff]  ;;  %v8405_v6 = vld [vmem:[#allocation82_spill] sm:$0xff] }
 0x38c   :  { %v6653_v42 = vsel %vm961_vm1, %v8404_v25, %v8403_v8  ;;  %v8406_v16 = vld [vmem:[#allocation83_spill] sm:$0xff]  ;;  %v8407_v15 = vld [vmem:[#allocation84_spill] sm:$0xff]  ;;  %v8408_v14 = vld [vmem:[#allocation85_spill] sm:$0xff] }
 0x38d   :  { %8402 = vst [vmem:[#allocation55_spill] sm:$0xff] %v6648_v35  ;;  %v1012_v40 = vsel %vm961_vm1, %v8406_v16, %v8405_v6  ;;  %v1013_v56 = vsel %vm961_vm1, %v8408_v14, %v8407_v15  ;;  %v6664_v2 = vld [vmem:[%s8053_s4 + $0xd8] sm:$0xff]  ;;  %v6669_v0 = vld [vmem:[%s8053_s4 + $0xe0] sm:$0xff]  ;;  %v6674_v16 = vld [vmem:[%s8053_s4 + $0xe8] sm:$0xff] }
 0x38e   :  { %8409 = vst [vmem:[#allocation56_spill] sm:$0xff] %v6664_v2  ;;  %8410 = vst [vmem:[#allocation72_spill] sm:$0xff] %v6669_v0  ;;  %v8412_v8 = vld [vmem:[#allocation189_spill] sm:$0xff]  ;;  %v8414_v14 = vld [vmem:[#allocation88_spill] sm:$0xff] }
 0x38f   :  { %8411 = vst [vmem:[#allocation73_spill] sm:$0xff] %v6674_v16  ;;  %v6677_v25 = vadd.f32 %v1009_v38, %v8412_v8  ;;  %v8415_v15 = vld [vmem:[#allocation89_spill] sm:$0xff]  ;;  %v8416_v44 = vld [vmem:[#allocation92_spill] sm:$0xff]  ;;  %v6701_v8 = vld [vmem:[%s8054_s5] sm:$0xff] }
 0x390   :  { %v1015_v6 = vsel %vm961_vm1, %v8415_v15, %v8414_v14  ;;  %v8417_v35 = vld [vmem:[#allocation93_spill] sm:$0xff]  ;;  %v6691_v0 = vld [vmem:[%s8053_s4 + $0xf0] sm:$0xff]  ;;  %8421 = vst [vmem:[#allocation76_spill] sm:$0xff] %v6701_v8  ;;  %v8422_v14 = vld [vmem:[#allocation78_spill] sm:$0xff] }
 0x391   :  { %8413 = vst [vmem:[#allocation58_spill] sm:$0xff] %v6677_v25  ;;  %v1017_v2 = vsel %vm961_vm1, %v8417_v35, %v8416_v44  ;;  %8419 = vst [vmem:[#allocation62_spill] sm:$0xff] %v6691_v0  ;;  %v6696_v38 = vld [vmem:[%s8053_s4 + $0xf8] sm:$0xff]  ;;  %v8423_v44 = vld [vmem:[#allocation79_spill] sm:$0xff] }
 0x392   :  { %8420 = vst [vmem:[#allocation63_spill] sm:$0xff] %v6696_v38  ;;  %v6706_v54 = vsel %vm961_vm1, %v8423_v44, %v8422_v14  ;;  %v8424_v57 = vld [vmem:[#allocation80_spill] sm:$0xff]  ;;  %v8425_v35 = vld [vmem:[#allocation81_spill] sm:$0xff]  ;;  %v8426_v16 = vld [vmem:[#allocation99_spill] sm:$0xff] }
 0x393   :  { %v6711_v15 = vsel %vm961_vm1, %v8425_v35, %v8424_v57  ;;  %v8427_v0 = vld [vmem:[#allocation98_spill] sm:$0xff]  ;;  %v8428_v38 = vld [vmem:[#allocation101_spill] sm:$0xff]  ;;  %v8429_v25 = vld [vmem:[#allocation100_spill] sm:$0xff] }
 0x394   :  { %v1020_v7 = vsel %vm961_vm1, %v8427_v0, %v8426_v16  ;;  %v1021_v3 = vsel %vm961_vm1, %v8429_v25, %v8428_v38  ;;  %v6722_v8 = vld [vmem:[%s8054_s5 + $0x8] sm:$0xff]  ;;  %v6727_v14 = vld [vmem:[%s8054_s5 + $0x10] sm:$0xff]  ;;  %v6732_v44 = vld [vmem:[%s8054_s5 + $0x18] sm:$0xff]  ;;  %v6738_v25 = vadd.f32 %v1013_v56, %v6081_v23  ;;  %v6764_v56 = vadd.f32 %v1015_v6, %v6091_v30 }
 0x395   :  { %8430 = vst [vmem:[#allocation77_spill] sm:$0xff] %v6722_v8  ;;  %8431 = vst [vmem:[#allocation64_spill] sm:$0xff] %v6727_v14  ;;  %v8433_v0 = vld [vmem:[#allocation190_spill] sm:$0xff]  ;;  %v8437_v57 = vld [vmem:[#allocation87_spill] sm:$0xff] }
 0x396   :  { %8432 = vst [vmem:[#allocation65_spill] sm:$0xff] %v6732_v44  ;;  %v6735_v16 = vadd.f32 %v1012_v40, %v8433_v0  ;;  %8435 = vst [vmem:[#allocation70_spill] sm:$0xff] %v6738_v25  ;;  %v8436_v38 = vld [vmem:[#allocation86_spill] sm:$0xff]  ;;  %v8438_v8 = vld [vmem:[#allocation105_spill] sm:$0xff]  ;;  %v1791_v44 = vpop.permute.xlu0 %1790  ;;  %v1793_v25 = vpop.permute.xlu1 %1792 }
 0x397   :  { %v6743_v35 = vsel %vm961_vm1, %v8437_v57, %v8436_v38  ;;  %v8439_v33 = vld [vmem:[#allocation104_spill] sm:$0xff]  ;;  %v6756_v40 = vld [vmem:[%s8054_s5 + $0x28] sm:$0xff]  ;;  %8443 = vst [vmem:[#allocation75_spill] sm:$0xff] %v6764_v56  ;;  %v8444_v0 = vld [vmem:[#allocation90_spill] sm:$0xff]  ;;  %v6772_v38 = vadd.f32 %v1017_v2, %v6095_v43 }
 0x398   :  { %8434 = vst [vmem:[#allocation187_spill] sm:$0xff] %v6735_v16  ;;  %v1023_v14 = vsel %vm961_vm1, %v8439_v33, %v8438_v8  ;;  %8441 = vst [vmem:[#allocation188_spill] sm:$0xff] %v6756_v40  ;;  %v6761_v23 = vld [vmem:[%s8054_s5 + $0x30] sm:$0xff]  ;;  %v8445_v33 = vld [vmem:[#allocation91_spill] sm:$0xff] }
 0x399   :  { %8442 = vst [vmem:[#allocation74_spill] sm:$0xff] %v6761_v23  ;;  %v6769_v8 = vsel %vm961_vm1, %v8445_v33, %v8444_v0  ;;  %8446 = vst [vmem:[#allocation82_spill] sm:$0xff] %v6772_v38  ;;  %v8447_v57 = vld [vmem:[#allocation95_spill] sm:$0xff]  ;;  %v8448_v51 = vld [vmem:[#allocation94_spill] sm:$0xff]  ;;  %v6800_v33 = vadd.f32 %v1020_v7, %v6106_v17 }
 0x39a   :  { %v6777_v40 = vsel %vm961_vm1, %v8448_v51, %v8447_v57  ;;  %v6782_v30 = vld [vmem:[%s8054_s5 + $0x38] sm:$0xff]  ;;  %v6787_v6 = vld [vmem:[%s8054_s5 + $0x40] sm:$0xff]  ;;  %v6792_v43 = vld [vmem:[%s8054_s5 + $0x48] sm:$0xff]  ;;  %v6803_v57 = vadd.f32 %v1021_v3, %v6110_v22  ;;  %v6932_v41 = vpop.permute.xlu0 %1794 }
 0x39b   :  { %8449 = vst [vmem:[#allocation83_spill] sm:$0xff] %v6782_v30  ;;  %8450 = vst [vmem:[#allocation84_spill] sm:$0xff] %v6787_v6  ;;  %v8452_v2 = vld [vmem:[#allocation97_spill] sm:$0xff]  ;;  %v8453_v51 = vld [vmem:[#allocation96_spill] sm:$0xff]  ;;  %v6806_v30 = vsel %vm1826_vm0, %v1791_v44, %v1793_v25  ;;  %v6829_v44 = vadd.f32 %v1023_v14, %v6114_v24 }
 0x39c   :  { %8451 = vst [vmem:[#allocation85_spill] sm:$0xff] %v6792_v43  ;;  %v6797_v0 = vsel %vm961_vm1, %v8453_v51, %v8452_v2  ;;  %8454 = vst [vmem:[#allocation189_spill] sm:$0xff] %v6800_v33  ;;  %v6811_v6 = vld [vmem:[%s8054_s5 + $0x50] sm:$0xff]  ;;  %v6816_v43 = vld [vmem:[%s8054_s5 + $0x58] sm:$0xff] }
 0x39d   :  { %8455 = vst [vmem:[#allocation88_spill] sm:$0xff] %v6803_v57  ;;  %8456 = vst [vmem:[#allocation89_spill] sm:$0xff] %v6806_v30  ;;  %v6821_v17 = vld [vmem:[%s8054_s5 + $0x60] sm:$0xff]  ;;  %v8460_v22 = vld [vmem:[#allocation103_spill] sm:$0xff] }
 0x39e   :  { %8457 = vst [vmem:[#allocation92_spill] sm:$0xff] %v6811_v6  ;;  %8458 = vst [vmem:[#allocation93_spill] sm:$0xff] %v6816_v43  ;;  %v8461_v3 = vld [vmem:[#allocation102_spill] sm:$0xff]  ;;  %v8463_v25 = vld [vmem:[#allocation107_spill] sm:$0xff] }
 0x39f   :  { %8459 = vst [vmem:[#allocation78_spill] sm:$0xff] %v6821_v17  ;;  %v6826_v7 = vsel %vm961_vm1, %v8461_v3, %v8460_v22  ;;  %8462 = vst [vmem:[#allocation79_spill] sm:$0xff] %v6829_v44  ;;  %v8464_v2 = vld [vmem:[#allocation106_spill] sm:$0xff]  ;;  %v8465_v6 = vld [vmem:[#allocation109_spill] sm:$0xff] }
 0x3a0   :  { %v6834_v51 = vsel %vm961_vm1, %v8464_v2, %v8463_v25  ;;  %v8466_v43 = vld [vmem:[#allocation108_spill] sm:$0xff]  ;;  %v6842_v17 = vld [vmem:[%s8054_s5 + $0x68] sm:$0xff]  ;;  %v6852_v24 = vld [vmem:[%s8054_s5 + $0x78] sm:$0xff]  ;;  %8488 = vst [vmem:[#allocation95_spill] sm:$0xff] %v6932_v41 }
 0x3a1   :  { %v1025_v23 = vsel %vm961_vm1, %v8466_v43, %v8465_v6  ;;  %8467 = vst [vmem:[#allocation80_spill] sm:$0xff] %v6842_v17  ;;  %v6847_v22 = vld [vmem:[%s8054_s5 + $0x70] sm:$0xff]  ;;  %8469 = vst [vmem:[#allocation99_spill] sm:$0xff] %v6852_v24  ;;  %v8470_v14 = vld [vmem:[#allocation110_spill] sm:$0xff] }
 0x3a2   :  { %8468 = vst [vmem:[#allocation81_spill] sm:$0xff] %v6847_v22  ;;  %v8471_v3 = vld [vmem:[#allocation9_spill] sm:$0xff]  ;;  %v8472_v2 = vld [vmem:[#allocation111_spill] sm:$0xff]  ;;  %v8473_v43 = vld [vmem:[#allocation112_spill] sm:$0xff]  ;;  %v6901_v4 = vadd.f32 %v1025_v23, %v6131_v45 }
 0x3a3   :  { %v289_v25 = vmul.f32 %v8471_v3, %v8470_v14  ;;  %v291_v6 = vmul.f32 %v8471_v3, %v8472_v2  ;;  %v297_v44 = vmul.f32 %v8471_v3, %v8473_v43  ;;  %v8474_v17 = vld [vmem:[#allocation10_spill] sm:$0xff]  ;;  %v6870_v24 = vld [vmem:[%s8055_s6 + $0x8] sm:$0xff]  ;;  %v6875_v33 = vld [vmem:[%s8055_s6 + $0x10] sm:$0xff]  ;;  %8492 = vst [vmem:[#allocation103_spill] sm:$0xff] %v6949_v58 }
 0x3a4   :  { %v305_v57 = vmul.f32 %v8474_v17, %v8470_v14  ;;  %v6865_v22 = vld [vmem:[%s8055_s6] sm:$0xff]  ;;  %8476 = vst [vmem:[#allocation101_spill] sm:$0xff] %v6870_v24  ;;  %8477 = vst [vmem:[#allocation100_spill] sm:$0xff] %v6875_v33  ;;  %v8478_v30 = vld [vmem:[#allocation113_spill] sm:$0xff]  ;;  %v307_v56 = vmul.f32 %v8474_v17, %v8472_v2  ;;  %v313_v16 = vmul.f32 %v8474_v17, %v8473_v43 }
 0x3a5   :  { %8475 = vst [vmem:[#allocation98_spill] sm:$0xff] %v6865_v22  ;;  %v301_v38 = vmul.f32 %v8471_v3, %v8478_v30  ;;  %v317_v22 = vmul.f32 %v8474_v17, %v8478_v30  ;;  %v6888_v24 = vld [vmem:[%s8055_s6 + $0x18] sm:$0xff]  ;;  %v6893_v33 = vld [vmem:[%s8055_s6 + $0x20] sm:$0xff]  ;;  %v6898_v3 = vld [vmem:[%s8055_s6 + $0x28] sm:$0xff]  ;;  %v6952_v48 = vadd.f32 %v6119_v28, %v289_v25  ;;  %v6955_v41 = vadd.f32 %v6124_v52, %v291_v6 }
 0x3a6   :  { %8479 = vst [vmem:[#allocation190_spill] sm:$0xff] %v6888_v24  ;;  %8480 = vst [vmem:[#allocation86_spill] sm:$0xff] %v6893_v33  ;;  %v8483_v17 = vld [vmem:[#allocation7_spill] sm:$0xff]  ;;  %v6912_v33 = vld [vmem:[%s8055_s6 + $0x30] sm:$0xff]  ;;  %v393_v6 = vmul.f32 %v4636_v32, %v8473_v43 }
 0x3a7   :  { %8481 = vst [vmem:[#allocation87_spill] sm:$0xff] %v6898_v3  ;;  %8482 = vst [vmem:[#allocation105_spill] sm:$0xff] %v6901_v4  ;;  %v321_v18 = vmul.f32 %v8483_v17, %v8470_v14  ;;  %v323_v20 = vmul.f32 %v8483_v17, %v8472_v2  ;;  %v329_v24 = vmul.f32 %v8483_v17, %v8473_v43  ;;  %v6917_v3 = vld [vmem:[%s8055_s6 + $0x38] sm:$0xff]  ;;  %v6922_v45 = vld [vmem:[%s8055_s6 + $0x40] sm:$0xff] }
 0x3a8   :  { %8484 = vst [vmem:[#allocation104_spill] sm:$0xff] %v6912_v33  ;;  %8485 = vst [vmem:[#allocation90_spill] sm:$0xff] %v6917_v3  ;;  %v333_v23 = vmul.f32 %v8483_v17, %v8478_v30  ;;  %v8487_v4 = vld [vmem:[#allocation11_spill] sm:$0xff]  ;;  %v6934_v3 = vpop.permute.xlu1 %1796  ;;  %v6944_v17 = vld [vmem:[%s8055_s6 + $0x50] sm:$0xff]  ;;  %v6979_v52 = vadd.f32 %v6150_v47, %v301_v38 }
 0x3a9   :  { %8486 = vst [vmem:[#allocation91_spill] sm:$0xff] %v6922_v45  ;;  %v337_v62 = vmul.f32 %v8487_v4, %v8470_v14  ;;  %v339_v13 = vmul.f32 %v8487_v4, %v8472_v2  ;;  %v345_v33 = vmul.f32 %v8487_v4, %v8473_v43  ;;  %8489 = vst [vmem:[#allocation94_spill] sm:$0xff] %v6934_v3  ;;  %v6939_v45 = vld [vmem:[%s8055_s6 + $0x48] sm:$0xff]  ;;  %v6976_v28 = vld [vmem:[%s8055_s6 + $0x70] sm:$0xff] }
 0x3aa   :  { %8490 = vst [vmem:[#allocation97_spill] sm:$0xff] %v6939_v45  ;;  %8491 = vst [vmem:[#allocation96_spill] sm:$0xff] %v6944_v17  ;;  %v6958_v3 = vadd.f32 %v6140_v59, %v297_v44  ;;  %v6961_v45 = vadd.f32 %v6163_v37, %v305_v57  ;;  %v6966_v17 = vld [vmem:[%s8055_s6 + $0x60] sm:$0xff]  ;;  %v6971_v58 = vld [vmem:[%s8055_s6 + $0x68] sm:$0xff]  ;;  %v6982_v59 = vadd.f32 %v6174_v12, %v307_v56 }
 0x3ab   :  { %8493 = vst [vmem:[#allocation102_spill] sm:$0xff] %v6966_v17  ;;  %8494 = vst [vmem:[#allocation107_spill] sm:$0xff] %v6971_v58  ;;  %v6985_v37 = vadd.f32 %v6189_v39, %v313_v16  ;;  %v6988_v57 = vadd.f32 %v6199_v19, %v317_v22  ;;  %v6993_v44 = vld [vmem:[%s8055_s6 + $0x78] sm:$0xff]  ;;  %v6996_v25 = vadd.f32 %v6206_v21, %v321_v18  ;;  %v8520_v58 = vld [vmem:[#allocation134_spill] sm:$0xff]  ;;  %s7777_s6 = smov 0  }
 0x3ac   :  { %8495 = vst [vmem:[#allocation106_spill] sm:$0xff] %v6976_v28  ;;  %8496 = vst [vmem:[#allocation109_spill] sm:$0xff] %v6993_v44  ;;  %v6999_v47 = vadd.f32 %v6218_v50, %v323_v20  ;;  %v7002_v12 = vadd.f32 %v6232_v9, %v329_v24  ;;  %v349_v39 = vmul.f32 %v8487_v4, %v8478_v30  ;;  %v8497_v20 = vld [vmem:[#allocation6_spill] sm:$0xff]  ;;  %v7036_v38 = vpop.permute.xlu1 %1800 }
 0x3ad   :  { %v7007_v19 = vadd.f32 %v6240_v29, %v333_v23  ;;  %v7010_v16 = vadd.f32 %v6273_v49, %v337_v62  ;;  %v7013_v56 = vadd.f32 %v6278_v26, %v339_v13  ;;  %v7016_v21 = vadd.f32 %v6468_v63, %v345_v33  ;;  %v8498_v62 = vld [vmem:[#allocation8_spill] sm:$0xff]  ;;  %v7034_v63 = vpop.permute.xlu0 %1798 }
 0x3ae   :  { %v353_v50 = vmul.f32 %v8497_v20, %v8470_v14  ;;  %v355_v9 = vmul.f32 %v8497_v20, %v8472_v2  ;;  %v361_v18 = vmul.f32 %v8497_v20, %v8473_v43  ;;  %v365_v29 = vmul.f32 %v8497_v20, %v8478_v30 }
 0x3af   :  { %v369_v49 = vmul.f32 %v8498_v62, %v8470_v14  ;;  %v371_v13 = vmul.f32 %v8498_v62, %v8472_v2  ;;  %v377_v26 = vmul.f32 %v8498_v62, %v8473_v43  ;;  %v381_v4 = vmul.f32 %v8498_v62, %v8478_v30 }
 0x3b0   :  { %v7039_v33 = vadd.f32 %v6477_v27, %v349_v39  ;;  %v385_v22 = vmul.f32 %v4636_v32, %v8470_v14  ;;  %v387_v24 = vmul.f32 %v4636_v32, %v8472_v2  ;;  %v397_v23 = vmul.f32 %v4636_v32, %v8478_v30 }
 0x3b1   :  { %v401_v20 = vmul.f32 %v4649_v36, %v8470_v14  ;;  %v403_v62 = vmul.f32 %v4649_v36, %v8472_v2  ;;  %v409_v27 = vmul.f32 %v4649_v36, %v8473_v43  ;;  %v7056_v39 = vadd.f32 %v6504_v60, %v353_v50  ;;  %v7101_v50 = vpop.permute.xlu1 %1804 }
 0x3b2   :  { %v7059_v44 = vadd.f32 %v6509_v61, %v355_v9  ;;  %v7062_v28 = vadd.f32 %v6559_v55, %v361_v18  ;;  %v7065_v32 = vadd.f32 %v6588_v34, %v365_v29  ;;  %v7068_v14 = vadd.f32 %v6596_v31, %v369_v49  ;;  %v8500_v9 = vld [vmem:[#allocation114_spill] sm:$0xff]  ;;  %v8505_v49 = vld [vmem:[#allocation121_spill] sm:$0xff] }
 0x3b3   :  { %v7071_v2 = vadd.f32 %v6619_v1, %v371_v13  ;;  %v7074_v43 = vadd.f32 %v6630_v10, %v377_v26  ;;  %v7077_v60 = vadd.f32 %v6653_v42, %v381_v4  ;;  %v7080_v61 = vadd.f32 %v6706_v54, %v385_v22  ;;  %v7099_v54 = vpop.permute.xlu0 %1802  ;;  %v8504_v29 = vld [vmem:[#allocation118_spill] sm:$0xff]  ;;  %v8506_v13 = vld [vmem:[#allocation120_spill] sm:$0xff]  ;;  %v8507_v4 = vld [vmem:[#allocation123_spill] sm:$0xff] }
 0x3b4   :  { %v7083_v55 = vadd.f32 %v6711_v15, %v387_v24  ;;  %v7086_v34 = vadd.f32 %v6743_v35, %v393_v6  ;;  %v413_v31 = vmul.f32 %v4649_v36, %v8478_v30  ;;  %v7091_v1 = vadd.f32 %v6769_v8, %v397_v23  ;;  %v8499_v35 = vld [vmem:[#allocation115_spill] sm:$0xff]  ;;  %v8501_v30 = vld [vmem:[#allocation117_spill] sm:$0xff]  ;;  %v8502_v8 = vld [vmem:[#allocation116_spill] sm:$0xff] }
 0x3b5   :  { %v7094_v10 = vadd.f32 %v6777_v40, %v401_v20  ;;  %v7097_v42 = vadd.f32 %v6797_v0, %v403_v62  ;;  %v7104_v15 = vadd.f32 %v6826_v7, %v409_v27  ;;  %v1827_v36 = vsel %vm1826_vm0, %v8500_v9, %v8499_v35  ;;  %v8503_v40 = vld [vmem:[#allocation119_spill] sm:$0xff]  ;;  %v8508_v22 = vld [vmem:[#allocation122_spill] sm:$0xff]  ;;  %v8509_v24 = vld [vmem:[#allocation125_spill] sm:$0xff] }
 0x3b6   :  { %v1828_v18 = vsel %vm1826_vm0, %v8502_v8, %v8501_v30  ;;  %v1829_v0 = vsel %vm1826_vm0, %v8504_v29, %v8503_v40  ;;  %v1830_v26 = vsel %vm1826_vm0, %v8506_v13, %v8505_v49  ;;  %v1831_v7 = vsel %vm1826_vm0, %v8508_v22, %v8507_v4  ;;  %v8510_v6 = vld [vmem:[#allocation124_spill] sm:$0xff]  ;;  %v8511_v20 = vld [vmem:[#allocation127_spill] sm:$0xff]  ;;  %v8512_v62 = vld [vmem:[#allocation126_spill] sm:$0xff] }
 0x3b7   :  { %v1832_v23 = vsel %vm1826_vm0, %v8510_v6, %v8509_v24  ;;  %v1833_v27 = vsel %vm1826_vm0, %v8512_v62, %v8511_v20  ;;  %v8513_v35 = vld [vmem:[#allocation129_spill] sm:$0xff]  ;;  %v8514_v9 = vld [vmem:[#allocation128_spill] sm:$0xff]  ;;  %v8515_v8 = vld [vmem:[#allocation131_spill] sm:$0xff]  ;;  %v7140_v6 = vadd.f32 %v6834_v51, %v413_v31  ;;  %v7143_v20 = vadd.f32 %v1827_v36, %v6952_v48 }
 0x3b8   :  { %v1834_v30 = vsel %vm1826_vm0, %v8514_v9, %v8513_v35  ;;  %v8516_v40 = vld [vmem:[#allocation130_spill] sm:$0xff]  ;;  %v8517_v49 = vld [vmem:[#allocation133_spill] sm:$0xff]  ;;  %v8518_v13 = vld [vmem:[#allocation132_spill] sm:$0xff]  ;;  %v7146_v62 = vadd.f32 %v1828_v18, %v6955_v41  ;;  %v7149_v35 = vadd.f32 %v1829_v0, %v6133_v46  ;;  %v7152_v9 = vadd.f32 %v1830_v26, %v6135_v53  ;;  %v1807_v18 = vpop.permute.xlu0 %1806  ;;  %v1809_v0 = vpop.permute.xlu1 %1808 }
 0x3b9   :  { %v1835_v29 = vsel %vm1826_vm0, %v8516_v40, %v8515_v8  ;;  %v1836_v4 = vsel %vm1826_vm0, %v8518_v13, %v8517_v49  ;;  %v8519_v22 = vld [vmem:[#allocation135_spill] sm:$0xff]  ;;  %8521 = vst [vmem:[#allocation108_spill] sm:$0xff] %v7140_v6  ;;  %v7155_v8 = vadd.f32 %v1831_v7, %v6958_v3  ;;  %v7161_v51 = vadd.f32 %v1833_v27, %v6979_v52  ;;  %v8523_v48 = vld [vmem:[#allocation18_spill] sm:$0xff]  ;;  %v8525_v3 = vld [vmem:[#allocation137_spill] sm:$0xff] }
 0x3ba   :  { %v1837_v24 = vsel %vm1826_vm0, %v8520_v58, %v8519_v22  ;;  %v7158_v58 = vadd.f32 %v1832_v23, %v6145_v5  ;;  %v7164_v31 = vadd.f32 %v1834_v30, %v8523_v48  ;;  %v7167_v41 = vadd.f32 %v1835_v29, %v6961_v45  ;;  %v8526_v36 = vld [vmem:[#allocation136_spill] sm:$0xff]  ;;  %v8527_v52 = vld [vmem:[#allocation139_spill] sm:$0xff]  ;;  %v8528_v26 = vld [vmem:[#allocation138_spill] sm:$0xff] }
 0x3bb   :  { %8522 = vst [vmem:[#allocation110_spill] sm:$0xff] %v7161_v51  ;;  %v7170_v46 = vadd.f32 %v1836_v4, %v6982_v59  ;;  %v7173_v53 = vadd.f32 %v1837_v24, %v6176_v11  ;;  %v1838_v5 = vsel %vm1826_vm0, %v8526_v36, %v8525_v3  ;;  %v1839_v7 = vsel %vm1826_vm0, %v8528_v26, %v8527_v52  ;;  %v8529_v23 = vld [vmem:[#allocation141_spill] sm:$0xff]  ;;  %v8530_v27 = vld [vmem:[#allocation140_spill] sm:$0xff]  ;;  %v8531_v30 = vld [vmem:[#allocation143_spill] sm:$0xff] }
 0x3bc   :  { %8524 = vst [vmem:[#allocation9_spill] sm:$0xff] %v7164_v31  ;;  %v1840_v45 = vsel %vm1826_vm0, %v8530_v27, %v8529_v23  ;;  %v8532_v59 = vld [vmem:[#allocation142_spill] sm:$0xff]  ;;  %v8533_v11 = vld [vmem:[#allocation145_spill] sm:$0xff]  ;;  %v8534_v29 = vld [vmem:[#allocation144_spill] sm:$0xff] }
 0x3bd   :  { %v1841_v40 = vsel %vm1826_vm0, %v8532_v59, %v8531_v30  ;;  %v1842_v49 = vsel %vm1826_vm0, %v8534_v29, %v8533_v11  ;;  %v8535_v13 = vld [vmem:[#allocation147_spill] sm:$0xff]  ;;  %v8536_v4 = vld [vmem:[#allocation146_spill] sm:$0xff]  ;;  %v8537_v24 = vld [vmem:[#allocation149_spill] sm:$0xff] }
 0x3be   :  { %v1843_v22 = vsel %vm1826_vm0, %v8536_v4, %v8535_v13  ;;  %v8538_v48 = vld [vmem:[#allocation148_spill] sm:$0xff]  ;;  %v8539_v36 = vld [vmem:[#allocation151_spill] sm:$0xff]  ;;  %v8540_v52 = vld [vmem:[#allocation150_spill] sm:$0xff] }
 0x3bf   :  { %v1844_v3 = vsel %vm1826_vm0, %v8538_v48, %v8537_v24  ;;  %v1845_v26 = vsel %vm1826_vm0, %v8540_v52, %v8539_v36  ;;  %v8541_v23 = vld [vmem:[#allocation153_spill] sm:$0xff]  ;;  %v8542_v27 = vld [vmem:[#allocation152_spill] sm:$0xff]  ;;  %v8544_v11 = vld [vmem:[#allocation155_spill] sm:$0xff]  ;;  %v7215_v36 = vadd.f32 %v1839_v7, %v6985_v37 }
 0x3c0   :  { %v1846_v30 = vsel %vm1826_vm0, %v8542_v27, %v8541_v23  ;;  %v8543_v59 = vld [vmem:[#allocation12_spill] sm:$0xff]  ;;  %v8545_v29 = vld [vmem:[#allocation154_spill] sm:$0xff]  ;;  %v8546_v13 = vld [vmem:[#allocation157_spill] sm:$0xff] }
 0x3c1   :  { %v7203_v17 = vadd.f32 %v1838_v5, %v8543_v59  ;;  %v1847_v6 = vsel %vm1826_vm0, %v8545_v29, %v8544_v11  ;;  %v8547_v4 = vld [vmem:[#allocation156_spill] sm:$0xff]  ;;  %v8548_v24 = vld [vmem:[#allocation159_spill] sm:$0xff]  ;;  %v8549_v48 = vld [vmem:[#allocation158_spill] sm:$0xff]  ;;  %8550 = vst [vmem:[#allocation111_spill] sm:$0xff] %v7215_v36  ;;  %v7221_v5 = vadd.f32 %v1841_v40, %v6988_v57  ;;  %v2051_v11 = vadd.f32 %v1843_v22, %v6996_v25 }
 0x3c2   :  { %v1848_v51 = vsel %vm1826_vm0, %v8547_v4, %v8546_v13  ;;  %v1849_v31 = vsel %vm1826_vm0, %v8549_v48, %v8548_v24  ;;  %v8551_v52 = vld [vmem:[#allocation13_spill] sm:$0xff]  ;;  %v8553_v27 = vld [vmem:[#allocation22_spill] sm:$0xff]  ;;  %v7228_v29 = vadd.f32 %v1844_v3, %v6999_v47  ;;  %v8555_v13 = vld [vmem:[#allocation15_spill] sm:$0xff]  ;;  %v7237_v7 = vadd.f32 %v1847_v6, %v7002_v12  ;;  %v1811_v47 = vpop.permute.xlu0 %1810  ;;  %v1813_v3 = vpop.permute.xlu1 %1812 }
 0x3c3   :  { %v7218_v23 = vadd.f32 %v1840_v45, %v8551_v52  ;;  %8552 = vst [vmem:[#allocation112_spill] sm:$0xff] %v7221_v5  ;;  %v7224_v59 = vadd.f32 %v1842_v49, %v8553_v27  ;;  %v7231_v4 = vadd.f32 %v1845_v26, %v8555_v13  ;;  %v8556_v24 = vld [vmem:[#allocation28_spill] sm:$0xff]  ;;  %v8558_v45 = vld [vmem:[#allocation29_spill] sm:$0xff]  ;;  %v7243_v40 = vadd.f32 %v1849_v31, %v7007_v19  ;;  %v8560_v49 = vld [vmem:[#allocation30_spill] sm:$0xff] }
 0x3c4   :  { %v7234_v37 = vadd.f32 %v1846_v30, %v8556_v24  ;;  %8557 = vst [vmem:[#allocation113_spill] sm:$0xff] %v7237_v7  ;;  %v7240_v57 = vadd.f32 %v1848_v51, %v8558_v45  ;;  %v8561_v25 = vld [vmem:[#allocation160_spill] sm:$0xff]  ;;  %v8563_v26 = vld [vmem:[#allocation161_spill] sm:$0xff]  ;;  %v8564_v30 = vld [vmem:[#allocation162_spill] sm:$0xff] }
 0x3c5   :  { %8554 = vst [vmem:[#allocation10_spill] sm:$0xff] %v7224_v59  ;;  %8559 = vst [vmem:[#allocation7_spill] sm:$0xff] %v7243_v40  ;;  %v7247_v22 = vadd.f32 %v8561_v25, %v8560_v49  ;;  %v2067_v48 = vadd.f32 %v8563_v26, %v7010_v16  ;;  %v2069_v52 = vadd.f32 %v8564_v30, %v7013_v56  ;;  %v8565_v12 = vld [vmem:[#allocation34_spill] sm:$0xff]  ;;  %v8566_v6 = vld [vmem:[#allocation163_spill] sm:$0xff] }
 0x3c6   :  { %v7255_v27 = vadd.f32 %v8566_v6, %v8565_v12  ;;  %v8567_v51 = vld [vmem:[#allocation24_spill] sm:$0xff]  ;;  %v8569_v31 = vld [vmem:[#allocation165_spill] sm:$0xff]  ;;  %v8571_v45 = vld [vmem:[#allocation27_spill] sm:$0xff] }
 0x3c7   :  { %8562 = vst [vmem:[#allocation11_spill] sm:$0xff] %v7247_v22  ;;  %v8568_v13 = vld [vmem:[#allocation164_spill] sm:$0xff]  ;;  %v7263_v24 = vadd.f32 %v8569_v31, %v7016_v21  ;;  %v8572_v49 = vld [vmem:[#allocation166_spill] sm:$0xff]  ;;  %v8573_v16 = vld [vmem:[#allocation167_spill] sm:$0xff] }
 0x3c8   :  { %v7259_v19 = vadd.f32 %v8568_v13, %v8567_v51  ;;  %v7267_v25 = vadd.f32 %v8572_v49, %v8571_v45  ;;  %v7271_v26 = vadd.f32 %v8573_v16, %v7039_v33  ;;  %v8575_v56 = vld [vmem:[#allocation33_spill] sm:$0xff]  ;;  %v8576_v30 = vld [vmem:[#allocation168_spill] sm:$0xff]  ;;  %v8579_v13 = vld [vmem:[#allocation170_spill] sm:$0xff] }
 0x3c9   :  { %8570 = vst [vmem:[#allocation6_spill] sm:$0xff] %v7263_v24  ;;  %v7275_v12 = vadd.f32 %v8576_v30, %v8575_v56  ;;  %v8578_v6 = vld [vmem:[#allocation169_spill] sm:$0xff]  ;;  %v2085_v40 = vadd.f32 %v8579_v13, %v7059_v44  ;;  %v8580_v21 = vld [vmem:[#allocation40_spill] sm:$0xff]  ;;  %v8581_v31 = vld [vmem:[#allocation171_spill] sm:$0xff] }
 0x3ca   :  { %8574 = vst [vmem:[#allocation8_spill] sm:$0xff] %v7271_v26  ;;  %v2083_v51 = vadd.f32 %v8578_v6, %v7056_v39  ;;  %v7283_v5 = vadd.f32 %v8581_v31, %v8580_v21  ;;  %v8582_v45 = vld [vmem:[#allocation41_spill] sm:$0xff]  ;;  %v8583_v49 = vld [vmem:[#allocation172_spill] sm:$0xff]  ;;  %v8587_v56 = vld [vmem:[#allocation174_spill] sm:$0xff] }
 0x3cb   :  { %8577 = vst [vmem:[#allocation115_spill] sm:$0xff] %v7275_v12  ;;  %v2089_v22 = vadd.f32 %v8583_v49, %v8582_v45  ;;  %v8584_v33 = vld [vmem:[#allocation173_spill] sm:$0xff]  ;;  %v8586_v26 = vld [vmem:[#allocation48_spill] sm:$0xff]  ;;  %v8588_v39 = vld [vmem:[#allocation175_spill] sm:$0xff] }
 0x3cc   :  { %v7289_v16 = vadd.f32 %v8584_v33, %v7062_v28  ;;  %v7293_v30 = vadd.f32 %v8587_v56, %v8586_v26  ;;  %v7297_v6 = vadd.f32 %v8588_v39, %v7065_v32  ;;  %v8590_v44 = vld [vmem:[#allocation192_spill] sm:$0xff]  ;;  %v8591_v13 = vld [vmem:[#allocation191_spill] sm:$0xff]  ;;  %v8595_v45 = vld [vmem:[#allocation177_spill] sm:$0xff] }
 0x3cd   :  { %v1876_v21 = vsel %vm1826_vm0, %v8591_v13, %v8590_v44  ;;  %v8592_v31 = vld [vmem:[#allocation52_spill] sm:$0xff]  ;;  %v2099_v28 = vadd.f32 %v8595_v45, %v7068_v14  ;;  %v8596_v49 = vld [vmem:[#allocation178_spill] sm:$0xff]  ;;  %v8597_v26 = vld [vmem:[#allocation61_spill] sm:$0xff] }
 0x3ce   :  { %8585 = vst [vmem:[#allocation114_spill] sm:$0xff] %v7289_v16  ;;  %8589 = vst [vmem:[#allocation117_spill] sm:$0xff] %v7297_v6  ;;  %v8593_v12 = vld [vmem:[#allocation176_spill] sm:$0xff]  ;;  %v2101_v33 = vadd.f32 %v8596_v49, %v7071_v2  ;;  %v8598_v56 = vld [vmem:[#allocation179_spill] sm:$0xff]  ;;  %v1815_v2 = vpop.permute.xlu0 %1814  ;;  %v1817_v49 = vpop.permute.xlu1 %1816 }
 0x3cf   :  { %v7304_v59 = vadd.f32 %v8593_v12, %v8592_v31  ;;  %v7312_v16 = vadd.f32 %v8598_v56, %v8597_v26  ;;  %v8599_v32 = vld [vmem:[#allocation66_spill] sm:$0xff]  ;;  %v8600_v39 = vld [vmem:[#allocation180_spill] sm:$0xff]  ;;  %v8601_v24 = vld [vmem:[#allocation181_spill] sm:$0xff] }
 0x3d0   :  { %v2105_v6 = vadd.f32 %v8600_v39, %v8599_v32  ;;  %v7318_v44 = vadd.f32 %v8601_v24, %v7074_v43  ;;  %v8603_v13 = vld [vmem:[#allocation55_spill] sm:$0xff]  ;;  %v8604_v12 = vld [vmem:[#allocation182_spill] sm:$0xff]  ;;  %v8610_v32 = vld [vmem:[#allocation185_spill] sm:$0xff] }
 0x3d1   :  { %8594 = vst [vmem:[#allocation116_spill] sm:$0xff] %v7304_v59  ;;  %v7322_v31 = vadd.f32 %v8604_v12, %v8603_v13  ;;  %v8605_v59 = vld [vmem:[#allocation14_spill] sm:$0xff]  ;;  %v8606_v14 = vld [vmem:[#allocation23_spill] sm:$0xff]  ;;  %v2117_v13 = vadd.f32 %v1876_v21, %v7083_v55  ;;  %v1887_v55 = vsel %vm1826_vm0, %v1811_v47, %v1813_v3  ;;  %v1888_v21 = vsel %vm1826_vm0, %v1815_v2, %v1817_v49  ;;  %v8623_v3 = vld [vmem:[#allocation189_spill] sm:$0xff] }
 0x3d2   :  { %8602 = vst [vmem:[#allocation119_spill] sm:$0xff] %v7318_v44  ;;  %v1878_v45 = vsel %vm1826_vm0, %v8606_v14, %v8605_v59  ;;  %v8607_v26 = vld [vmem:[#allocation183_spill] sm:$0xff]  ;;  %v8609_v7 = vld [vmem:[#allocation58_spill] sm:$0xff]  ;;  %v1884_v59 = vsel %vm1826_vm0, %v7034_v63, %v7036_v38  ;;  %v8619_v38 = vld [vmem:[#allocation49_spill] sm:$0xff] }
 0x3d3   :  { %v7329_v56 = vadd.f32 %v8607_v26, %v7077_v60  ;;  %v7333_v39 = vadd.f32 %v8610_v32, %v8609_v7  ;;  %v8611_v43 = vld [vmem:[#allocation186_spill] sm:$0xff]  ;;  %v8613_v44 = vld [vmem:[#allocation95_spill] sm:$0xff]  ;;  %v1885_v60 = vsel %vm1826_vm0, %v7099_v54, %v7101_v50  ;;  %v1886_v7 = vsel %vm1826_vm0, %v1807_v18, %v1809_v0  ;;  %v8622_v0 = vld [vmem:[#allocation89_spill] sm:$0xff] }
 0x3d4   :  { %v2115_v24 = vadd.f32 %v8611_v43, %v7080_v61  ;;  %v8612_v12 = vld [vmem:[#allocation94_spill] sm:$0xff]  ;;  %v8614_v14 = vld [vmem:[#allocation187_spill] sm:$0xff]  ;;  %v2133_v47 = vadd.f32 %v1884_v59, %v7097_v42  ;;  %v2135_v2 = vadd.f32 %v1885_v60, %v8623_v3  ;;  %v8624_v49 = vld [vmem:[#allocation88_spill] sm:$0xff] }
 0x3d5   :  { %8608 = vst [vmem:[#allocation118_spill] sm:$0xff] %v7329_v56  ;;  %v1883_v36 = vsel %vm1826_vm0, %v8613_v44, %v8612_v12  ;;  %v8615_v26 = vld [vmem:[#allocation19_spill] sm:$0xff]  ;;  %v8616_v61 = vld [vmem:[#allocation70_spill] sm:$0xff]  ;;  %v8617_v44 = vld [vmem:[#allocation25_spill] sm:$0xff] }
 0x3d6   :  { %v2119_v32 = vadd.f32 %v8615_v26, %v8614_v14  ;;  %v2121_v43 = vadd.f32 %v1878_v45, %v8616_v61  ;;  %v7355_v12 = vadd.f32 %v8617_v44, %v7086_v34  ;;  %v8618_v63 = vld [vmem:[#allocation75_spill] sm:$0xff]  ;;  %v8621_v18 = vld [vmem:[#allocation82_spill] sm:$0xff]  ;;  %v2131_v45 = vadd.f32 %v1883_v36, %v7094_v10  ;;  %v2150_v26 = vpop.permute.xlu0 %2149  ;;  %v2155_v61 = vpop.permute.xlu1 %2154 }
 0x3d7   :  { %v2125_v56 = vadd.f32 %v8619_v38, %v8618_v63  ;;  %v8620_v54 = vld [vmem:[#allocation59_spill] sm:$0xff]  ;;  %v7365_v14 = vadd.f32 %v8622_v0, %v8621_v18  ;;  %v2137_v34 = vadd.f32 %v1886_v7, %v8624_v49  ;;  %v2139_v44 = vadd.f32 %v1887_v55, %v7104_v15 }
 0x3d8   :  { %v7361_v50 = vadd.f32 %v8620_v54, %v7091_v1  ;;  %v8625_v63 = vld [vmem:[#allocation79_spill] sm:$0xff]  ;;  %v7374_v1 = vmul.f32 %v2150_v26, %v7143_v20  ;;  %v7377_v54 = vmul.f32 %v2150_v26, %v7167_v41  ;;  %v7379_v18 = vmul.f32 %v2150_v26, %v2051_v11 }
 0x3d9   :  { %v2141_v38 = vadd.f32 %v1888_v21, %v8625_v63  ;;  %v7381_v10 = vmul.f32 %v2150_v26, %v2067_v48  ;;  %v7383_v42 = vmul.f32 %v2150_v26, %v2083_v51  ;;  %v7385_v36 = vmul.f32 %v2150_v26, %v2099_v28 }
 0x3da   :  { %v7387_v59 = vmul.f32 %v2150_v26, %v2115_v24  ;;  %v7389_v60 = vmul.f32 %v2150_v26, %v2131_v45  ;;  %v7392_v15 = vmul.f32 %v2155_v61, %v7146_v62  ;;  %v7395_v20 = vmul.f32 %v2155_v61, %v7170_v46  ;;  %v2165_v28 = vpop.permute.xlu0 %2164  ;;  %v2160_v24 = vpop.permute.xlu1 %2159 }
 0x3db   :  { %v7398_v41 = vmul.f32 %v2155_v61, %v7228_v29  ;;  %v7400_v11 = vmul.f32 %v2155_v61, %v2069_v52  ;;  %v7402_v48 = vmul.f32 %v2155_v61, %v2085_v40  ;;  %v7404_v51 = vmul.f32 %v2155_v61, %v2101_v33  ;;  %v8626_v33 = vld [vmem:[#allocation184_spill] sm:$0xff] }
 0x3dc   :  { %v2285_v7 = vmul.f32 %v2155_v61, %v2117_v13  ;;  %v2301_v55 = vmul.f32 %v2155_v61, %v2133_v47  ;;  %v7407_v21 = vmul.f32 %v2165_v28, %v7152_v9  ;;  %v7410_v62 = vmul.f32 %v2165_v28, %v7203_v17 }
 0x3dd   :  { %v7413_v46 = vmul.f32 %v2165_v28, %v7234_v37  ;;  %v7416_v29 = vmul.f32 %v2165_v28, %v7259_v19  ;;  %v7418_v40 = vmul.f32 %v2165_v28, %v2089_v22  ;;  %v7420_v52 = vmul.f32 %v2165_v28, %v2105_v6 }
 0x3de   :  { %vm2614_vm3 = vcmp.ge.s32.totalorder %v8626_v33, 1  ;;  %vm2616_vm4 = vcmp.le.s32.totalorder %v8626_v33, 96  ;;  %v7424_v13 = vmul.f32 %v2165_v28, %v2121_v43  ;;  %v7426_v9 = vmul.f32 %v2165_v28, %v2137_v34  ;;  %v2175_v0 = vpop.permute.xlu0 %2174  ;;  %v2170_v45 = vpop.permute.xlu1 %2169 }
 0x3df   :  { %v7429_v17 = vmul.f32 %v2160_v24, %v7149_v35  ;;  %v7432_v37 = vmul.f32 %v2160_v24, %v7173_v53  ;;  %v7435_v19 = vmul.f32 %v2160_v24, %v7231_v4  ;;  %v7438_v22 = vmul.f32 %v2160_v24, %v7255_v27  ;;  %vm7563_vm5 = vmand %vm2614_vm3, %vm2616_vm4 }
 0x3e0   :  { %v7441_v6 = vmul.f32 %v2160_v24, %v7283_v5  ;;  %v7444_v43 = vmul.f32 %v2160_v24, %v7312_v16  ;;  %v7446_v47 = vmul.f32 %v2160_v24, %v2119_v32  ;;  %v7448_v35 = vmul.f32 %v2160_v24, %v2135_v2  ;;  %v8635_v24 = vld [vmem:[#allocation9_spill] sm:$0xff] }
 0x3e1   :  { %v7451_v53 = vmul.f32 %v2175_v0, %v7158_v58  ;;  %v7454_v4 = vmul.f32 %v2175_v0, %v7218_v23  ;;  %v7457_v27 = vmul.f32 %v2175_v0, %v7240_v57  ;;  %v7460_v5 = vmul.f32 %v2175_v0, %v7267_v25  ;;  %v8627_v23 = vld [vmem:[#allocation111_spill] sm:$0xff]  ;;  %v8628_v57 = vld [vmem:[#allocation113_spill] sm:$0xff]  ;;  %v8629_v25 = vld [vmem:[#allocation6_spill] sm:$0xff] }
 0x3e2   :  { %v7463_v16 = vmul.f32 %v2175_v0, %v7293_v30  ;;  %v7466_v32 = vmul.f32 %v2175_v0, %v7322_v31  ;;  %v7468_v3 = vmul.f32 %v2175_v0, %v2125_v56  ;;  %v7470_v2 = vmul.f32 %v2175_v0, %v2141_v38  ;;  %v8630_v30 = vld [vmem:[#allocation114_spill] sm:$0xff]  ;;  %v8631_v31 = vld [vmem:[#allocation119_spill] sm:$0xff]  ;;  %v7490_v63 = vpop.permute.xlu0 %2184  ;;  %v7492_v38 = vpop.permute.xlu1 %2179 }
 0x3e3   :  { %v7473_v58 = vmul.f32 %v2170_v45, %v7155_v8  ;;  %v7476_v49 = vmul.f32 %v2170_v45, %v8627_v23  ;;  %v7479_v34 = vmul.f32 %v2170_v45, %v8628_v57  ;;  %v7482_v26 = vmul.f32 %v2170_v45, %v8629_v25  ;;  %8633 = vst [vmem:[#allocation120_spill] sm:$0xff] %v7490_v63  ;;  %v8637_v23 = vld [vmem:[#allocation10_spill] sm:$0xff]  ;;  %v8639_v25 = vld [vmem:[#allocation11_spill] sm:$0xff] }
 0x3e4   :  { %v7485_v61 = vmul.f32 %v2170_v45, %v8630_v30  ;;  %v7488_v56 = vmul.f32 %v2170_v45, %v8631_v31  ;;  %8634 = vst [vmem:[#allocation123_spill] sm:$0xff] %v7492_v38  ;;  %v7495_v8 = vmul.f32 %v2170_v45, %v7355_v12  ;;  %v7497_v28 = vmul.f32 %v2170_v45, %v2139_v44  ;;  %v8641_v31 = vld [vmem:[#allocation115_spill] sm:$0xff]  ;;  %v8643_v12 = vld [vmem:[#allocation116_spill] sm:$0xff] }
 0x3e5   :  { %v7501_v0 = vmul.f32 %v7490_v63, %v8635_v24  ;;  %v7505_v57 = vmul.f32 %v7490_v63, %v8637_v23  ;;  %v7509_v30 = vmul.f32 %v7490_v63, %v8639_v25  ;;  %v7517_v44 = vmul.f32 %v7490_v63, %v8643_v12  ;;  %v8647_v23 = vld [vmem:[#allocation110_spill] sm:$0xff] }
 0x3e6   :  { %8632 = vst [vmem:[#allocation121_spill] sm:$0xff] %v7488_v56  ;;  %v7513_v56 = vmul.f32 %v7490_v63, %v8641_v31  ;;  %v7521_v45 = vmul.f32 %v7490_v63, %v7333_v39  ;;  %v7525_v24 = vmul.f32 %v7490_v63, %v7365_v14  ;;  %v7529_v25 = vmul.f32 %v7492_v38, %v8647_v23  ;;  %v8657_v63 = vld [vmem:[#allocation118_spill] sm:$0xff] }
 0x3e7   :  { %8636 = vst [vmem:[#allocation122_spill] sm:$0xff] %v7501_v0  ;;  %8638 = vst [vmem:[#allocation125_spill] sm:$0xff] %v7505_v57  ;;  %v7549_v23 = vmul.f32 %v7492_v38, %v8657_v63  ;;  %v2318_v57 = vpop.permute.xlu1 %2317 }
 0x3e8   :  { %8640 = vst [vmem:[#allocation124_spill] sm:$0xff] %v7509_v30  ;;  %8642 = vst [vmem:[#allocation127_spill] sm:$0xff] %v7513_v56  ;;  %v8649_v30 = vld [vmem:[#allocation112_spill] sm:$0xff]  ;;  %v8651_v56 = vld [vmem:[#allocation7_spill] sm:$0xff] }
 0x3e9   :  { %8644 = vst [vmem:[#allocation126_spill] sm:$0xff] %v7517_v44  ;;  %8645 = vst [vmem:[#allocation129_spill] sm:$0xff] %v7521_v45  ;;  %v7533_v31 = vmul.f32 %v7492_v38, %v8649_v30  ;;  %v7537_v12 = vmul.f32 %v7492_v38, %v8651_v56  ;;  %v8653_v44 = vld [vmem:[#allocation8_spill] sm:$0xff]  ;;  %v8655_v45 = vld [vmem:[#allocation117_spill] sm:$0xff]  ;;  %v7553_v30 = vmul.f32 %v7492_v38, %v7361_v50 }
 0x3ea   :  { %8646 = vst [vmem:[#allocation128_spill] sm:$0xff] %v7525_v24  ;;  %8648 = vst [vmem:[#allocation131_spill] sm:$0xff] %v7529_v25  ;;  %v7541_v39 = vmul.f32 %v7492_v38, %v8653_v44  ;;  %v7545_v14 = vmul.f32 %v7492_v38, %v8655_v45 }
 0x3eb   :  { %8650 = vst [vmem:[#allocation130_spill] sm:$0xff] %v7533_v31  ;;  %8652 = vst [vmem:[#allocation133_spill] sm:$0xff] %v7537_v12  ;;  %v2323_v31 = vpop.permute.xlu0 %2322 }
 0x3ec   :  { %8654 = vst [vmem:[#allocation132_spill] sm:$0xff] %v7541_v39  ;;  %8656 = vst [vmem:[#allocation135_spill] sm:$0xff] %v7545_v14  ;;  %v2357_v56 = vadd.f32 %v2323_v31, %v7392_v15  ;;  %v2373_v12 = vadd.f32 %v2323_v31, %v7395_v20  ;;  %v2389_v44 = vadd.f32 %v2323_v31, %v7398_v41 }
 0x3ed   :  { %8658 = vst [vmem:[#allocation134_spill] sm:$0xff] %v7549_v23  ;;  %8659 = vst [vmem:[#allocation18_spill] sm:$0xff] %v7553_v30  ;;  %v2405_v39 = vadd.f32 %v2323_v31, %v7400_v11  ;;  %v2421_v50 = vadd.f32 %v2323_v31, %v7402_v48  ;;  %v2437_v45 = vadd.f32 %v2323_v31, %v7404_v51 }
 0x3ee   :  { %v2453_v38 = vadd.f32 %v2323_v31, %v2285_v7  ;;  %v2469_v15 = vadd.f32 %v2323_v31, %v2301_v55  ;;  %v2485_v30 = vmax.f32 %v2357_v56, 0.0  ;;  %v2501_v20 = vmax.f32 %v2373_v12, 0.0 }
 0x3ef   :  { %v2517_v23 = vmax.f32 %v2389_v44, 0.0  ;;  %v2533_v41 = vmax.f32 %v2405_v39, 0.0  ;;  %v2549_v14 = vmax.f32 %v2421_v50, 0.0  ;;  %v2565_v11 = vmax.f32 %v2437_v45, 0.0 }
 0x3f0   :  { %v2581_v25 = vmax.f32 %v2453_v38, 0.0  ;;  %v2597_v24 = vmax.f32 %v2469_v15, 0.0  ;;  %v2626_v33 = vsel %vm7563_vm5, %v2485_v30, 0.0  ;;  %v2642_v0 = vsel %vm7563_vm5, %v2501_v20, 0.0 }
 0x3f1   :  { %v2658_v48 = vsel %vm7563_vm5, %v2517_v23, 0.0  ;;  %v2674_v51 = vsel %vm7563_vm5, %v2533_v41, 0.0  ;;  %v2690_v7 = vsel %vm7563_vm5, %v2549_v14, 0.0  ;;  %v2706_v55 = vsel %vm7563_vm5, %v2565_v11, 0.0  ;;  %2755 = vst [vmem:[#allocation2 + $0x10] sm:$0xff] %v2626_v33  ;;  %2771 = vst [vmem:[#allocation2 + $0x90] sm:$0xff] %v2642_v0  ;;  %v2333_v41 = vpop.permute.xlu0 %2332 }
 0x3f2   :  { %v2722_v38 = vsel %vm7563_vm5, %v2581_v25, 0.0  ;;  %v2738_v31 = vsel %vm7563_vm5, %v2597_v24, 0.0  ;;  %2787 = vst [vmem:[#allocation2 + $0x110] sm:$0xff] %v2658_v48  ;;  %2803 = vst [vmem:[#allocation2 + $0x190] sm:$0xff] %v2674_v51  ;;  %v2355_v12 = vadd.f32 %v2318_v57, %v7374_v1  ;;  %v2371_v39 = vadd.f32 %v2318_v57, %v7377_v54 }
 0x3f3   :  { %2819 = vst [vmem:[#allocation2 + $0x210] sm:$0xff] %v2690_v7  ;;  %2835 = vst [vmem:[#allocation2 + $0x290] sm:$0xff] %v2706_v55  ;;  %v2387_v14 = vadd.f32 %v2318_v57, %v7379_v18  ;;  %v2403_v23 = vadd.f32 %v2318_v57, %v7381_v10  ;;  %v2419_v25 = vadd.f32 %v2318_v57, %v7383_v42 }
 0x3f4   :  { %2851 = vst [vmem:[#allocation2 + $0x310] sm:$0xff] %v2722_v38  ;;  %2867 = vst [vmem:[#allocation2 + $0x390] sm:$0xff] %v2738_v31  ;;  %v2435_v24 = vadd.f32 %v2318_v57, %v7385_v36  ;;  %v2451_v0 = vadd.f32 %v2318_v57, %v7387_v59  ;;  %v2467_v30 = vadd.f32 %v2318_v57, %v7389_v60  ;;  %v2483_v56 = vmax.f32 %v2355_v12, 0.0 }
 0x3f5   :  { %v2499_v44 = vmax.f32 %v2371_v39, 0.0  ;;  %v2515_v50 = vmax.f32 %v2387_v14, 0.0  ;;  %v2531_v45 = vmax.f32 %v2403_v23, 0.0  ;;  %v2547_v15 = vmax.f32 %v2419_v25, 0.0 }
 0x3f6   :  { %v2563_v1 = vmax.f32 %v2435_v24, 0.0  ;;  %v2579_v20 = vmax.f32 %v2451_v0, 0.0  ;;  %v2595_v54 = vmax.f32 %v2467_v30, 0.0  ;;  %v2624_v18 = vsel %vm7563_vm5, %v2483_v56, 0.0  ;;  %v2328_v30 = vpop.permute.xlu1 %2327 }
 0x3f7   :  { %v2640_v10 = vsel %vm7563_vm5, %v2499_v44, 0.0  ;;  %v2656_v42 = vsel %vm7563_vm5, %v2515_v50, 0.0  ;;  %v2672_v36 = vsel %vm7563_vm5, %v2531_v45, 0.0  ;;  %v2688_v59 = vsel %vm7563_vm5, %v2547_v15, 0.0  ;;  %2752 = vst [vmem:[#allocation2] sm:$0xff] %v2624_v18 }
 0x3f8   :  { %v2704_v60 = vsel %vm7563_vm5, %v2563_v1, 0.0  ;;  %v2720_v57 = vsel %vm7563_vm5, %v2579_v20, 0.0  ;;  %v2736_v11 = vsel %vm7563_vm5, %v2595_v54, 0.0  ;;  %2769 = vst [vmem:[#allocation2 + $0x80] sm:$0xff] %v2640_v10  ;;  %2785 = vst [vmem:[#allocation2 + $0x100] sm:$0xff] %v2656_v42  ;;  %v2361_v33 = vadd.f32 %v2333_v41, %v7407_v21 }
 0x3f9   :  { %2801 = vst [vmem:[#allocation2 + $0x180] sm:$0xff] %v2672_v36  ;;  %2817 = vst [vmem:[#allocation2 + $0x200] sm:$0xff] %v2688_v59  ;;  %v2377_v48 = vadd.f32 %v2333_v41, %v7410_v62  ;;  %v2393_v51 = vadd.f32 %v2333_v41, %v7413_v46  ;;  %v2409_v7 = vadd.f32 %v2333_v41, %v7416_v29 }
 0x3fa   :  { %2833 = vst [vmem:[#allocation2 + $0x280] sm:$0xff] %v2704_v60  ;;  %2849 = vst [vmem:[#allocation2 + $0x300] sm:$0xff] %v2720_v57  ;;  %v2425_v55 = vadd.f32 %v2333_v41, %v7418_v40  ;;  %v2441_v38 = vadd.f32 %v2333_v41, %v7420_v52  ;;  %v2457_v31 = vadd.f32 %v2333_v41, %v7424_v13  ;;  %v2489_v39 = vmax.f32 %v2361_v33, 0.0 }
 0x3fb   :  { %2865 = vst [vmem:[#allocation2 + $0x380] sm:$0xff] %v2736_v11  ;;  %v2473_v12 = vadd.f32 %v2333_v41, %v7426_v9  ;;  %v2505_v14 = vmax.f32 %v2377_v48, 0.0  ;;  %v2521_v23 = vmax.f32 %v2393_v51, 0.0  ;;  %v2537_v25 = vmax.f32 %v2409_v7, 0.0  ;;  %v2343_v11 = vpop.permute.xlu0 %2342 }
 0x3fc   :  { %v2553_v24 = vmax.f32 %v2425_v55, 0.0  ;;  %v2569_v21 = vmax.f32 %v2441_v38, 0.0  ;;  %v2585_v0 = vmax.f32 %v2457_v31, 0.0  ;;  %v2630_v46 = vsel %vm7563_vm5, %v2489_v39, 0.0 }
 0x3fd   :  { %v2601_v62 = vmax.f32 %v2473_v12, 0.0  ;;  %v2646_v29 = vsel %vm7563_vm5, %v2505_v14, 0.0  ;;  %v2662_v40 = vsel %vm7563_vm5, %v2521_v23, 0.0  ;;  %v2678_v52 = vsel %vm7563_vm5, %v2537_v25, 0.0  ;;  %2759 = vst [vmem:[#allocation2 + $0x30] sm:$0xff] %v2630_v46 }
 0x3fe   :  { %v2694_v13 = vsel %vm7563_vm5, %v2553_v24, 0.0  ;;  %v2710_v9 = vsel %vm7563_vm5, %v2569_v21, 0.0  ;;  %v2726_v56 = vsel %vm7563_vm5, %v2585_v0, 0.0  ;;  %2775 = vst [vmem:[#allocation2 + $0xb0] sm:$0xff] %v2646_v29  ;;  %2791 = vst [vmem:[#allocation2 + $0x130] sm:$0xff] %v2662_v40  ;;  %v2359_v50 = vadd.f32 %v2328_v30, %v7429_v17  ;;  %v2338_v0 = vpop.permute.xlu1 %2337 }
 0x3ff   :  { %v2742_v44 = vsel %vm7563_vm5, %v2601_v62, 0.0  ;;  %2807 = vst [vmem:[#allocation2 + $0x1b0] sm:$0xff] %v2678_v52  ;;  %2823 = vst [vmem:[#allocation2 + $0x230] sm:$0xff] %v2694_v13  ;;  %v2375_v45 = vadd.f32 %v2328_v30, %v7432_v37  ;;  %v2391_v15 = vadd.f32 %v2328_v30, %v7435_v19  ;;  %v2407_v1 = vadd.f32 %v2328_v30, %v7438_v22 }
 0x400   :  { %2839 = vst [vmem:[#allocation2 + $0x2b0] sm:$0xff] %v2710_v9  ;;  %2855 = vst [vmem:[#allocation2 + $0x330] sm:$0xff] %v2726_v56  ;;  %v2423_v20 = vadd.f32 %v2328_v30, %v7441_v6  ;;  %v2439_v54 = vadd.f32 %v2328_v30, %v7444_v43  ;;  %v2455_v41 = vadd.f32 %v2328_v30, %v7446_v47  ;;  %v2487_v10 = vmax.f32 %v2359_v50, 0.0 }
 0x401   :  { %2871 = vst [vmem:[#allocation2 + $0x3b0] sm:$0xff] %v2742_v44  ;;  %v2471_v18 = vadd.f32 %v2328_v30, %v7448_v35  ;;  %v2503_v42 = vmax.f32 %v2375_v45, 0.0  ;;  %v2519_v36 = vmax.f32 %v2391_v15, 0.0  ;;  %v2535_v59 = vmax.f32 %v2407_v1, 0.0  ;;  %v8662_v44 = vld [vmem:[#allocation121_spill] sm:$0xff] }
 0x402   :  { %v2551_v60 = vmax.f32 %v2423_v20, 0.0  ;;  %v2567_v17 = vmax.f32 %v2439_v54, 0.0  ;;  %v2583_v57 = vmax.f32 %v2455_v41, 0.0  ;;  %v2628_v19 = vsel %vm7563_vm5, %v2487_v10, 0.0 }
 0x403   :  { %v2599_v37 = vmax.f32 %v2471_v18, 0.0  ;;  %v2644_v22 = vsel %vm7563_vm5, %v2503_v42, 0.0  ;;  %v2660_v6 = vsel %vm7563_vm5, %v2519_v36, 0.0  ;;  %v2676_v43 = vsel %vm7563_vm5, %v2535_v59, 0.0  ;;  %2757 = vst [vmem:[#allocation2 + $0x20] sm:$0xff] %v2628_v19  ;;  %v7689_v18 = vpop.permute.xlu0 %2352 }
 0x404   :  { %v2692_v47 = vsel %vm7563_vm5, %v2551_v60, 0.0  ;;  %v2708_v35 = vsel %vm7563_vm5, %v2567_v17, 0.0  ;;  %v2724_v33 = vsel %vm7563_vm5, %v2583_v57, 0.0  ;;  %2773 = vst [vmem:[#allocation2 + $0xa0] sm:$0xff] %v2644_v22  ;;  %2789 = vst [vmem:[#allocation2 + $0x120] sm:$0xff] %v2660_v6  ;;  %v2365_v51 = vadd.f32 %v2343_v11, %v7451_v53  ;;  %v8663_v57 = vld [vmem:[#allocation122_spill] sm:$0xff] }
 0x405   :  { %v2740_v48 = vsel %vm7563_vm5, %v2599_v37, 0.0  ;;  %2805 = vst [vmem:[#allocation2 + $0x1a0] sm:$0xff] %v2676_v43  ;;  %2821 = vst [vmem:[#allocation2 + $0x220] sm:$0xff] %v2692_v47  ;;  %v2381_v7 = vadd.f32 %v2343_v11, %v7454_v4  ;;  %v2397_v55 = vadd.f32 %v2343_v11, %v7457_v27  ;;  %v2413_v38 = vadd.f32 %v2343_v11, %v7460_v5  ;;  %v8665_v22 = vld [vmem:[#allocation124_spill] sm:$0xff]  ;;  %v8666_v43 = vld [vmem:[#allocation127_spill] sm:$0xff] }
 0x406   :  { %2837 = vst [vmem:[#allocation2 + $0x2a0] sm:$0xff] %v2708_v35  ;;  %2853 = vst [vmem:[#allocation2 + $0x320] sm:$0xff] %v2724_v33  ;;  %v2429_v31 = vadd.f32 %v2343_v11, %v7463_v16  ;;  %v2445_v12 = vadd.f32 %v2343_v11, %v7466_v32  ;;  %v2461_v39 = vadd.f32 %v2343_v11, %v7468_v3  ;;  %v2493_v23 = vmax.f32 %v2365_v51, 0.0  ;;  %v8667_v35 = vld [vmem:[#allocation126_spill] sm:$0xff] }
 0x407   :  { %2869 = vst [vmem:[#allocation2 + $0x3a0] sm:$0xff] %v2740_v48  ;;  %v2477_v14 = vadd.f32 %v2343_v11, %v7470_v2  ;;  %v2509_v25 = vmax.f32 %v2381_v7, 0.0  ;;  %v2525_v24 = vmax.f32 %v2397_v55, 0.0  ;;  %v2541_v21 = vmax.f32 %v2413_v38, 0.0  ;;  %v8664_v11 = vld [vmem:[#allocation125_spill] sm:$0xff]  ;;  %v8669_v7 = vld [vmem:[#allocation128_spill] sm:$0xff] }
 0x408   :  { %v2557_v53 = vmax.f32 %v2429_v31, 0.0  ;;  %v2573_v62 = vmax.f32 %v2445_v12, 0.0  ;;  %v2589_v4 = vmax.f32 %v2461_v39, 0.0  ;;  %v2634_v27 = vsel %vm7563_vm5, %v2493_v23, 0.0  ;;  %v8668_v48 = vld [vmem:[#allocation129_spill] sm:$0xff]  ;;  %v8670_v38 = vld [vmem:[#allocation131_spill] sm:$0xff] }
 0x409   :  { %v2605_v30 = vmax.f32 %v2477_v14, 0.0  ;;  %v2650_v5 = vsel %vm7563_vm5, %v2509_v25, 0.0  ;;  %v2666_v16 = vsel %vm7563_vm5, %v2525_v24, 0.0  ;;  %v2682_v32 = vsel %vm7563_vm5, %v2541_v21, 0.0  ;;  %2763 = vst [vmem:[#allocation2 + $0x50] sm:$0xff] %v2634_v27  ;;  %v1821_v25 = vpop.permute.xlu0 %1820 }
 0x40a   :  { %v2698_v3 = vsel %vm7563_vm5, %v2557_v53, 0.0  ;;  %v2714_v2 = vsel %vm7563_vm5, %v2573_v62, 0.0  ;;  %v2730_v46 = vsel %vm7563_vm5, %v2589_v4, 0.0  ;;  %2779 = vst [vmem:[#allocation2 + $0xd0] sm:$0xff] %v2650_v5  ;;  %2795 = vst [vmem:[#allocation2 + $0x150] sm:$0xff] %v2666_v16  ;;  %v2363_v40 = vadd.f32 %v2338_v0, %v7473_v58  ;;  %v7691_v58 = vpop.permute.xlu1 %2347  ;;  %v8671_v62 = vld [vmem:[#allocation130_spill] sm:$0xff] }
 0x40b   :  { %v2746_v29 = vsel %vm7563_vm5, %v2605_v30, 0.0  ;;  %2811 = vst [vmem:[#allocation2 + $0x1d0] sm:$0xff] %v2682_v32  ;;  %2827 = vst [vmem:[#allocation2 + $0x250] sm:$0xff] %v2698_v3  ;;  %v2379_v52 = vadd.f32 %v2338_v0, %v7476_v49  ;;  %v2395_v13 = vadd.f32 %v2338_v0, %v7479_v34  ;;  %v2411_v9 = vadd.f32 %v2338_v0, %v7482_v26 }
 0x40c   :  { %2843 = vst [vmem:[#allocation2 + $0x2d0] sm:$0xff] %v2714_v2  ;;  %2859 = vst [vmem:[#allocation2 + $0x350] sm:$0xff] %v2730_v46  ;;  %v2427_v56 = vadd.f32 %v2338_v0, %v7485_v61  ;;  %v2443_v50 = vadd.f32 %v2338_v0, %v8662_v44  ;;  %v2459_v45 = vadd.f32 %v2338_v0, %v7495_v8  ;;  %v2491_v1 = vmax.f32 %v2363_v40, 0.0  ;;  %v8672_v46 = vld [vmem:[#allocation133_spill] sm:$0xff]  ;;  %v8673_v40 = vld [vmem:[#allocation132_spill] sm:$0xff] }
 0x40d   :  { %2875 = vst [vmem:[#allocation2 + $0x3d0] sm:$0xff] %v2746_v29  ;;  %v2475_v15 = vadd.f32 %v2338_v0, %v7497_v28  ;;  %v2507_v20 = vmax.f32 %v2379_v52, 0.0  ;;  %v2523_v54 = vmax.f32 %v2395_v13, 0.0  ;;  %v2539_v41 = vmax.f32 %v2411_v9, 0.0  ;;  %v8674_v13 = vld [vmem:[#allocation135_spill] sm:$0xff] }
 0x40e   :  { %v2555_v49 = vmax.f32 %v2427_v56, 0.0  ;;  %v2571_v34 = vmax.f32 %v2443_v50, 0.0  ;;  %v2587_v10 = vmax.f32 %v2459_v45, 0.0  ;;  %v2632_v61 = vsel %vm7563_vm5, %v2491_v1, 0.0  ;;  %v1819_v24 = vpop.permute.xlu1 %1818  ;;  %v8675_v56 = vld [vmem:[#allocation134_spill] sm:$0xff] }
 0x40f   :  { %v2603_v26 = vmax.f32 %v2475_v15, 0.0  ;;  %v2648_v8 = vsel %vm7563_vm5, %v2507_v20, 0.0  ;;  %v2664_v28 = vsel %vm7563_vm5, %v2523_v54, 0.0  ;;  %v2680_v42 = vsel %vm7563_vm5, %v2539_v41, 0.0  ;;  %2761 = vst [vmem:[#allocation2 + $0x40] sm:$0xff] %v2632_v61  ;;  %v8676_v50 = vld [vmem:[#allocation18_spill] sm:$0xff] }
 0x410   :  { %v2696_v36 = vsel %vm7563_vm5, %v2555_v49, 0.0  ;;  %v2712_v59 = vsel %vm7563_vm5, %v2571_v34, 0.0  ;;  %v2728_v60 = vsel %vm7563_vm5, %v2587_v10, 0.0  ;;  %2777 = vst [vmem:[#allocation2 + $0xc0] sm:$0xff] %v2648_v8  ;;  %2793 = vst [vmem:[#allocation2 + $0x140] sm:$0xff] %v2664_v28  ;;  %v2369_v37 = vadd.f32 %v7689_v18, %v8663_v57 }
 0x411   :  { %v2744_v17 = vsel %vm7563_vm5, %v2603_v26, 0.0  ;;  %2809 = vst [vmem:[#allocation2 + $0x1c0] sm:$0xff] %v2680_v42  ;;  %2825 = vst [vmem:[#allocation2 + $0x240] sm:$0xff] %v2696_v36  ;;  %v2385_v19 = vadd.f32 %v7689_v18, %v8664_v11  ;;  %v2401_v6 = vadd.f32 %v7689_v18, %v8665_v22  ;;  %v2417_v47 = vadd.f32 %v7689_v18, %v8666_v43  ;;  %v1825_v26 = vpop.permute.xlu0 %1824  ;;  %v8677_v36 = vld [vmem:[#allocation108_spill] sm:$0xff]  ;;  %v8678_v11 = vld [vmem:[#allocation123_spill] sm:$0xff] }
 0x412   :  { %2841 = vst [vmem:[#allocation2 + $0x2c0] sm:$0xff] %v2712_v59  ;;  %2857 = vst [vmem:[#allocation2 + $0x340] sm:$0xff] %v2728_v60  ;;  %v2433_v33 = vadd.f32 %v7689_v18, %v8667_v35  ;;  %v2449_v51 = vadd.f32 %v7689_v18, %v8668_v48  ;;  %v2465_v55 = vadd.f32 %v7689_v18, %v8669_v7  ;;  %v2497_v12 = vmax.f32 %v2369_v37, 0.0  ;;  %v1823_v61 = vpop.permute.xlu1 %1822  ;;  %v8680_v35 = vld [vmem:[#allocation120_spill] sm:$0xff] }
 0x413   :  { %2873 = vst [vmem:[#allocation2 + $0x3c0] sm:$0xff] %v2744_v17  ;;  %v2367_v31 = vadd.f32 %v7691_v58, %v8670_v38  ;;  %v2513_v39 = vmax.f32 %v2385_v19, 0.0  ;;  %v2529_v14 = vmax.f32 %v2401_v6, 0.0  ;;  %v2545_v23 = vmax.f32 %v2417_v47, 0.0  ;;  %v8679_v6 = vld [vmem:[#allocation105_spill] sm:$0xff] }
 0x414   :  { %v2561_v21 = vmax.f32 %v2433_v33, 0.0  ;;  %v2577_v0 = vmax.f32 %v2449_v51, 0.0  ;;  %v2593_v53 = vmax.f32 %v2465_v55, 0.0  ;;  %v2383_v4 = vadd.f32 %v7691_v58, %v8671_v62 }
 0x415   :  { %v2638_v30 = vsel %vm7563_vm5, %v2497_v12, 0.0  ;;  %v2654_v27 = vsel %vm7563_vm5, %v2513_v39, 0.0  ;;  %v2670_v5 = vsel %vm7563_vm5, %v2529_v14, 0.0  ;;  %v2686_v16 = vsel %vm7563_vm5, %v2545_v23, 0.0 }
 0x416   :  { %v2702_v32 = vsel %vm7563_vm5, %v2561_v21, 0.0  ;;  %v2718_v3 = vsel %vm7563_vm5, %v2577_v0, 0.0  ;;  %v2734_v2 = vsel %vm7563_vm5, %v2593_v53, 0.0  ;;  %2767 = vst [vmem:[#allocation2 + $0x70] sm:$0xff] %v2638_v30  ;;  %2783 = vst [vmem:[#allocation2 + $0xf0] sm:$0xff] %v2654_v27  ;;  %v2399_v29 = vadd.f32 %v7691_v58, %v8672_v46 }
 0x417   :  { %2799 = vst [vmem:[#allocation2 + $0x170] sm:$0xff] %v2670_v5  ;;  %2815 = vst [vmem:[#allocation2 + $0x1f0] sm:$0xff] %v2686_v16  ;;  %v2415_v52 = vadd.f32 %v7691_v58, %v8673_v40  ;;  %v2431_v9 = vadd.f32 %v7691_v58, %v8674_v13  ;;  %v2447_v44 = vadd.f32 %v7691_v58, %v8675_v56  ;;  %v2495_v15 = vmax.f32 %v2367_v31, 0.0 }
 0x418   :  { %2831 = vst [vmem:[#allocation2 + $0x270] sm:$0xff] %v2702_v32  ;;  %2847 = vst [vmem:[#allocation2 + $0x2f0] sm:$0xff] %v2718_v3  ;;  %v2463_v45 = vadd.f32 %v7691_v58, %v8676_v50  ;;  %v2511_v1 = vmax.f32 %v2383_v4, 0.0  ;;  %v2527_v20 = vmax.f32 %v2399_v29, 0.0  ;;  %v1889_v54 = vsel %vm1826_vm0, %v1819_v24, %v1821_v25 }
 0x419   :  { %2863 = vst [vmem:[#allocation2 + $0x370] sm:$0xff] %v2734_v2  ;;  %v2543_v41 = vmax.f32 %v2415_v52, 0.0  ;;  %v2559_v49 = vmax.f32 %v2431_v9, 0.0  ;;  %v2575_v34 = vmax.f32 %v2447_v44, 0.0  ;;  %v2636_v8 = vsel %vm7563_vm5, %v2495_v15, 0.0 }
 0x41a   :  { %v2591_v10 = vmax.f32 %v2463_v45, 0.0  ;;  %v2652_v28 = vsel %vm7563_vm5, %v2511_v1, 0.0  ;;  %v2668_v42 = vsel %vm7563_vm5, %v2527_v20, 0.0  ;;  %v2143_v59 = vadd.f32 %v1889_v54, %v8677_v36  ;;  %2765 = vst [vmem:[#allocation2 + $0x60] sm:$0xff] %v2636_v8 }
 0x41b   :  { %v2684_v60 = vsel %vm7563_vm5, %v2543_v41, 0.0  ;;  %v2700_v17 = vsel %vm7563_vm5, %v2559_v49, 0.0  ;;  %v2716_v57 = vsel %vm7563_vm5, %v2575_v34, 0.0  ;;  %2781 = vst [vmem:[#allocation2 + $0xe0] sm:$0xff] %v2652_v28  ;;  %2797 = vst [vmem:[#allocation2 + $0x160] sm:$0xff] %v2668_v42  ;;  %v1890_v22 = vsel %vm1826_vm0, %v1823_v61, %v1825_v26 }
 0x41c   :  { %v2732_v37 = vsel %vm7563_vm5, %v2591_v10, 0.0  ;;  %2813 = vst [vmem:[#allocation2 + $0x1e0] sm:$0xff] %v2684_v60  ;;  %2829 = vst [vmem:[#allocation2 + $0x260] sm:$0xff] %v2700_v17  ;;  %v2311_v19 = vmul.f32 %v8678_v11, %v2143_v59  ;;  %v2145_v43 = vadd.f32 %v1890_v22, %v8679_v6 }
 0x41d   :  { %2845 = vst [vmem:[#allocation2 + $0x2e0] sm:$0xff] %v2716_v57  ;;  %2861 = vst [vmem:[#allocation2 + $0x360] sm:$0xff] %v2732_v37 }
 0x41e   :  { %v2479_v47 = vadd.f32 %v7691_v58, %v2311_v19  ;;  %v2313_v33 = vmul.f32 %v8680_v35, %v2145_v43 }
 0x420   :  { %v2607_v48 = vmax.f32 %v2479_v47, 0.0  ;;  %v2481_v51 = vadd.f32 %v7689_v18, %v2313_v33 }
 0x422   :  { %v2748_v7 = vsel %vm7563_vm5, %v2607_v48, 0.0  ;;  %v2609_v55 = vmax.f32 %v2481_v51, 0.0 }
 0x423   :  { %2877 = vst [vmem:[#allocation2 + $0x3e0] sm:$0xff] %v2748_v7 }
 0x424   :  { %v2750_v38 = vsel %vm7563_vm5, %v2609_v55, 0.0 }
 0x425   :  { %2879 = vst [vmem:[#allocation2 + $0x3f0] sm:$0xff] %v2750_v38 }
 0x426 LB: > { %s4012_s5 = sshll.u32 %s4501_s6, 7  ;;  %s4510_s18 = smov 127   ;;  %vm3018_vm6 = vcmask 523264   ;;  %v8681_v56 = vld [vmem:[#allocation31_spill] sm:$0xff]  ;;  %v8682_v44 = vld [vmem:[#allocation17_spill] sm:$0xff]  ;;  %v8683_v50 = vld [vmem:[#allocation20_spill] sm:$0xff]  ;;  %s4501_s6 = sphi %s7777_s6, %s2886_s6  }
 0x427   : > { %s7783_s17 = scalar_lea.vmem [#allocation2], %s4012_s5  ;;  %4205 = vmatprep.mubr.msk.f32.mxu0 %vm3018_vm6, %v8681_v56  ;;  %s4511_s19 = smov 126   ;;  %v8684_v45 = vld [vmem:[#allocation38_spill] sm:$0xff]  ;;  %v8686_v1 = vld [vmem:[#allocation45_spill] sm:$0xff]  ;;  %v8687_v20 = vld [vmem:[#allocation36_spill] sm:$0xff]  ;;  %v4513_v49 = vmov 0  }
 0x428   : > { %s4512_s1 = smov 64   ;;  %v8685_v15 = vld [vmem:[#allocation26_spill] sm:$0xff]  ;;  %v8689_v41 = vld [vmem:[#allocation16_spill] sm:$0xff]  ;;  %4470 = vset.pattern.permute.xlu1 %v4513_v49  ;;  %4469 = vset.pattern.permute.xlu0 %v4513_v49  ;;  %v8691_v10 = vld [vmem:[#allocation43_spill] sm:$0xff]  ;;  %s4029_s21 = sshll.u32 %s4501_s6, 6 }
 0x429   : > { %v8688_v54 = vld [vmem:[#allocation46_spill] sm:$0xff]  ;;  %v8693_v61 = vld [vmem:[#allocation51_spill] sm:$0xff]  ;;  %v8694_v8 = vld [vmem:[#allocation69_spill] sm:$0xff]  ;;  %s8014_s22 = scalar_lea.vmem [#allocation3], %s4029_s21  ;;  %s2886_s6 = sadd.s32 1, %s4501_s6  }
 0x42a   : > { %v8690_v34 = vld [vmem:[#allocation50_spill] sm:$0xff]  ;;  %v8695_v28 = vld [vmem:[#allocation67_spill] sm:$0xff]  ;;  %v8697_v36 = vld [vmem:[#allocation72_spill] sm:$0xff]  ;;  %p2883_p0 = scmp.ge.s32.totalorder %s2886_s6, 8  }
 0x42b   : > { %v8692_v26 = vld [vmem:[#allocation54_spill] sm:$0xff]  ;;  %v8698_v59 = vld [vmem:[#allocation77_spill] sm:$0xff]  ;;  %v8699_v60 = vld [vmem:[#allocation76_spill] sm:$0xff]  ;;  %s4514_s23 = smov (%p2883_p0), [#allocation3]  }
 0x42c   : > { %v2894_v63 = vld [vmem:[%s7783_s17 + $0x20] sm:$0xff]  ;;  %v2895_v18 = vld [vmem:[%s7783_s17 + $0x28] sm:$0xff]  ;;  %v2896_v58 = vld [vmem:[%s7783_s17 + $0x30] sm:$0xff]  ;;  %s3925_s24 = sshll.u32 (%p2883_p0), %s4514_s23, 4  ;;  %s3926_s24 = int_to_ptr.vmem [resolvable:$true] %s3925_s24 }
 0x42d   : > { %v4399_v31 = vpack.i.bf16 %v2895_v18, %v2894_v63  ;;  %v2890_v12 = vld [vmem:[%s7783_s17] sm:$0xff]  ;;  %v2891_v39 = vld [vmem:[%s7783_s17 + $0x8] sm:$0xff]  ;;  %v2892_v14 = vld [vmem:[%s7783_s17 + $0x10] sm:$0xff]  ;;  %v7796_v0 = vpack.c.bf16 %v2896_v58, %v2894_v63  ;;  %s4471_s25 = scalar_lea.vmem (%p2883_p0), %s3926_s24, 8192  ;;  %p4476_p2 = scmp.lt.s32.totalorder (%p2883_p0), %s3926_s24, %s3926_s24 }
 0x42e   : > { %v4389_v23 = vpack.i.bf16 %v2891_v39, %v2890_v12  ;;  %v7791_v25 = vpack.c.bf16 %v2892_v14, %v2890_v12  ;;  %v2897_v24 = vld [vmem:[%s7783_s17 + $0x38] sm:$0xff]  ;;  %v2900_v4 = vld [vmem:[%s7783_s17 + $0x50] sm:$0xff]  ;;  %v2898_v27 = vld [vmem:[%s7783_s17 + $0x40] sm:$0xff]  ;;  %p4472_p1 = scmp.ne.s32.totalorder (%p2883_p0), %s3926_s24, %s4471_s25  ;;  %p4477_p3 = scmp.lt.s32.totalorder (%p2883_p0), %s4471_s25, %s4471_s25 }
 0x42f   : > { %v2893_v21 = vld [vmem:[%s7783_s17 + $0x18] sm:$0xff]  ;;  %4400 = vrot.lane.b32.xlu1 %v4399_v31, %s4510_s18  ;;  %v4404_v53 = vpack.i.bf16 %v2897_v24, %v2896_v58  ;;  %v2899_v5 = vld [vmem:[%s7783_s17 + $0x48] sm:$0xff]  ;;  %v7807_v32 = vpack.c.bf16 %v2900_v4, %v2898_v27  ;;  %v2904_v2 = vld [vmem:[%s7783_s17 + $0x70] sm:$0xff] }
 0x430   : > { %4390 = vrot.lane.b32.xlu0 %v4389_v23, %s4510_s18  ;;  %v4394_v62 = vpack.i.bf16 %v2893_v21, %v2892_v14  ;;  %v2901_v30 = vld [vmem:[%s7783_s17 + $0x58] sm:$0xff]  ;;  %4286 = vmatprep.subr.bf16.mxu0 %v7791_v25  ;;  %v4409_v3 = vpack.i.bf16 %v2899_v5, %v2898_v27  ;;  %v2902_v29 = vld [vmem:[%s7783_s17 + $0x60] sm:$0xff]  ;;  %v2903_v40 = vld [vmem:[%s7783_s17 + $0x68] sm:$0xff]  ;;  %p4478_p4 = por (%p2883_p0), %p4477_p3, %p4476_p2 }
 0x431   : > { %4288 = vmatpush3.bf16.msra.mxu0 %v7791_v25  ;;  %v4414_v16 = vpack.i.bf16 %v2901_v30, %v2900_v4  ;;  %v2905_v46 = vld [vmem:[%s7783_s17 + $0x78] sm:$0xff]  ;;  %v7817_v13 = vpack.c.bf16 %v2904_v2, %v2902_v29  ;;  %v4419_v9 = vpack.i.bf16 %v2903_v40, %v2902_v29  ;;  %v8696_v42 = vld [vmem:[#allocation62_spill] sm:$0xff]  ;;  %v8700_v17 = vld [vmem:[#allocation64_spill] sm:$0xff] }
 0x432   : > { %4290 = vmatprep.subr.bf16.mxu0 %v7796_v0  ;;  %v4424_v52 = vpack.i.bf16 %v2905_v46, %v2904_v2  ;;  %v8701_v57 = vld [vmem:[#allocation65_spill] sm:$0xff]  ;;  %v8702_v37 = vld [vmem:[#allocation71_spill] sm:$0xff]  ;;  %v8703_v11 = vld [vmem:[#allocation188_spill] sm:$0xff]  ;;  %p4479_p5 = pnand (%p2883_p0), %p4478_p4, %p4472_p1 }
 0x433   : > { %4405 = vrot.lane.b32.xlu1 %v4404_v53, %s4510_s18  ;;  %v8704_v19 = vld [vmem:[#allocation74_spill] sm:$0xff]  ;;  %v8705_v22 = vld [vmem:[#allocation83_spill] sm:$0xff]  ;;  %v8706_v6 = vld [vmem:[#allocation84_spill] sm:$0xff] }
 0x434   : > { %4395 = vrot.lane.b32.xlu0 %v4394_v62, %s4510_s18  ;;  %v8707_v43 = vld [vmem:[#allocation85_spill] sm:$0xff]  ;;  %v8708_v47 = vld [vmem:[#allocation92_spill] sm:$0xff]  ;;  %v8710_v33 = vld [vmem:[#allocation78_spill] sm:$0xff] }
 0x435   : > { %4292 = vmatpush3.bf16.msra.mxu0 %v7796_v0  ;;  %v8709_v35 = vld [vmem:[#allocation93_spill] sm:$0xff]  ;;  %v8711_v48 = vld [vmem:[#allocation80_spill] sm:$0xff]  ;;  %v8713_v7 = vld [vmem:[#allocation99_spill] sm:$0xff] }
 0x436   : > { %4294 = vmatprep.subr.bf16.mxu0 %v7807_v32  ;;  %v8712_v51 = vld [vmem:[#allocation81_spill] sm:$0xff]  ;;  %v8714_v55 = vld [vmem:[#allocation98_spill] sm:$0xff]  ;;  %v8716_v63 = vld [vmem:[#allocation100_spill] sm:$0xff] }
 0x437   : > { %4415 = vrot.lane.b32.xlu1 %v4414_v16, %s4510_s18  ;;  %v8715_v38 = vld [vmem:[#allocation101_spill] sm:$0xff]  ;;  %v8717_v18 = vld [vmem:[#allocation190_spill] sm:$0xff]  ;;  %v8720_v12 = vld [vmem:[#allocation104_spill] sm:$0xff] }
 0x438   : > { %4410 = vrot.lane.b32.xlu0 %v4409_v3, %s4510_s18  ;;  %v8718_v58 = vld [vmem:[#allocation86_spill] sm:$0xff]  ;;  %v8722_v14 = vld [vmem:[#allocation91_spill] sm:$0xff] }
 0x439   : > { %4296 = vmatpush3.bf16.msra.mxu0 %v7807_v32  ;;  %v8721_v39 = vld [vmem:[#allocation90_spill] sm:$0xff] }
 0x43a   : > { %4298 = vmatprep.subr.bf16.mxu0 %v7817_v13 }
 0x43b   : > { %4425 = vrot.lane.b32.xlu1 %v4424_v52, %s4510_s18 }
 0x43c   : > { %4420 = vrot.lane.b32.xlu0 %v4419_v9, %s4510_s18 }
 0x43d   : > { %4300 = vmatpush3.bf16.msra.mxu0 %v7817_v13 }
 0x43f   : > { %4435 = vrot.lane.b32.xlu1 %v4394_v62, %s4511_s19  ;;  %v8725_v62 = vld [vmem:[#allocation103_spill] sm:$0xff] }
 0x440   : > { %4430 = vrot.lane.b32.xlu0 %v4389_v23, %s4511_s19  ;;  %4206 = vmatmul.mubr.msk.f32.vlgmr.msra.gmra.mrb[0].mxu0 %vm3018_vm6, %v8682_v44  ;;  %v8723_v23 = vld [vmem:[#allocation97_spill] sm:$0xff] }
 0x441   : > { %4208 = vmatprep.mubr.msk.f32.mxu0 %vm3018_vm6, %v8683_v50 }
 0x443   : > { %2924 = vrot.lane.b32.xlu1 %v8682_v44, %s4512_s1 }
 0x444   : > { %2922 = vrot.lane.b32.xlu0 %v8681_v56, %s4512_s1  ;;  %4209 = vmatmul.mubr.msk.f32.gmra.mrb[2].mxu0 %vm3018_vm6, %v8684_v45 }
 0x445   : > { %4211 = vmatprep.mubr.msk.f32.mxu0 %vm3018_vm6, %v8685_v15 }
 0x447   : > { %4445 = vrot.lane.b32.xlu1 %v4404_v53, %s4511_s19  ;;  %v8724_v53 = vld [vmem:[#allocation96_spill] sm:$0xff] }
 0x448   : > { %4440 = vrot.lane.b32.xlu0 %v4399_v31, %s4511_s19  ;;  %4212 = vmatmul.mubr.msk.f32.gmra.mrb[4].mxu0 %vm3018_vm6, %v8686_v1  ;;  %v8719_v31 = vld [vmem:[#allocation87_spill] sm:$0xff] }
 0x449   : > { %4214 = vmatprep.mubr.msk.f32.mxu0 %vm3018_vm6, %v8687_v20 }
 0x44b   : > { %2928 = vrot.lane.b32.xlu1 %v8684_v45, %s4512_s1 }
 0x44c   : > { %2926 = vrot.lane.b32.xlu0 %v8683_v50, %s4512_s1  ;;  %4215 = vmatmul.mubr.msk.f32.gmra.mrb[6].mxu0 %vm3018_vm6, %v8688_v54 }
 0x44d   : > { %4245 = vmatprep.mubr.msk.f32.mxu0 %vm3018_vm6, %v8689_v41 }
 0x44f   : > { %4455 = vrot.lane.b32.xlu1 %v4414_v16, %s4511_s19 }
 0x450   : > { %4450 = vrot.lane.b32.xlu0 %v4409_v3, %s4511_s19 }
 0x453   : > { %2932 = vrot.lane.b32.xlu1 %v8686_v1, %s4512_s1 }
 0x454   : > { %2930 = vrot.lane.b32.xlu0 %v8685_v15, %s4512_s1 }
 0x457   : > { %4465 = vrot.lane.b32.xlu1 %v4424_v52, %s4511_s19  ;;  %v8726_v52 = vld [vmem:[#allocation102_spill] sm:$0xff] }
 0x458   : > { %4460 = vrot.lane.b32.xlu0 %v4419_v9, %s4511_s19  ;;  %v8727_v9 = vld [vmem:[#allocation107_spill] sm:$0xff] }
 0x45b   : > { %2936 = vrot.lane.b32.xlu1 %v8688_v54, %s4512_s1 }
 0x45c   : > { %2934 = vrot.lane.b32.xlu0 %v8687_v20, %s4512_s1 }
 0x45f   : > { %2940 = vrot.lane.b32.xlu1 %v8690_v34, %s4512_s1 }
 0x460   : > { %2938 = vrot.lane.b32.xlu0 %v8691_v10, %s4512_s1 }
 0x463   : > { %2944 = vrot.lane.b32.xlu1 %v8692_v26, %s4512_s1 }
 0x464   : > { %2942 = vrot.lane.b32.xlu0 %v8693_v61, %s4512_s1 }
 0x467   : > { %2948 = vrot.lane.b32.xlu1 %v8694_v8, %s4512_s1 }
 0x468   : > { %2946 = vrot.lane.b32.xlu0 %v8695_v28, %s4512_s1 }
 0x46b   : > { %2952 = vrot.lane.b32.xlu1 %v8696_v42, %s4512_s1 }
 0x46c   : > { %2950 = vrot.lane.b32.xlu0 %v8697_v36, %s4512_s1 }
 0x46f   : > { %3637 = vperm.xlu1 %4470, %v8698_v59  }
 0x470   : > { %3632 = vperm.xlu0 %4469, %v8699_v60  }
 0x473   : > { %3642 = vperm.xlu1 %4470, %v8700_v17  }
 0x474   : > { %3647 = vperm.xlu0 %4469, %v8701_v57  }
 0x477   : > { %3652 = vperm.xlu1 %4470, %v8702_v37  }
 0x478   : > { %3657 = vperm.xlu0 %4469, %v8703_v11  }
 0x47b   : > { %3662 = vperm.xlu1 %4470, %v8704_v19  }
 0x47c   : > { %3667 = vperm.xlu0 %4469, %v8705_v22  }
 0x47f   : > { %3672 = vperm.xlu1 %4470, %v8706_v6  }
 0x480   : > { %3677 = vperm.xlu0 %4469, %v8707_v43   ;;  %v8728_v43 = vld [vmem:[#allocation106_spill] sm:$0xff] }
 0x483   : > { %3682 = vperm.xlu1 %4470, %v8708_v47  }
 0x484   : > { %3687 = vperm.xlu0 %4469, %v8709_v35   ;;  %v8729_v35 = vld [vmem:[#allocation109_spill] sm:$0xff] }
 0x487   : > { %3692 = vperm.xlu1 %4470, %v8710_v33  }
 0x488   : > { %3697 = vperm.xlu0 %4469, %v8711_v48  }
 0x48b   : > { %3702 = vperm.xlu1 %4470, %v8712_v51  }
 0x48c   : > { %3707 = vperm.xlu0 %4469, %v8713_v7  }
 0x48f   : > { %3728 = vperm.xlu1 %4470, %v8714_v55  }
 0x490   : > { %3733 = vperm.xlu0 %4469, %v8715_v38  }
 0x493   : > { %3738 = vperm.xlu1 %4470, %v8716_v63  }
 0x494   : > { %3743 = vperm.xlu0 %4469, %v8717_v18  }
 0x497   : > { %3748 = vperm.xlu1 %4470, %v8718_v58  }
 0x498   : > { %3753 = vperm.xlu0 %4469, %v8719_v31  }
 0x49b   : > { %3758 = vperm.xlu1 %4470, %v8720_v12  }
 0x49c   : > { %3763 = vperm.xlu0 %4469, %v8721_v39  }
 0x49f   : > { %3768 = vperm.xlu1 %4470, %v8722_v14  }
 0x4a0   : > { %3773 = vperm.xlu0 %4469, %v8723_v23  }
 0x4a1   : > { %v4401_v24 = vpop.permute.xlu1 %4400 }
 0x4a2   : > { %v4391_v21 = vpop.permute.xlu0 %4390  ;;  %v4403_v2 = vunpack.i.h.bf16 %v4401_v24  ;;  %v4402_v46 = vunpack.i.l.bf16 %v4401_v24 }
 0x4a3   : > { %3778 = vperm.xlu1 %4470, %v8724_v53   ;;  %v4393_v4 = vunpack.i.h.bf16 %v4391_v21  ;;  %v4392_v30 = vunpack.i.l.bf16 %v4391_v21 }
 0x4a4   : > { %3783 = vperm.xlu0 %4469, %v8725_v62   ;;  %v3004_v19 = vsel %vm961_vm1, %v4402_v46, %v4403_v2 }
 0x4a5   : > { %v4406_v27 = vpop.permute.xlu1 %4405  ;;  %v3002_v59 = vsel %vm961_vm1, %v4392_v30, %v4393_v4 }
 0x4a6   : > { %v4408_v5 = vunpack.i.h.bf16 %v4406_v27  ;;  %v4407_v16 = vunpack.i.l.bf16 %v4406_v27  ;;  %v4396_v3 = vpop.permute.xlu0 %4395 }
 0x4a7   : > { %v4398_v29 = vunpack.i.h.bf16 %v4396_v3  ;;  %v4397_v40 = vunpack.i.l.bf16 %v4396_v3  ;;  %3788 = vperm.xlu1 %4470, %v8726_v52  }
 0x4a8   : > { %3793 = vperm.xlu0 %4469, %v8727_v9   ;;  %v3005_v41 = vsel %vm961_vm1, %v4407_v16, %v4408_v5 }
 0x4a9   : > { %v4416_v49 = vpop.permute.xlu1 %4415  ;;  %v3003_v60 = vsel %vm961_vm1, %v4397_v40, %v4398_v29  ;;  %v4273_v47 = vpack.c.bf16 %v3005_v41, %v3004_v19 }
 0x4aa   : > { %v4418_v17 = vunpack.i.h.bf16 %v4416_v49  ;;  %v4417_v57 = vunpack.i.l.bf16 %v4416_v49  ;;  %v4411_v37 = vpop.permute.xlu0 %4410  ;;  %v4269_v11 = vpack.c.bf16 %v3003_v60, %v3002_v59 }
 0x4ab   : > { %v4413_v22 = vunpack.i.h.bf16 %v4411_v37  ;;  %v4412_v6 = vunpack.i.l.bf16 %v4411_v37  ;;  %3798 = vperm.xlu1 %4470, %v8728_v43  }
 0x4ac   : > { %4270 = vmatprep.subr.bf16.mxu1 %v4269_v11  ;;  %3803 = vperm.xlu0 %4469, %v8729_v35   ;;  %v3007_v33 = vsel %vm961_vm1, %v4417_v57, %v4418_v17 }
 0x4ad   : > { %v3006_v48 = vsel %vm961_vm1, %v4412_v6, %v4413_v22  ;;  %4272 = vmatpush3.bf16.msra.mxu1 %v4269_v11  ;;  %v4426_v51 = vpop.permute.xlu1 %4425 }
 0x4ae   : > { %v4428_v7 = vunpack.i.h.bf16 %v4426_v51  ;;  %v4427_v55 = vunpack.i.l.bf16 %v4426_v51  ;;  %v4421_v38 = vpop.permute.xlu0 %4420  ;;  %4274 = vmatprep.subr.bf16.mxu1 %v4273_v47  ;;  %v4277_v58 = vpack.c.bf16 %v3007_v33, %v3006_v48 }
 0x4af   : > { %v4423_v63 = vunpack.i.h.bf16 %v4421_v38  ;;  %v4422_v18 = vunpack.i.l.bf16 %v4421_v38 }
 0x4b0   : > { %v3009_v31 = vsel %vm961_vm1, %v4427_v55, %v4428_v7 }
 0x4b1   : > { %v3008_v12 = vsel %vm961_vm1, %v4422_v18, %v4423_v63  ;;  %4276 = vmatpush3.bf16.msra.mxu1 %v4273_v47  ;;  %v4436_v39 = vpop.permute.xlu1 %4435 }
 0x4b2   : > { %v4438_v14 = vunpack.i.h.bf16 %v4436_v39  ;;  %v4437_v23 = vunpack.i.l.bf16 %v4436_v39  ;;  %v4431_v24 = vpop.permute.xlu0 %4430  ;;  %4278 = vmatprep.subr.bf16.mxu1 %v4277_v58  ;;  %v4281_v4 = vpack.c.bf16 %v3009_v31, %v3008_v12  ;;  %v8730_v12 = vld [vmem:[#allocation35_spill] sm:$0xff] }
 0x4b3   : > { %v4433_v21 = vunpack.i.h.bf16 %v4431_v24  ;;  %v4432_v53 = vunpack.i.l.bf16 %v4431_v24  ;;  %v8732_v24 = vld [vmem:[#allocation39_spill] sm:$0xff] }
 0x4b4   : > { %v3406_v62 = vsel %vm1826_vm0, %v4437_v23, %v4438_v14  ;;  %v8731_v14 = vld [vmem:[#allocation21_spill] sm:$0xff] }
 0x4b5   : > { %v3405_v30 = vsel %vm1826_vm0, %v4432_v53, %v4433_v21  ;;  %4280 = vmatpush3.bf16.msra.mxu1 %v4277_v58  ;;  %v2925_v27 = vpop.permute.xlu1 %2924  ;;  %v8733_v53 = vld [vmem:[#allocation44_spill] sm:$0xff] }
 0x4b6   : > { %v2923_v5 = vpop.permute.xlu0 %2922  ;;  %4282 = vmatprep.subr.bf16.mxu1 %v4281_v4  ;;  %v4301_v16 = vpack.c.bf16 %v3406_v62, %v3405_v30 }
 0x4b7   : > { %4165 = vmatprep.mubr.msk.f32.mxu1 %vm3018_vm6, %v2923_v5 }
 0x4b8   : > { %4302 = vmatprep.subr.bf16.mxu0 %v4301_v16 }
 0x4b9   : > { %4284 = vmatpush3.bf16.msra.mxu1 %v4281_v4  ;;  %4304 = vmatpush3.bf16.msra.mxu0 %v4301_v16  ;;  %v4446_v3 = vpop.permute.xlu1 %4445  ;;  %v8734_v4 = vld [vmem:[#allocation32_spill] sm:$0xff]  ;;  %v8736_v16 = vld [vmem:[#allocation42_spill] sm:$0xff] }
 0x4ba   : > { %v4448_v2 = vunpack.i.h.bf16 %v4446_v3  ;;  %v4447_v46 = vunpack.i.l.bf16 %v4446_v3  ;;  %v4441_v29 = vpop.permute.xlu0 %4440  ;;  %4317 = vmatprep.subr.bf16.mxu1 %v7791_v25  ;;  %v8737_v3 = vld [vmem:[#allocation47_spill] sm:$0xff] }
 0x4bb   : > { %v4443_v40 = vunpack.i.h.bf16 %v4441_v29  ;;  %v4442_v52 = vunpack.i.l.bf16 %v4441_v29  ;;  %v8740_v29 = vld [vmem:[#allocation60_spill] sm:$0xff] }
 0x4bc   : > { %v3408_v9 = vsel %vm1826_vm0, %v4447_v46, %v4448_v2  ;;  %4166 = vmatmul.mubr.msk.f32.vlgmr.msra.gmra.mrb[0].mxu1 %vm3018_vm6, %v2925_v27  ;;  %v8735_v27 = vld [vmem:[#allocation37_spill] sm:$0xff] }
 0x4bd   : > { %v3407_v41 = vsel %vm1826_vm0, %v4442_v52, %v4443_v40  ;;  %v2929_v49 = vpop.permute.xlu1 %2928  ;;  %4321 = vmatpush3.bf16.msra.mxu1 %v7791_v25  ;;  %v8738_v2 = vld [vmem:[#allocation57_spill] sm:$0xff]  ;;  %v8741_v40 = vld [vmem:[#allocation68_spill] sm:$0xff] }
 0x4be   : > { %v2927_v59 = vpop.permute.xlu0 %2926  ;;  %v4305_v60 = vpack.c.bf16 %v3408_v9, %v3407_v41  ;;  %4318 = vmatprep.subr.bf16.mxu1 %v7796_v0  ;;  %v8739_v46 = vld [vmem:[#allocation53_spill] sm:$0xff]  ;;  %v8742_v52 = vld [vmem:[#allocation56_spill] sm:$0xff]  ;;  %v8744_v41 = vld [vmem:[#allocation63_spill] sm:$0xff] }
 0x4bf   : > { %4168 = vmatprep.mubr.msk.f32.mxu1 %vm3018_vm6, %v2927_v59  ;;  %v8743_v9 = vld [vmem:[#allocation73_spill] sm:$0xff] }
 0x4c0   : > { %4169 = vmatmul.mubr.msk.f32.gmra.mrb[2].mxu1 %vm3018_vm6, %v2929_v49  ;;  %4306 = vmatprep.subr.bf16.mxu0 %v4305_v60 }
 0x4c1   : > { %4308 = vmatpush3.bf16.msra.mxu0 %v4305_v60  ;;  %v4456_v17 = vpop.permute.xlu1 %4455  ;;  %4322 = vmatpush3.bf16.msra.mxu1 %v7796_v0 }
 0x4c2   : > { %v4458_v57 = vunpack.i.h.bf16 %v4456_v17  ;;  %v4457_v37 = vunpack.i.l.bf16 %v4456_v17  ;;  %v4451_v11 = vpop.permute.xlu0 %4450  ;;  %4319 = vmatprep.subr.bf16.mxu1 %v7807_v32 }
 0x4c3   : > { %v4453_v19 = vunpack.i.h.bf16 %v4451_v11  ;;  %v4452_v25 = vunpack.i.l.bf16 %v4451_v11 }
 0x4c4   : > { %v3410_v22 = vsel %vm1826_vm0, %v4457_v37, %v4458_v57 }
 0x4c5   : > { %v3409_v6 = vsel %vm1826_vm0, %v4452_v25, %v4453_v19  ;;  %v2933_v43 = vpop.permute.xlu1 %2932  ;;  %4323 = vmatpush3.bf16.msra.mxu1 %v7807_v32 }
 0x4c6   : > { %v2931_v47 = vpop.permute.xlu0 %2930  ;;  %v4309_v35 = vpack.c.bf16 %v3410_v22, %v3409_v6  ;;  %4320 = vmatprep.subr.bf16.mxu1 %v7817_v13 }
 0x4c7   : > { %4171 = vmatprep.mubr.msk.f32.mxu1 %vm3018_vm6, %v2931_v47 }
 0x4c8   : > { %4172 = vmatmul.mubr.msk.f32.gmra.mrb[4].mxu1 %vm3018_vm6, %v2933_v43  ;;  %4310 = vmatprep.subr.bf16.mxu0 %v4309_v35 }
 0x4c9   : > { %4312 = vmatpush3.bf16.msra.mxu0 %v4309_v35  ;;  %v4466_v0 = vpop.permute.xlu1 %4465  ;;  %4324 = vmatpush3.bf16.msra.mxu1 %v7817_v13 }
 0x4ca   : > { %v4468_v33 = vunpack.i.h.bf16 %v4466_v0  ;;  %v4467_v48 = vunpack.i.l.bf16 %v4466_v0  ;;  %v4461_v51 = vpop.permute.xlu0 %4460 }
 0x4cb   : > { %v4463_v7 = vunpack.i.h.bf16 %v4461_v51  ;;  %v4462_v55 = vunpack.i.l.bf16 %v4461_v51 }
 0x4cc   : > { %v3412_v32 = vsel %vm1826_vm0, %v4467_v48, %v4468_v33 }
 0x4cd   : > { %v3411_v38 = vsel %vm1826_vm0, %v4462_v55, %v4463_v7  ;;  %v2937_v63 = vpop.permute.xlu1 %2936 }
 0x4ce   : > { %v2935_v18 = vpop.permute.xlu0 %2934  ;;  %v4313_v58 = vpack.c.bf16 %v3412_v32, %v3411_v38 }
 0x4cf   : > { %4174 = vmatprep.mubr.msk.f32.mxu1 %vm3018_vm6, %v2935_v18 }
 0x4d0   : > { %4175 = vmatmul.mubr.msk.f32.gmra.mrb[6].mxu1 %vm3018_vm6, %v2937_v63  ;;  %4314 = vmatprep.subr.bf16.mxu0 %v4313_v58 }
 0x4d1   : > { %4316 = vmatpush3.bf16.msra.mxu0 %v4313_v58  ;;  %v2941_v31 = vpop.permute.xlu1 %2940 }
 0x4d2   : > { %v2939_v13 = vpop.permute.xlu0 %2938 }
 0x4d3   : > { %4177 = vmatprep.mubr.msk.f32.mxu1 %vm3018_vm6, %v2939_v13 }
 0x4d4   : > { %4178 = vmatmul.mubr.msk.f32.gmra.mrb[8].mxu1 %vm3018_vm6, %v2941_v31  ;;  %4246 = vmatmul.mubr.msk.f32.vlgmr.msra.gmra.mrb[0].mxu0 %vm3018_vm6, %v8730_v12 }
 0x4d5   : > { %v2945_v39 = vpop.permute.xlu1 %2944  ;;  %4248 = vmatprep.mubr.msk.f32.mxu0 %vm3018_vm6, %v8731_v14 }
 0x4d6   : > { %v2943_v23 = vpop.permute.xlu0 %2942 }
 0x4d7   : > { %4180 = vmatprep.mubr.msk.f32.mxu1 %vm3018_vm6, %v2943_v23 }
 0x4d8   : > { %4181 = vmatmul.mubr.msk.f32.gmra.mrb[10].mxu1 %vm3018_vm6, %v2945_v39  ;;  %4249 = vmatmul.mubr.msk.f32.gmra.mrb[2].mxu0 %vm3018_vm6, %v8732_v24 }
 0x4d9   : > { %v2949_v21 = vpop.permute.xlu1 %2948  ;;  %4251 = vmatprep.mubr.msk.f32.mxu0 %vm3018_vm6, %v8733_v53 }
 0x4da   : > { %v2947_v62 = vpop.permute.xlu0 %2946 }
 0x4db   : > { %4183 = vmatprep.mubr.msk.f32.mxu1 %vm3018_vm6, %v2947_v62 }
 0x4dc   : > { %4184 = vmatmul.mubr.msk.f32.gmra.mrb[12].mxu1 %vm3018_vm6, %v2949_v21  ;;  %4252 = vmatmul.mubr.msk.f32.gmra.mrb[4].mxu0 %vm3018_vm6, %v8734_v4 }
 0x4dd   : > { %v2953_v30 = vpop.permute.xlu1 %2952  ;;  %4254 = vmatprep.mubr.msk.f32.mxu0 %vm3018_vm6, %v8735_v27 }
 0x4de   : > { %v2951_v5 = vpop.permute.xlu0 %2950 }
 0x4df   : > { %4186 = vmatprep.mubr.msk.f32.mxu1 %vm3018_vm6, %v2951_v5 }
 0x4e0   : > { %4187 = vmatmul.mubr.msk.f32.gmra.mrb[14].mxu1 %vm3018_vm6, %v2953_v30  ;;  %4255 = vmatmul.mubr.msk.f32.gmra.mrb[6].mxu0 %vm3018_vm6, %v8736_v16 }
 0x4e1   : > { %4217 = vmatprep.mubr.msk.f32.mxu1 %vm3018_vm6, %v8691_v10  ;;  %4257 = vmatprep.mubr.msk.f32.mxu0 %vm3018_vm6, %v8737_v3 }
 0x4e4   : > { %4218 = vmatmul.mubr.msk.f32.vlgmr.msra.gmra.mrb[8].mxu1 %vm3018_vm6, %v8690_v34  ;;  %4258 = vmatmul.mubr.msk.f32.gmra.mrb[8].mxu0 %vm3018_vm6, %v8738_v2 }
 0x4e5   : > { %4220 = vmatprep.mubr.msk.f32.mxu1 %vm3018_vm6, %v8693_v61  ;;  %4260 = vmatprep.mubr.msk.f32.mxu0 %vm3018_vm6, %v8739_v46 }
 0x4e8   : > { %4221 = vmatmul.mubr.msk.f32.gmra.mrb[10].mxu1 %vm3018_vm6, %v8692_v26  ;;  %4261 = vmatmul.mubr.msk.f32.gmra.mrb[10].mxu0 %vm3018_vm6, %v8740_v29 }
 0x4e9   : > { %4223 = vmatprep.mubr.msk.f32.mxu1 %vm3018_vm6, %v8695_v28  ;;  %4263 = vmatprep.mubr.msk.f32.mxu0 %vm3018_vm6, %v8741_v40 }
 0x4ec   : > { %4224 = vmatmul.mubr.msk.f32.gmra.mrb[12].mxu1 %vm3018_vm6, %v8694_v8  ;;  %4264 = vmatmul.mubr.msk.f32.gmra.mrb[12].mxu0 %vm3018_vm6, %v8742_v52 }
 0x4ed   : > { %4226 = vmatprep.mubr.msk.f32.mxu1 %vm3018_vm6, %v8697_v36  ;;  %4266 = vmatprep.mubr.msk.f32.mxu0 %vm3018_vm6, %v8743_v9 }
 0x4ee   : > { %v3638_v49 = vpop.permute.xlu1 %3637 }
 0x4ef   : > { %v3633_v59 = vpop.permute.xlu0 %3632 }
 0x4f0   : > { %4227 = vmatmul.mubr.msk.f32.gmra.mrb[14].mxu1 %vm3018_vm6, %v8696_v42  ;;  %4267 = vmatmul.mubr.msk.f32.gmra.mrb[14].mxu0 %vm3018_vm6, %v8744_v41 }
 0x4f2   : > { %v3643_v60 = vpop.permute.xlu1 %3642 }
 0x4f3   : > { %v3648_v17 = vpop.permute.xlu0 %3647 }
 0x4f6   : > { %v3653_v57 = vpop.permute.xlu1 %3652 }
 0x4f7   : > { %v3658_v37 = vpop.permute.xlu0 %3657 }
 0x4fa   : > { %v7993_v11 = vpop.permute.xlu1 %3662 }
 0x4fb   : > { %v7995_v19 = vpop.permute.xlu0 %3667 }
 0x4fe   : > { %v7997_v25 = vpop.permute.xlu1 %3672 }
 0x4ff   : > { %v7999_v22 = vpop.permute.xlu0 %3677 }
 0x502   : > { %v8001_v6 = vpop.permute.xlu1 %3682 }
 0x503   : > { %v8003_v43 = vpop.permute.xlu0 %3687 }
 0x506   : > { %v8005_v47 = vpop.permute.xlu1 %3692 }
 0x507   : > { %v8007_v0 = vpop.permute.xlu0 %3697 }
 0x50a   : > { %v8009_v7 = vpop.permute.xlu1 %3702 }
 0x50b   : > { %v8011_v55 = vpop.permute.xlu0 %3707 }
 0x50e   : > { %v3729_v32 = vpop.permute.xlu1 %3728 }
 0x50f   : > { %v3734_v63 = vpop.permute.xlu0 %3733 }
 0x512   : > { %v3739_v58 = vpop.permute.xlu1 %3738 }
 0x513   : > { %v3744_v31 = vpop.permute.xlu0 %3743 }
 0x516   : > { %v3749_v39 = vpop.permute.xlu1 %3748 }
 0x517   : > { %v3754_v23 = vpop.permute.xlu0 %3753 }
 0x51a   : > { %v3759_v3 = vpop.permute.xlu1 %3758 }
 0x51b   : > { %v3764_v29 = vpop.permute.xlu0 %3763 }
 0x58f   : > { %v4167_v35 = vpop.f32.mrb[0].mxu1 }
 0x590   : > { %v3117_v33 = vpop.f32.mrb[1].mxu1 }
 0x593   : > { %v4170_v48 = vpop.f32.mrb[2].mxu1 }
 0x594   : > { %v3127_v51 = vpop.f32.mrb[3].mxu1 }
 0x59b   : > { %v4173_v38 = vpop.f32.mrb[4].mxu1 }
 0x59c   : > { %v3137_v18 = vpop.f32.mrb[5].mxu1 }
 0x5a3   : > { %v4176_v13 = vpop.f32.mrb[6].mxu1 }
 0x5a4   : > { %v3147_v12 = vpop.f32.mrb[7].mxu1 }
 0x5a7   : > { %v4247_v14 = vpop.f32.mrb[0].mxu0 }
 0x5a8   : > { %v4325_v24 = vadd.f32 %v4247_v14, %v4167_v35  ;;  %v3535_v21 = vpop.f32.mrb[1].mxu0 }
 0x5a9   : > { %v4326_v53 = vadd.f32 %v3535_v21, %v3117_v33  ;;  %v3774_v21 = vpop.permute.xlu0 %3773 }
 0x5aa   : > { %v3711_v62 = vmul.f32 %v4325_v24, %v3638_v49 }
 0x5ab   : > { %v3710_v4 = vmul.f32 %v4326_v53, %v3633_v59  ;;  %v4250_v30 = vpop.f32.mrb[2].mxu0 }
 0x5ac   : > { %v3807_v27 = vadd.f32 %v3734_v63, %v3711_v62  ;;  %v4327_v5 = vadd.f32 %v4250_v30, %v4170_v48  ;;  %v3545_v16 = vpop.f32.mrb[3].mxu0  ;;  %v3769_v48 = vpop.permute.xlu1 %3768 }
 0x5ad   : > { %v3806_v2 = vadd.f32 %v3729_v32, %v3710_v4  ;;  %v4328_v46 = vadd.f32 %v3545_v16, %v3127_v51 }
 0x5ae   : > { %v3823_v40 = vmax.f32 %v3807_v27, 0.0  ;;  %v3713_v52 = vmul.f32 %v4327_v5, %v3648_v17 }
 0x5af   : > { %v3822_v9 = vmax.f32 %v3806_v2, 0.0  ;;  %v3712_v41 = vmul.f32 %v4328_v46, %v3643_v60  ;;  %v4253_v1 = vpop.f32.mrb[4].mxu0 }
 0x5b0   : > { %v3809_v8 = vadd.f32 %v3744_v31, %v3713_v52  ;;  %v4329_v35 = vadd.f32 %v4253_v1, %v4173_v38  ;;  %v3555_v14 = vpop.f32.mrb[5].mxu0  ;;  %v3779_v46 = vpop.permute.xlu1 %3778 }
 0x5b1   : > { %v4033_v33 = vpack.c.bf16 %v3823_v40, %v3822_v9  ;;  %v3808_v49 = vadd.f32 %v3739_v58, %v3712_v41  ;;  %v4330_v59 = vadd.f32 %v3555_v14, %v3137_v18 }
 0x5b2   : > { %v3825_v24 = vmax.f32 %v3809_v8, 0.0  ;;  %v3715_v63 = vmul.f32 %v4329_v35, %v3658_v37 }
 0x5b3   : > { %4034 = vst [vmem:[%s8014_s22] sm:$0xff] %v4033_v33   ;;  %v3824_v51 = vmax.f32 %v3808_v49, 0.0  ;;  %v3714_v32 = vmul.f32 %v4330_v59, %v3653_v57  ;;  %v4256_v17 = vpop.f32.mrb[6].mxu0 }
 0x5b4   : > { %v3811_v60 = vadd.f32 %v3754_v23, %v3715_v63  ;;  %v4331_v53 = vadd.f32 %v4256_v17, %v4176_v13  ;;  %v3565_v31 = vpop.f32.mrb[7].mxu0 }
 0x5b5   : > { %v4038_v1 = vpack.c.bf16 %v3825_v24, %v3824_v51  ;;  %v3810_v38 = vadd.f32 %v3749_v39, %v3714_v32  ;;  %v4332_v62 = vadd.f32 %v3565_v31, %v3147_v12  ;;  %v3784_v39 = vpop.permute.xlu0 %3783 }
 0x5b6   : > { %v3827_v58 = vmax.f32 %v3811_v60, 0.0  ;;  %v3717_v8 = vmul.f32 %v4331_v53, %v7995_v19 }
 0x5b7   : > { %4070 = vst [vmem:[%s8014_s22 + $0x8] sm:$0xff] %v4038_v1   ;;  %v3826_v37 = vmax.f32 %v3810_v38, 0.0  ;;  %v3716_v18 = vmul.f32 %v4332_v62, %v7993_v11  ;;  %v4219_v4 = vpop.f32.mrb[8].mxu1  ;;  %v4259_v30 = vpop.f32.mrb[8].mxu0 }
 0x5b8   : > { %v3813_v27 = vadd.f32 %v3764_v29, %v3717_v8  ;;  %v4333_v57 = vadd.f32 %v4259_v30, %v4219_v4  ;;  %v3334_v5 = vpop.f32.mrb[9].mxu1  ;;  %v3575_v16 = vpop.f32.mrb[9].mxu0 }
 0x5b9   : > { %v4043_v23 = vpack.c.bf16 %v3827_v58, %v3826_v37  ;;  %v3812_v13 = vadd.f32 %v3759_v3, %v3716_v18  ;;  %v4334_v2 = vadd.f32 %v3575_v16, %v3334_v5  ;;  %v3794_v53 = vpop.permute.xlu0 %3793 }
 0x5ba   : > { %v3829_v12 = vmax.f32 %v3813_v27, 0.0  ;;  %v3719_v19 = vmul.f32 %v4333_v57, %v7999_v22 }
 0x5bb   : > { %4071 = vst [vmem:[%s8014_s22 + $0x10] sm:$0xff] %v4043_v23   ;;  %v3828_v40 = vmax.f32 %v3812_v13, 0.0  ;;  %v3718_v52 = vmul.f32 %v4334_v2, %v7997_v25  ;;  %v4222_v11 = vpop.f32.mrb[10].mxu1  ;;  %v4262_v9 = vpop.f32.mrb[10].mxu0 }
 0x5bc   : > { %v3815_v41 = vadd.f32 %v3774_v21, %v3719_v19  ;;  %v4335_v29 = vadd.f32 %v4262_v9, %v4222_v11  ;;  %v3344_v35 = vpop.f32.mrb[11].mxu1  ;;  %v3585_v14 = vpop.f32.mrb[11].mxu0 }
 0x5bd   : > { %v4048_v33 = vpack.c.bf16 %v3829_v12, %v3828_v40  ;;  %v3814_v49 = vadd.f32 %v3769_v48, %v3718_v52  ;;  %v4336_v3 = vadd.f32 %v3585_v14, %v3344_v35  ;;  %v3789_v48 = vpop.permute.xlu1 %3788 }
 0x5be   : > { %v3831_v59 = vmax.f32 %v3815_v41, 0.0  ;;  %v3721_v24 = vmul.f32 %v4335_v29, %v8003_v43 }
 0x5bf   : > { %4072 = vst [vmem:[%s8014_s22 + $0x18] sm:$0xff] %v4048_v33   ;;  %v3830_v63 = vmax.f32 %v3814_v49, 0.0  ;;  %v3720_v22 = vmul.f32 %v4336_v3, %v8001_v6  ;;  %v4225_v51 = vpop.f32.mrb[12].mxu1  ;;  %v4265_v32 = vpop.f32.mrb[12].mxu0 }
 0x5c0   : > { %v3817_v25 = vadd.f32 %v3784_v39, %v3721_v24  ;;  %v4337_v17 = vadd.f32 %v4265_v32, %v4225_v51  ;;  %v3354_v60 = vpop.f32.mrb[13].mxu1  ;;  %v3595_v21 = vpop.f32.mrb[13].mxu0 }
 0x5c1   : > { %v4053_v31 = vpack.c.bf16 %v3831_v59, %v3830_v63  ;;  %v3816_v1 = vadd.f32 %v3779_v46, %v3720_v22  ;;  %v4338_v38 = vadd.f32 %v3595_v21, %v3354_v60 }
 0x5c2   : > { %v3833_v62 = vmax.f32 %v3817_v25, 0.0  ;;  %v3723_v58 = vmul.f32 %v4337_v17, %v8007_v0  ;;  %v3804_v0 = vpop.permute.xlu0 %3803 }
 0x5c3   : > { %4073 = vst [vmem:[%s8014_s22 + $0x20] sm:$0xff] %v4053_v31   ;;  %v3832_v43 = vmax.f32 %v3816_v1, 0.0  ;;  %v3722_v8 = vmul.f32 %v4338_v38, %v8005_v47  ;;  %v4228_v6 = vpop.f32.mrb[14].mxu1  ;;  %v4268_v37 = vpop.f32.mrb[14].mxu0 }
 0x5c4   : > { %v3819_v18 = vadd.f32 %v3794_v53, %v3723_v58  ;;  %v4339_v4 = vadd.f32 %v4268_v37, %v4228_v6  ;;  %v3364_v30 = vpop.f32.mrb[15].mxu1  ;;  %v3605_v27 = vpop.f32.mrb[15].mxu0 }
 0x5c5   : > { %v4058_v57 = vpack.c.bf16 %v3833_v62, %v3832_v43  ;;  %v3818_v5 = vadd.f32 %v3789_v48, %v3722_v8  ;;  %v4340_v16 = vadd.f32 %v3605_v27, %v3364_v30  ;;  %v3799_v47 = vpop.permute.xlu1 %3798 }
 0x5c6   : > { %v3835_v23 = vmax.f32 %v3819_v18, 0.0  ;;  %v3725_v13 = vmul.f32 %v4339_v4, %v8011_v55 }
 0x5c7   : > { %4074 = vst [vmem:[%s8014_s22 + $0x28] sm:$0xff] %v4058_v57   ;;  %v3834_v2 = vmax.f32 %v3818_v5, 0.0  ;;  %v3724_v46 = vmul.f32 %v4340_v16, %v8009_v7 }
 0x5c8   : > { %v3821_v39 = vadd.f32 %v3804_v0, %v3725_v13 }
 0x5c9   : > { %v4063_v12 = vpack.c.bf16 %v3835_v23, %v3834_v2  ;;  %v3820_v19 = vadd.f32 %v3799_v47, %v3724_v46  ;;  %2885 = sbr.rel (!%p2883_p0) target bundleno = 1062 (0x426), region = 57 }
 0x5ca   : > { %v3837_v40 = vmax.f32 %v3821_v39, 0.0 }
 0x5cb   : > { %4075 = vst [vmem:[%s8014_s22 + $0x30] sm:$0xff] %v4063_v12   ;;  %v3836_v52 = vmax.f32 %v3820_v19, 0.0 }
 0x5cd   : > { %v4068_v11 = vpack.c.bf16 %v3837_v40, %v3836_v52 }
 0x5cf   : > { %4076 = vst [vmem:[%s8014_s22 + $0x38] sm:$0xff] %v4068_v11  }
 0x5d0   :  { %4482 = shalt.err (!%p4479_p5)
}
 0x5d1   :  { %s4483_s3 = scalar_lea.hbm %s8056_s7, 8192 }
 0x5d2   :  { %p4484_p6 = scmp.ne.s32.totalorder %s8056_s7, %s4483_s3  ;;  %p4487_p7 = scmp.lt.u32.totalorder %s4483_s3, %s8056_s7 }
 0x5d4   :  { %p4489_p8 = pnand %p4487_p7, %p4484_p6 }
 0x5d6   :  { %4492 = shalt.err (!%p4489_p8)
}
 0x5d7   :  { %s4515_s8 = smov 64   ;;  %s4516_s9 = smov 4  }
 0x5d8   :  { %3931 = dma.vmem_to_hbm [thread:$0]  %s3926_s24, 8192, %s8056_s7, [#allocation4], %s4515_s8, %s4515_s8, %s4516_s9  }
 0x5d9   :  { %4497 = dma.done.wait [#allocation4], 8192  }
 0x5da   :  { %4498 = vsyncadd [#allocation4], 4294959104 }
 0x5db   :  { %3935 = vsyncpa [#allocation4], 1 }

</bundles_post_ra>
